<compile_context>
chip_gen: v5e
topology: v5e:2x2
jax: 0.10.0
libtpu: 0.0.40
codegen_flags: <defaults>
</compile_context>

<pallas_src>
import math
from functools import partial

import jax
import jax.numpy as jnp
from jax import lax
from jax.experimental import pallas as pl
from jax.experimental.pallas import tpu as pltpu

# ---- static configuration (synthetic, small) --------------------------------
B = 2             # batch
T = 16            # sequence length (seq_len)
D = 64            # model size
NUM_HEADS = 4
HEAD_DIM = D // NUM_HEADS
DFF = 128         # feed-forward hidden units
CONV_K = 7        # depthwise conv kernel size (odd)
LEN_CLS = 0       # TODO(synk): HS-Conformer's modified ConvolutionModule CLS-split
                  # behaviour for len_cls > 0 is not reproduced; with len_cls = 0
                  # it degenerates to the standard wenet ConvolutionModule.

assert DFF == 2 * D, "128-lane slab packing / GLU slicing assume DFF == 2*D"

# ---- packed parameter slab layouts -------------------------------------------
# vecs slab: f32, 128 lanes.  64-wide vectors live in lanes [0:D), zero-padded.
_V_LN_FFM_G, _V_LN_FFM_B, _V_FFM_B2 = 0, 1, 2
_V_LN_MHA_G, _V_LN_MHA_B = 3, 4
_V_BQ, _V_BK, _V_BV, _V_BO = 5, 6, 7, 8
_V_PBU, _V_PBV = 9, 10                 # pos_bias_u / pos_bias_v, head-major flat
_V_LN_CONV_G, _V_LN_CONV_B, _V_DW_B = 11, 12, 13
_V_CLN_G, _V_CLN_B, _V_PW2_B = 14, 15, 16
_V_LN_FF_G, _V_LN_FF_B, _V_FF_B2 = 17, 18, 19
_V_LN_FIN_G, _V_LN_FIN_B = 20, 21
_V_SWP_W = 22
_V_FFM_B1, _V_PW1_B, _V_FF_B1 = 23, 24, 25      # full 128-wide rows
_V_DW_W = 26                                    # rows [26, 26 + CONV_K)
_V_ROWS = _V_DW_W + CONV_K

# mats slab: bf16, 128 lanes.
_M_FFM_W1 = 0                 # rows [0, D):        ffm_w1  (D, DFF)
_M_PW1_W = D                  # rows [D, 2D):       pw1_w   (D, 2D)
_M_FF_W1 = 2 * D              # rows [2D, 3D):      ff_w1   (D, DFF)
_M_W2 = 3 * D                 # rows [3D, 3D+DFF):  lanes [0:D)=ffm_w2, [D:2D)=ff_w2
_M_WO = 3 * D + DFF           # rows [.., ..+D):    lanes [0:D)=wo,     [D:2D)=pw2_w
_M_ROWS = _M_WO + D


# ---- fused kernel: one block of BB batch elements per grid step --------------
def _layer_kernel(x_ref, p_ref, wqkv_ref, mats_ref, vecs_ref, out_ref):
    f32, bf16 = jnp.float32, jnp.bfloat16
    x = x_ref[...].astype(f32)                 # (BB*T, D)
    p = p_ref[...].astype(f32)                 # (BB*T, D) linear_pos(pos_emb), tiled
    bbt, d = x.shape
    bb = bbt // T
    half = T // 2

    # -- hoisted parameter loads (each slab read exactly once) ----------------
    def vrow(i):                               # (1, D)   f32
        return vecs_ref[i:i + 1, 0:D]

    def vrow_w(i):                             # (1, 128) f32
        return vecs_ref[i:i + 1, :]

    ln_ffm_g, ln_ffm_b = vrow(_V_LN_FFM_G), vrow(_V_LN_FFM_B)
    ln_mha_g, ln_mha_b = vrow(_V_LN_MHA_G), vrow(_V_LN_MHA_B)
    ln_conv_g, ln_conv_b = vrow(_V_LN_CONV_G), vrow(_V_LN_CONV_B)
    cln_g, cln_b = vrow(_V_CLN_G), vrow(_V_CLN_B)
    ln_ff_g, ln_ff_b = vrow(_V_LN_FF_G), vrow(_V_LN_FF_B)
    ln_fin_g, ln_fin_b = vrow(_V_LN_FIN_G), vrow(_V_LN_FIN_B)
    ffm_b2, ff_b2 = vrow(_V_FFM_B2), vrow(_V_FF_B2)
    bq, bk, bv, bo = vrow(_V_BQ), vrow(_V_BK), vrow(_V_BV), vrow(_V_BO)
    pbu, pbv = vrow(_V_PBU), vrow(_V_PBV)
    dw_b, pw2_b, swp_w = vrow(_V_DW_B), vrow(_V_PW2_B), vrow(_V_SWP_W)
    dw = vecs_ref[_V_DW_W:_V_DW_W + CONV_K, 0:D]           # (K, D) f32
    ffm_b1, pw1_b, ff_b1 = vrow_w(_V_FFM_B1), vrow_w(_V_PW1_B), vrow_w(_V_FF_B1)

    ffm_w1 = mats_ref[_M_FFM_W1:_M_FFM_W1 + D, :]          # (D, DFF) bf16
    pw1_w = mats_ref[_M_PW1_W:_M_PW1_W + D, :]             # (D, 2D)  bf16
    ff_w1 = mats_ref[_M_FF_W1:_M_FF_W1 + D, :]             # (D, DFF) bf16
    ffm_w2 = mats_ref[_M_W2:_M_W2 + DFF, 0:D]              # (DFF, D) bf16
    ff_w2 = mats_ref[_M_W2:_M_W2 + DFF, D:2 * D]           # (DFF, D) bf16
    wo = mats_ref[_M_WO:_M_WO + D, 0:D]                    # (D, D)   bf16
    pw2_w = mats_ref[_M_WO:_M_WO + D, D:2 * D]             # (D, D)   bf16
    w_qkv = wqkv_ref[...]                                  # (D, 3D)  bf16

    # -- helpers ----------------------------------------------------------------
    def bdot(a, w):                            # bf16 MXU operands, f32 accumulate
        return jnp.dot(a.astype(bf16), w.astype(bf16), preferred_element_type=f32)

    def bdot_nt(a, bm):                        # a @ bm.T, bf16 operands
        return lax.dot_general(a.astype(bf16), bm.astype(bf16),
                               (((1,), (1,)), ((), ())),
                               preferred_element_type=f32)

    def layer_norm(z, g, b, eps=1e-12):        # one-pass: independent reductions
        m = jnp.mean(z, axis=-1, keepdims=True)
        ms = jnp.mean(z * z, axis=-1, keepdims=True)
        var = jnp.maximum(ms - m * m, 0.0)
        return (z - m) * lax.rsqrt(var + eps) * g + b

    def swish(z):
        return z * jax.nn.sigmoid(z)

    def ffn(z, w1, b1, w2, b2):                # PositionwiseFeedForward (Swish)
        h = swish(bdot(z, w1) + b1)
        return bdot(h, w2) + b2

    def softmax_last(s):                       # softmax over last axis (EUP recip)
        s = s - jnp.max(s, axis=-1, keepdims=True)
        e = jnp.exp(s)
        return e * pl.reciprocal(jnp.sum(e, axis=-1, keepdims=True), approx=True)

    # -- macaron feed-forward: x = x + 0.5 * ff_macaron(norm_ff_macaron(x)) ----
    x = x + 0.5 * ffn(layer_norm(x, ln_ffm_g, ln_ffm_b),
                      ffm_w1, ffm_b1, ffm_w2, ffm_b2)

    # -- rel-pos multi-head self-attention: x = x + attn(norm_mha(x)) ----------
    xn = layer_norm(x, ln_mha_g, ln_mha_b)
    qkv = bdot(xn, w_qkv)                                   # (BBT, 3D)
    q = qkv[:, 0:D] + bq
    k = qkv[:, D:2 * D] + bk
    v = qkv[:, 2 * D:3 * D] + bv

    if bb > 1:                                  # block-diagonal cross-batch mask
        r_id = lax.broadcasted_iota(jnp.int32, (bbt, bbt), 0) // T
        c_id = lax.broadcasted_iota(jnp.int32, (bbt, bbt), 1) // T
        neg_mask = jnp.where(r_id == c_id, 0.0, -1e30).astype(f32)
    else:
        neg_mask = None

    inv_sqrt_dk = 1.0 / math.sqrt(HEAD_DIM)
    ctx_parts = []
    for h in range(NUM_HEADS):                  # static unroll over heads
        lo, hi = h * HEAD_DIM, (h + 1) * HEAD_DIM
        qh, kh, vh, ph = q[:, lo:hi], k[:, lo:hi], v[:, lo:hi], p[:, lo:hi]
        # matrix_ac + matrix_bd fused into ONE matmul (K = 2*dk):
        q_cat = jnp.concatenate([qh + pbu[:, lo:hi], qh + pbv[:, lo:hi]], axis=1)
        kp_cat = jnp.concatenate([kh, ph], axis=1)
        scores = bdot_nt(q_cat, kp_cat) * inv_sqrt_dk       # (BBT, BBT)
        if neg_mask is not None:
            scores = scores + neg_mask
        aw = softmax_last(scores)               # (wenet rel-pos attn: no rel_shift)
        ctx_parts.append(bdot(aw, vh))                      # (BBT, dk)
    ctx = jnp.concatenate(ctx_parts, axis=1)                # (BBT, D) == head concat
    x = x + bdot(ctx, wo) + bo                              # single W_o matmul

    # -- convolution module: x = x + conv(norm_conv(x)) ------------------------
    c = layer_norm(x, ln_conv_g, ln_conv_b)
    c = bdot(c, pw1_w) + pw1_b                              # pointwise_conv1 (T, 2D)
    c = c[:, 0:D] * jax.nn.sigmoid(c[:, D:2 * D])           # GLU over channels
    # depthwise conv over time, per-batch 'same' zero padding, via XLU rolls
    pad = (CONV_K - 1) // 2
    tmod = lax.broadcasted_iota(jnp.int32, (bbt, 1), 0) % T
    acc = jnp.zeros((bbt, d), f32)
    for kk in range(CONV_K):
        off = kk - pad
        if off == 0:
            shifted = c
        else:
            shifted = pltpu.roll(c, shift=(-off) % bbt, axis=0)   # c[r + off]
            valid = jnp.logical_and(tmod + off >= 0, tmod + off < T).astype(f32)
            shifted = shifted * valid                       # zero pad + batch edge
        acc = acc + shifted * dw[kk:kk + 1, :]
    c = acc + dw_b
    # TODO(synk): wenet ConvolutionModule defaults to BatchNorm1d (eval running
    # stats); the layer_norm variant (eps=1e-5) is used here.
    c = swish(layer_norm(c, cln_g, cln_b, eps=1e-5))
    c = bdot(c, pw2_w) + pw2_b                              # pointwise_conv2
    x = x + c

    # -- feed-forward: x = x + 0.5 * ff(norm_ff(x)) ----------------------------
    x = x + 0.5 * ffn(layer_norm(x, ln_ff_g, ln_ff_b), ff_w1, ff_b1, ff_w2, ff_b2)

    # -- final norm (conv_module present) ---------------------------------------
    x = layer_norm(x, ln_fin_g, ln_fin_b)

    # -- SelfWeightedPooling (num_head=1, mean_only=True, tanh=False), per batch -
    s = jnp.sum(x * swp_w, axis=-1, keepdims=True)          # (BBT, 1)
    cls_parts = []
    for b in range(bb):                          # static unroll; segmented softmax
        xb = x[b * T:(b + 1) * T]
        sb = s[b * T:(b + 1) * T]
        sb = sb - jnp.max(sb, axis=0, keepdims=True)
        eb = jnp.exp(sb)
        awb = eb * pl.reciprocal(jnp.sum(eb, axis=0, keepdims=True), approx=True)
        cls_parts.append(jnp.sum(xb * awb, axis=0, keepdims=True))   # (1, D)
    cls_row = jnp.concatenate(cls_parts, axis=1)            # (1, BB*D)

    # -- fused epilogue: MaxPool1d(2,2), sqrt(D) scale, CLS prepend, lane-dense --
    y = jnp.maximum(x, pltpu.roll(x, shift=bbt - 1, axis=0))      # pair max x[r],x[r+1]
    rr = lax.broadcasted_iota(jnp.int32, (bb * half, bbt), 0)
    cc = lax.broadcasted_iota(jnp.int32, (bb * half, bbt), 1)
    sel = (cc == 2 * rr).astype(f32)                        # even-row selection
    pooled = jnp.dot(sel, y, preferred_element_type=f32)    # (BB*half, D)
    pooled_cat = jnp.concatenate(
        [pooled[b * half:(b + 1) * half] for b in range(bb)], axis=1)  # (half, BB*D)
    out = jnp.concatenate([cls_row, pooled_cat * math.sqrt(d)], axis=0)
    out_ref[...] = out.astype(out_ref.dtype)                # (half+1, BB*D)


# ---- glue --------------------------------------------------------------------
def sinusoid_pos_emb(length, d_model):
    """wenet PositionalEncoding table slice pe[:, :length] of shape (1, L, D)."""
    position = jnp.arange(length, dtype=jnp.float32)[:, None]
    div_term = jnp.exp(jnp.arange(0, d_model, 2, dtype=jnp.float32) *
                       (-math.log(10000.0) / d_model))
    pe = jnp.zeros((length, d_model), jnp.float32)
    pe = pe.at[:, 0::2].set(jnp.sin(position * div_term))
    pe = pe.at[:, 1::2].set(jnp.cos(position * div_term))
    return pe[None]


def pack_params(p):
    """Pack the ~38 small parameter tensors into 3 slabs (+ wpos), host-side."""
    f32 = jnp.float32

    def row64(a):
        a = jnp.reshape(jnp.asarray(a, f32), (1, D))
        return jnp.concatenate([a, jnp.zeros((1, 128 - D), f32)], axis=1)

    def row128(a):
        return jnp.reshape(jnp.asarray(a, f32), (1, 128))

    rows = [None] * _V_ROWS
    rows[_V_LN_FFM_G], rows[_V_LN_FFM_B] = row64(p["ln_ffm_g"]), row64(p["ln_ffm_b"])
    rows[_V_FFM_B2] = row64(p["ffm_b2"])
    rows[_V_LN_MHA_G], rows[_V_LN_MHA_B] = row64(p["ln_mha_g"]), row64(p["ln_mha_b"])
    rows[_V_BQ], rows[_V_BK] = row64(p["bq"]), row64(p["bk"])
    rows[_V_BV], rows[_V_BO] = row64(p["bv"]), row64(p["bo"])
    # pbu / pbv: (num_heads, d_k) flattened head-major -> lanes [h*dk:(h+1)*dk)
    rows[_V_PBU], rows[_V_PBV] = row64(p["pbu"]), row64(p["pbv"])
    rows[_V_LN_CONV_G], rows[_V_LN_CONV_B] = row64(p["ln_conv_g"]), row64(p["ln_conv_b"])
    rows[_V_DW_B] = row64(p["dw_b"])
    rows[_V_CLN_G], rows[_V_CLN_B] = row64(p["cln_g"]), row64(p["cln_b"])
    rows[_V_PW2_B] = row64(p["pw2_b"])
    rows[_V_LN_FF_G], rows[_V_LN_FF_B] = row64(p["ln_ff_g"]), row64(p["ln_ff_b"])
    rows[_V_FF_B2] = row64(p["ff_b2"])
    rows[_V_LN_FIN_G], rows[_V_LN_FIN_B] = row64(p["ln_fin_g"]), row64(p["ln_fin_b"])
    rows[_V_SWP_W] = row64(p["swp_w"])
    rows[_V_FFM_B1], rows[_V_PW1_B], rows[_V_FF_B1] = (
        row128(p["ffm_b1"]), row128(p["pw1_b"]), row128(p["ff_b1"]))
    for i in range(CONV_K):
        rows[_V_DW_W + i] = row64(p["dw_w"][i])
    vecs = jnp.concatenate(rows, axis=0)                               # (33, 128) f32

    mats = jnp.concatenate([
        p["ffm_w1"],                                                   # (D, 128)
        p["pw1_w"],                                                    # (D, 128)
        p["ff_w1"],                                                    # (D, 128)
        jnp.concatenate([p["ffm_w2"], p["ff_w2"]], axis=1),            # (DFF, 128)
        jnp.concatenate([p["wo"], p["pw2_w"]], axis=1),                # (D, 128)
    ], axis=0).astype(jnp.bfloat16)                                    # (384, 128)
    assert mats.shape[0] == _M_ROWS

    wqkv = jnp.concatenate([p["wq"], p["wk"], p["wv"]],
                           axis=1).astype(jnp.bfloat16)                # (D, 3D)

    return dict(wqkv=wqkv, mats=mats, vecs=vecs, wpos=jnp.asarray(p["wpos"], f32))


def pick_block_batch(batch):
    """Batch elements fused per grid step: whole batch on single-TC chips
    (v5e / v6e), one per step on multi-core chips (v7x / v4 / v5p) so the
    'parallel' grid axis spreads work across TensorCores."""
    kind = ""
    try:
        kind = jax.devices()[0].device_kind.lower()
    except Exception:
        pass
    single_tc = any(s in kind for s in ("v5e", "v5 lite", "v5litepod", "v6e", "v6 lite"))
    bb = batch if single_tc else 1
    return bb if batch % bb == 0 else 1


@partial(jax.jit, static_argnames=("block_batch",))
def conformer_layer(x, pos_emb, packed, block_batch=1):
    """Forward of ConformerEncoderLayerSeq_NonLPE_HieraCLS.  Returns (x, pos_emb)."""
    b, t, d = x.shape
    bb = block_batch
    half = t // 2

    # linear_pos (bias-free) is batch-invariant: project once, tile per block.
    p_proj = jnp.dot(pos_emb[0], packed["wpos"])                # (T, D)
    p_tiled = jnp.tile(p_proj, (bb, 1))                         # (bb*T, D)
    x_blk = x.reshape(b // bb, bb * t, d)                       # batch stacked on rows

    out = pl.pallas_call(
        _layer_kernel,
        out_shape=jax.ShapeDtypeStruct((b // bb, half + 1, bb * d), jnp.float32),
        grid_spec=pltpu.PrefetchScalarGridSpec(
            num_scalar_prefetch=0,
            grid=(b // bb,),
            in_specs=[
                pl.BlockSpec((None, bb * t, d), lambda i: (i, 0, 0)),   # x block
                pl.BlockSpec((bb * t, d), lambda i: (0, 0)),            # pos (shared)
                pl.BlockSpec(packed["wqkv"].shape, lambda i: (0, 0)),
                pl.BlockSpec(packed["mats"].shape, lambda i: (0, 0)),
                pl.BlockSpec(packed["vecs"].shape, lambda i: (0, 0)),
            ],
            out_specs=pl.BlockSpec((None, half + 1, bb * d), lambda i: (i, 0, 0)),
        ),
        compiler_params=pltpu.CompilerParams(dimension_semantics=("parallel",)),
    )(x_blk, p_tiled, packed["wqkv"], packed["mats"], packed["vecs"])

    # un-permute the lane-packed output (rows=time, lane slices=batch) to (B, T/2+1, D)
    out = out.reshape(b // bb, half + 1, bb, d).transpose(0, 2, 1, 3).reshape(
        b, half + 1, d)

    # RelPositionalEncoding: new sinusoidal pos_emb for the downsampled length.
    new_pos = sinusoid_pos_emb(half, d)
    return out, new_pos


def init_params(key):
    """Deterministic synthetic parameter init (shapes from the module __init__)."""
    ks = iter(jax.random.split(key, 32))

    def lin(din, dout):
        return jax.random.normal(next(ks), (din, dout), jnp.float32) / math.sqrt(din)

    p = {}
    for name in ("ln_ffm", "ln_mha", "ln_conv", "cln", "ln_ff", "ln_fin"):
        p[f"{name}_g"] = jnp.ones((1, D), jnp.float32)
        p[f"{name}_b"] = jnp.zeros((1, D), jnp.float32)
    p["ffm_w1"], p["ffm_b1"] = lin(D, DFF), jnp.zeros((1, DFF), jnp.float32)
    p["ffm_w2"], p["ffm_b2"] = lin(DFF, D), jnp.zeros((1, D), jnp.float32)
    for n in ("q", "k", "v", "o"):
        p[f"w{n}"], p[f"b{n}"] = lin(D, D), jnp.zeros((1, D), jnp.float32)
    p["wpos"] = lin(D, D)
    p["pbu"] = 0.02 * jax.random.normal(next(ks), (1, D), jnp.float32)  # (H, dk) flat
    p["pbv"] = 0.02 * jax.random.normal(next(ks), (1, D), jnp.float32)
    p["pw1_w"], p["pw1_b"] = lin(D, 2 * D), jnp.zeros((1, 2 * D), jnp.float32)
    p["dw_w"] = jax.random.normal(next(ks), (CONV_K, D), jnp.float32) / math.sqrt(CONV_K)
    p["dw_b"] = jnp.zeros((1, D), jnp.float32)
    p["pw2_w"], p["pw2_b"] = lin(D, D), jnp.zeros((1, D), jnp.float32)
    p["ff_w1"], p["ff_b1"] = lin(D, DFF), jnp.zeros((1, DFF), jnp.float32)
    p["ff_w2"], p["ff_b2"] = lin(DFF, D), jnp.zeros((1, D), jnp.float32)
    p["swp_w"] = math.sqrt(2.0 / D) * jax.random.normal(next(ks), (1, D), jnp.float32)
    return p


if __name__ == "__main__":
    key = jax.random.PRNGKey(0)
    k_x, k_p = jax.random.split(key)
    params = init_params(k_p)
    packed = pack_params(params)                      # one-time host-side packing
    x = jax.random.normal(k_x, (B, T, D), jnp.float32)
    pos_emb = sinusoid_pos_emb(T, D)

    bb = pick_block_batch(B)                          # batch-fused on v5e/v6e
    out_x, out_pos = conformer_layer(x, pos_emb, packed, block_batch=bb)
    jax.block_until_ready((out_x, out_pos))

    assert out_x.shape == (B, T // 2 + 1, D)
    assert out_pos.shape == (1, T // 2, D)
    assert bool(jnp.all(jnp.isfinite(out_x)))
    print("KERNEL_OK")
</pallas_src>

<mosaic_0001>
module attributes {stable_mosaic.version = 11 : i64} {
  func.func @_layer_kernel(%arg0: i32, %arg1: memref<1x16x64xf32, #tpu.memory_space<vmem>>, %arg2: memref<16x64xf32, #tpu.memory_space<vmem>>, %arg3: memref<64x192xbf16, #tpu.memory_space<vmem>>, %arg4: memref<384x128xbf16, #tpu.memory_space<vmem>>, %arg5: memref<33x128xf32, #tpu.memory_space<vmem>>, %arg6: memref<1x9x64xf32, #tpu.memory_space<vmem>>) attributes {dimension_semantics = [#tpu.dimension_semantics<parallel>], iteration_bounds = array<i64: 2>, scalar_prefetch = 0 : i64, scratch_operands = 0 : i64, tpu.core_type = #tpu.core_type<tc>, window_params = [{transform_indices = @transform_0, window_bounds = array<i64: 1, 16, 64>}, {pipeline_mode = #tpu.pipeline_mode<synchronous>, transform_indices = @transform_1, window_bounds = array<i64: 16, 64>}, {pipeline_mode = #tpu.pipeline_mode<synchronous>, transform_indices = @transform_2, window_bounds = array<i64: 64, 192>}, {pipeline_mode = #tpu.pipeline_mode<synchronous>, transform_indices = @transform_3, window_bounds = array<i64: 384, 128>}, {pipeline_mode = #tpu.pipeline_mode<synchronous>, transform_indices = @transform_4, window_bounds = array<i64: 33, 128>}, {transform_indices = @transform_5, window_bounds = array<i64: 1, 9, 64>}]} {
    %c0 = arith.constant 0 : index
    %c0_0 = arith.constant 0 : index
    %c0_1 = arith.constant 0 : index
    %0 = vector.load %arg1[%c0, %c0_0, %c0_1] : memref<1x16x64xf32, #tpu.memory_space<vmem>>, vector<1x16x64xf32>
    %1 = vector.shape_cast %0 : vector<1x16x64xf32> to vector<16x64xf32>
    %c0_2 = arith.constant 0 : index
    %c0_3 = arith.constant 0 : index
    %2 = vector.load %arg2[%c0_2, %c0_3] : memref<16x64xf32, #tpu.memory_space<vmem>>, vector<16x64xf32>
    %c0_4 = arith.constant 0 : index
    %c0_5 = arith.constant 0 : index
    %3 = vector.load %arg5[%c0_4, %c0_5] : memref<33x128xf32, #tpu.memory_space<vmem>>, vector<1x64xf32>
    %c1 = arith.constant 1 : index
    %c0_6 = arith.constant 0 : index
    %4 = vector.load %arg5[%c1, %c0_6] : memref<33x128xf32, #tpu.memory_space<vmem>>, vector<1x64xf32>
    %c3 = arith.constant 3 : index
    %c0_7 = arith.constant 0 : index
    %5 = vector.load %arg5[%c3, %c0_7] : memref<33x128xf32, #tpu.memory_space<vmem>>, vector<1x64xf32>
    %c4 = arith.constant 4 : index
    %c0_8 = arith.constant 0 : index
    %6 = vector.load %arg5[%c4, %c0_8] : memref<33x128xf32, #tpu.memory_space<vmem>>, vector<1x64xf32>
    %c11 = arith.constant 11 : index
    %c0_9 = arith.constant 0 : index
    %7 = vector.load %arg5[%c11, %c0_9] : memref<33x128xf32, #tpu.memory_space<vmem>>, vector<1x64xf32>
    %c12 = arith.constant 12 : index
    %c0_10 = arith.constant 0 : index
    %8 = vector.load %arg5[%c12, %c0_10] : memref<33x128xf32, #tpu.memory_space<vmem>>, vector<1x64xf32>
    %c14 = arith.constant 14 : index
    %c0_11 = arith.constant 0 : index
    %9 = vector.load %arg5[%c14, %c0_11] : memref<33x128xf32, #tpu.memory_space<vmem>>, vector<1x64xf32>
    %c15 = arith.constant 15 : index
    %c0_12 = arith.constant 0 : index
    %10 = vector.load %arg5[%c15, %c0_12] : memref<33x128xf32, #tpu.memory_space<vmem>>, vector<1x64xf32>
    %c17 = arith.constant 17 : index
    %c0_13 = arith.constant 0 : index
    %11 = vector.load %arg5[%c17, %c0_13] : memref<33x128xf32, #tpu.memory_space<vmem>>, vector<1x64xf32>
    %c18 = arith.constant 18 : index
    %c0_14 = arith.constant 0 : index
    %12 = vector.load %arg5[%c18, %c0_14] : memref<33x128xf32, #tpu.memory_space<vmem>>, vector<1x64xf32>
    %c20 = arith.constant 20 : index
    %c0_15 = arith.constant 0 : index
    %13 = vector.load %arg5[%c20, %c0_15] : memref<33x128xf32, #tpu.memory_space<vmem>>, vector<1x64xf32>
    %c21 = arith.constant 21 : index
    %c0_16 = arith.constant 0 : index
    %14 = vector.load %arg5[%c21, %c0_16] : memref<33x128xf32, #tpu.memory_space<vmem>>, vector<1x64xf32>
    %c2 = arith.constant 2 : index
    %c0_17 = arith.constant 0 : index
    %15 = vector.load %arg5[%c2, %c0_17] : memref<33x128xf32, #tpu.memory_space<vmem>>, vector<1x64xf32>
    %c19 = arith.constant 19 : index
    %c0_18 = arith.constant 0 : index
    %16 = vector.load %arg5[%c19, %c0_18] : memref<33x128xf32, #tpu.memory_space<vmem>>, vector<1x64xf32>
    %c5 = arith.constant 5 : index
    %c0_19 = arith.constant 0 : index
    %17 = vector.load %arg5[%c5, %c0_19] : memref<33x128xf32, #tpu.memory_space<vmem>>, vector<1x64xf32>
    %c6 = arith.constant 6 : index
    %c0_20 = arith.constant 0 : index
    %18 = vector.load %arg5[%c6, %c0_20] : memref<33x128xf32, #tpu.memory_space<vmem>>, vector<1x64xf32>
    %c7 = arith.constant 7 : index
    %c0_21 = arith.constant 0 : index
    %19 = vector.load %arg5[%c7, %c0_21] : memref<33x128xf32, #tpu.memory_space<vmem>>, vector<1x64xf32>
    %c8 = arith.constant 8 : index
    %c0_22 = arith.constant 0 : index
    %20 = vector.load %arg5[%c8, %c0_22] : memref<33x128xf32, #tpu.memory_space<vmem>>, vector<1x64xf32>
    %c9 = arith.constant 9 : index
    %c0_23 = arith.constant 0 : index
    %21 = vector.load %arg5[%c9, %c0_23] : memref<33x128xf32, #tpu.memory_space<vmem>>, vector<1x64xf32>
    %c10 = arith.constant 10 : index
    %c0_24 = arith.constant 0 : index
    %22 = vector.load %arg5[%c10, %c0_24] : memref<33x128xf32, #tpu.memory_space<vmem>>, vector<1x64xf32>
    %c13 = arith.constant 13 : index
    %c0_25 = arith.constant 0 : index
    %23 = vector.load %arg5[%c13, %c0_25] : memref<33x128xf32, #tpu.memory_space<vmem>>, vector<1x64xf32>
    %c16 = arith.constant 16 : index
    %c0_26 = arith.constant 0 : index
    %24 = vector.load %arg5[%c16, %c0_26] : memref<33x128xf32, #tpu.memory_space<vmem>>, vector<1x64xf32>
    %c22 = arith.constant 22 : index
    %c0_27 = arith.constant 0 : index
    %25 = vector.load %arg5[%c22, %c0_27] : memref<33x128xf32, #tpu.memory_space<vmem>>, vector<1x64xf32>
    %c26 = arith.constant 26 : index
    %c0_28 = arith.constant 0 : index
    %26 = vector.load %arg5[%c26, %c0_28] : memref<33x128xf32, #tpu.memory_space<vmem>>, vector<7x64xf32>
    %c23 = arith.constant 23 : index
    %c0_29 = arith.constant 0 : index
    %27 = vector.load %arg5[%c23, %c0_29] : memref<33x128xf32, #tpu.memory_space<vmem>>, vector<1x128xf32>
    %c24 = arith.constant 24 : index
    %c0_30 = arith.constant 0 : index
    %28 = vector.load %arg5[%c24, %c0_30] : memref<33x128xf32, #tpu.memory_space<vmem>>, vector<1x128xf32>
    %c25 = arith.constant 25 : index
    %c0_31 = arith.constant 0 : index
    %29 = vector.load %arg5[%c25, %c0_31] : memref<33x128xf32, #tpu.memory_space<vmem>>, vector<1x128xf32>
    %c0_32 = arith.constant 0 : index
    %c0_33 = arith.constant 0 : index
    %30 = vector.load %arg4[%c0_32, %c0_33] : memref<384x128xbf16, #tpu.memory_space<vmem>>, vector<64x128xbf16>
    %c64 = arith.constant 64 : index
    %c0_34 = arith.constant 0 : index
    %31 = vector.load %arg4[%c64, %c0_34] : memref<384x128xbf16, #tpu.memory_space<vmem>>, vector<64x128xbf16>
    %c128 = arith.constant 128 : index
    %c0_35 = arith.constant 0 : index
    %32 = vector.load %arg4[%c128, %c0_35] : memref<384x128xbf16, #tpu.memory_space<vmem>>, vector<64x128xbf16>
    %c192 = arith.constant 192 : index
    %c0_36 = arith.constant 0 : index
    %33 = vector.load %arg4[%c192, %c0_36] : memref<384x128xbf16, #tpu.memory_space<vmem>>, vector<128x64xbf16>
    %c192_37 = arith.constant 192 : index
    %c64_38 = arith.constant 64 : index
    %34 = vector.load %arg4[%c192_37, %c64_38] : memref<384x128xbf16, #tpu.memory_space<vmem>>, vector<128x64xbf16>
    %c320 = arith.constant 320 : index
    %c0_39 = arith.constant 0 : index
    %35 = vector.load %arg4[%c320, %c0_39] : memref<384x128xbf16, #tpu.memory_space<vmem>>, vector<64x64xbf16>
    %c320_40 = arith.constant 320 : index
    %c64_41 = arith.constant 64 : index
    %36 = vector.load %arg4[%c320_40, %c64_41] : memref<384x128xbf16, #tpu.memory_space<vmem>>, vector<64x64xbf16>
    %c0_42 = arith.constant 0 : index
    %c0_43 = arith.constant 0 : index
    %37 = vector.load %arg3[%c0_42, %c0_43] : memref<64x192xbf16, #tpu.memory_space<vmem>>, vector<64x192xbf16>
    %cst = arith.constant dense<0.000000e+00> : vector<16xf32>
    %38 = vector.multi_reduction <add>, %1, %cst [1] : vector<16x64xf32> to vector<16xf32>
    %39 = vector.shape_cast %38 : vector<16xf32> to vector<16x1xf32>
    %cst_44 = arith.constant 6.400000e+01 : f32
    %40 = vector.broadcast %cst_44 : f32 to vector<16x1xf32>
    %41 = arith.divf %39, %40 : vector<16x1xf32>
    %42 = arith.mulf %1, %1 : vector<16x64xf32>
    %cst_45 = arith.constant dense<0.000000e+00> : vector<16xf32>
    %43 = vector.multi_reduction <add>, %42, %cst_45 [1] : vector<16x64xf32> to vector<16xf32>
    %44 = vector.shape_cast %43 : vector<16xf32> to vector<16x1xf32>
    %cst_46 = arith.constant 6.400000e+01 : f32
    %45 = vector.broadcast %cst_46 : f32 to vector<16x1xf32>
    %46 = arith.divf %44, %45 : vector<16x1xf32>
    %47 = arith.mulf %41, %41 : vector<16x1xf32>
    %48 = arith.subf %46, %47 : vector<16x1xf32>
    %cst_47 = arith.constant 0.000000e+00 : f32
    %49 = vector.broadcast %cst_47 : f32 to vector<16x1xf32>
    %50 = arith.maximumf %48, %49 : vector<16x1xf32>
    %51 = vector.broadcast %41 : vector<16x1xf32> to vector<16x64xf32>
    %52 = arith.subf %1, %51 : vector<16x64xf32>
    %cst_48 = arith.constant 9.99999996E-13 : f32
    %53 = vector.broadcast %cst_48 : f32 to vector<16x1xf32>
    %54 = arith.addf %50, %53 : vector<16x1xf32>
    %55 = math.rsqrt %54 : vector<16x1xf32>
    %56 = vector.broadcast %55 : vector<16x1xf32> to vector<16x64xf32>
    %57 = arith.mulf %52, %56 : vector<16x64xf32>
    %58 = vector.broadcast %3 : vector<1x64xf32> to vector<16x64xf32>
    %59 = arith.mulf %57, %58 : vector<16x64xf32>
    %60 = vector.broadcast %4 : vector<1x64xf32> to vector<16x64xf32>
    %61 = arith.addf %59, %60 : vector<16x64xf32>
    %62 = arith.truncf %61 : vector<16x64xf32> to vector<16x64xbf16>
    %cst_49 = arith.constant dense<0.000000e+00> : vector<16x128xf32>
    %63 = tpu.matmul %62, %30, %cst_49 {dimension_numbers = #tpu.dot_dimension_numbers<[1], [0], [0], [1], [0, 0, 1, 1], [], []>} : vector<16x64xbf16>, vector<64x128xbf16>, vector<16x128xf32> -> vector<16x128xf32>
    %64 = vector.broadcast %27 : vector<1x128xf32> to vector<16x128xf32>
    %65 = arith.addf %63, %64 : vector<16x128xf32>
    %66 = arith.negf %65 : vector<16x128xf32>
    %67 = math.exp %66 : vector<16x128xf32>
    %cst_50 = arith.constant 1.000000e+00 : f32
    %68 = vector.broadcast %cst_50 : f32 to vector<16x128xf32>
    %69 = arith.addf %68, %67 : vector<16x128xf32>
    %70 = arith.divf %68, %69 : vector<16x128xf32>
    %71 = arith.mulf %65, %70 : vector<16x128xf32>
    %72 = arith.truncf %71 : vector<16x128xf32> to vector<16x128xbf16>
    %cst_51 = arith.constant dense<0.000000e+00> : vector<16x64xf32>
    %73 = tpu.matmul %72, %33, %cst_51 {dimension_numbers = #tpu.dot_dimension_numbers<[1], [0], [0], [1], [0, 0, 1, 1], [], []>} : vector<16x128xbf16>, vector<128x64xbf16>, vector<16x64xf32> -> vector<16x64xf32>
    %74 = vector.broadcast %15 : vector<1x64xf32> to vector<16x64xf32>
    %75 = arith.addf %73, %74 : vector<16x64xf32>
    %cst_52 = arith.constant 5.000000e-01 : f32
    %76 = vector.broadcast %cst_52 : f32 to vector<16x64xf32>
    %77 = arith.mulf %76, %75 : vector<16x64xf32>
    %78 = arith.addf %1, %77 : vector<16x64xf32>
    %cst_53 = arith.constant dense<0.000000e+00> : vector<16xf32>
    %79 = vector.multi_reduction <add>, %78, %cst_53 [1] : vector<16x64xf32> to vector<16xf32>
    %80 = vector.shape_cast %79 : vector<16xf32> to vector<16x1xf32>
    %cst_54 = arith.constant 6.400000e+01 : f32
    %81 = vector.broadcast %cst_54 : f32 to vector<16x1xf32>
    %82 = arith.divf %80, %81 : vector<16x1xf32>
    %83 = arith.mulf %78, %78 : vector<16x64xf32>
    %cst_55 = arith.constant dense<0.000000e+00> : vector<16xf32>
    %84 = vector.multi_reduction <add>, %83, %cst_55 [1] : vector<16x64xf32> to vector<16xf32>
    %85 = vector.shape_cast %84 : vector<16xf32> to vector<16x1xf32>
    %cst_56 = arith.constant 6.400000e+01 : f32
    %86 = vector.broadcast %cst_56 : f32 to vector<16x1xf32>
    %87 = arith.divf %85, %86 : vector<16x1xf32>
    %88 = arith.mulf %82, %82 : vector<16x1xf32>
    %89 = arith.subf %87, %88 : vector<16x1xf32>
    %cst_57 = arith.constant 0.000000e+00 : f32
    %90 = vector.broadcast %cst_57 : f32 to vector<16x1xf32>
    %91 = arith.maximumf %89, %90 : vector<16x1xf32>
    %92 = vector.broadcast %82 : vector<16x1xf32> to vector<16x64xf32>
    %93 = arith.subf %78, %92 : vector<16x64xf32>
    %cst_58 = arith.constant 9.99999996E-13 : f32
    %94 = vector.broadcast %cst_58 : f32 to vector<16x1xf32>
    %95 = arith.addf %91, %94 : vector<16x1xf32>
    %96 = math.rsqrt %95 : vector<16x1xf32>
    %97 = vector.broadcast %96 : vector<16x1xf32> to vector<16x64xf32>
    %98 = arith.mulf %93, %97 : vector<16x64xf32>
    %99 = vector.broadcast %5 : vector<1x64xf32> to vector<16x64xf32>
    %100 = arith.mulf %98, %99 : vector<16x64xf32>
    %101 = vector.broadcast %6 : vector<1x64xf32> to vector<16x64xf32>
    %102 = arith.addf %100, %101 : vector<16x64xf32>
    %103 = arith.truncf %102 : vector<16x64xf32> to vector<16x64xbf16>
    %cst_59 = arith.constant dense<0.000000e+00> : vector<16x192xf32>
    %104 = tpu.matmul %103, %37, %cst_59 {dimension_numbers = #tpu.dot_dimension_numbers<[1], [0], [0], [1], [0, 0, 1, 1], [], []>} : vector<16x64xbf16>, vector<64x192xbf16>, vector<16x192xf32> -> vector<16x192xf32>
    %105 = vector.extract_strided_slice %104 {offsets = [0, 0], sizes = [16, 64], strides = [1, 1]} : vector<16x192xf32> to vector<16x64xf32>
    %106 = vector.broadcast %17 : vector<1x64xf32> to vector<16x64xf32>
    %107 = arith.addf %105, %106 : vector<16x64xf32>
    %108 = vector.extract_strided_slice %104 {offsets = [0, 64], sizes = [16, 64], strides = [1, 1]} : vector<16x192xf32> to vector<16x64xf32>
    %109 = vector.broadcast %18 : vector<1x64xf32> to vector<16x64xf32>
    %110 = arith.addf %108, %109 : vector<16x64xf32>
    %111 = vector.extract_strided_slice %104 {offsets = [0, 128], sizes = [16, 64], strides = [1, 1]} : vector<16x192xf32> to vector<16x64xf32>
    %112 = vector.broadcast %19 : vector<1x64xf32> to vector<16x64xf32>
    %113 = arith.addf %111, %112 : vector<16x64xf32>
    %114 = vector.extract_strided_slice %107 {offsets = [0, 0], sizes = [16, 16], strides = [1, 1]} : vector<16x64xf32> to vector<16x16xf32>
    %115 = vector.extract_strided_slice %110 {offsets = [0, 0], sizes = [16, 16], strides = [1, 1]} : vector<16x64xf32> to vector<16x16xf32>
    %116 = vector.extract_strided_slice %113 {offsets = [0, 0], sizes = [16, 16], strides = [1, 1]} : vector<16x64xf32> to vector<16x16xf32>
    %117 = vector.extract_strided_slice %2 {offsets = [0, 0], sizes = [16, 16], strides = [1, 1]} : vector<16x64xf32> to vector<16x16xf32>
    %118 = vector.extract_strided_slice %21 {offsets = [0, 0], sizes = [1, 16], strides = [1, 1]} : vector<1x64xf32> to vector<1x16xf32>
    %119 = vector.broadcast %118 : vector<1x16xf32> to vector<16x16xf32>
    %120 = arith.addf %114, %119 : vector<16x16xf32>
    %121 = vector.extract_strided_slice %22 {offsets = [0, 0], sizes = [1, 16], strides = [1, 1]} : vector<1x64xf32> to vector<1x16xf32>
    %122 = vector.broadcast %121 : vector<1x16xf32> to vector<16x16xf32>
    %123 = arith.addf %114, %122 : vector<16x16xf32>
    %124 = tpu.concatenate %120, %123 in 1 : vector<16x16xf32>, vector<16x16xf32> -> vector<16x32xf32>
    %125 = tpu.concatenate %115, %117 in 1 : vector<16x16xf32>, vector<16x16xf32> -> vector<16x32xf32>
    %126 = arith.truncf %124 : vector<16x32xf32> to vector<16x32xbf16>
    %127 = arith.truncf %125 : vector<16x32xf32> to vector<16x32xbf16>
    %cst_60 = arith.constant dense<0.000000e+00> : vector<16x16xf32>
    %128 = tpu.matmul %126, %127, %cst_60 {dimension_numbers = #tpu.dot_dimension_numbers<[1], [1], [0], [0], [0, 0, 1, 0], [], []>} : vector<16x32xbf16>, vector<16x32xbf16>, vector<16x16xf32> -> vector<16x16xf32>
    %cst_61 = arith.constant 2.500000e-01 : f32
    %129 = vector.broadcast %cst_61 : f32 to vector<16x16xf32>
    %130 = arith.mulf %128, %129 : vector<16x16xf32>
    %cst_62 = arith.constant dense<0xFF800000> : vector<16xf32>
    %131 = vector.multi_reduction <maximumf>, %130, %cst_62 [1] : vector<16x16xf32> to vector<16xf32>
    %132 = vector.shape_cast %131 : vector<16xf32> to vector<16x1xf32>
    %133 = vector.broadcast %132 : vector<16x1xf32> to vector<16x16xf32>
    %134 = arith.subf %130, %133 : vector<16x16xf32>
    %135 = math.exp %134 : vector<16x16xf32>
    %cst_63 = arith.constant dense<0.000000e+00> : vector<16xf32>
    %136 = vector.multi_reduction <add>, %135, %cst_63 [1] : vector<16x16xf32> to vector<16xf32>
    %137 = vector.shape_cast %136 : vector<16xf32> to vector<16x1xf32>
    %138 = tpu.reciprocal %137 {approx = true} : vector<16x1xf32> -> vector<16x1xf32>
    %139 = vector.broadcast %138 : vector<16x1xf32> to vector<16x16xf32>
    %140 = arith.mulf %135, %139 : vector<16x16xf32>
    %141 = arith.truncf %140 : vector<16x16xf32> to vector<16x16xbf16>
    %142 = arith.truncf %116 : vector<16x16xf32> to vector<16x16xbf16>
    %cst_64 = arith.constant dense<0.000000e+00> : vector<16x16xf32>
    %143 = tpu.matmul %141, %142, %cst_64 {dimension_numbers = #tpu.dot_dimension_numbers<[1], [0], [0], [1], [0, 0, 1, 1], [], []>} : vector<16x16xbf16>, vector<16x16xbf16>, vector<16x16xf32> -> vector<16x16xf32>
    %144 = vector.extract_strided_slice %107 {offsets = [0, 16], sizes = [16, 16], strides = [1, 1]} : vector<16x64xf32> to vector<16x16xf32>
    %145 = vector.extract_strided_slice %110 {offsets = [0, 16], sizes = [16, 16], strides = [1, 1]} : vector<16x64xf32> to vector<16x16xf32>
    %146 = vector.extract_strided_slice %113 {offsets = [0, 16], sizes = [16, 16], strides = [1, 1]} : vector<16x64xf32> to vector<16x16xf32>
    %147 = vector.extract_strided_slice %2 {offsets = [0, 16], sizes = [16, 16], strides = [1, 1]} : vector<16x64xf32> to vector<16x16xf32>
    %148 = vector.extract_strided_slice %21 {offsets = [0, 16], sizes = [1, 16], strides = [1, 1]} : vector<1x64xf32> to vector<1x16xf32>
    %149 = vector.broadcast %148 : vector<1x16xf32> to vector<16x16xf32>
    %150 = arith.addf %144, %149 : vector<16x16xf32>
    %151 = vector.extract_strided_slice %22 {offsets = [0, 16], sizes = [1, 16], strides = [1, 1]} : vector<1x64xf32> to vector<1x16xf32>
    %152 = vector.broadcast %151 : vector<1x16xf32> to vector<16x16xf32>
    %153 = arith.addf %144, %152 : vector<16x16xf32>
    %154 = tpu.concatenate %150, %153 in 1 : vector<16x16xf32>, vector<16x16xf32> -> vector<16x32xf32>
    %155 = tpu.concatenate %145, %147 in 1 : vector<16x16xf32>, vector<16x16xf32> -> vector<16x32xf32>
    %156 = arith.truncf %154 : vector<16x32xf32> to vector<16x32xbf16>
    %157 = arith.truncf %155 : vector<16x32xf32> to vector<16x32xbf16>
    %cst_65 = arith.constant dense<0.000000e+00> : vector<16x16xf32>
    %158 = tpu.matmul %156, %157, %cst_65 {dimension_numbers = #tpu.dot_dimension_numbers<[1], [1], [0], [0], [0, 0, 1, 0], [], []>} : vector<16x32xbf16>, vector<16x32xbf16>, vector<16x16xf32> -> vector<16x16xf32>
    %cst_66 = arith.constant 2.500000e-01 : f32
    %159 = vector.broadcast %cst_66 : f32 to vector<16x16xf32>
    %160 = arith.mulf %158, %159 : vector<16x16xf32>
    %cst_67 = arith.constant dense<0xFF800000> : vector<16xf32>
    %161 = vector.multi_reduction <maximumf>, %160, %cst_67 [1] : vector<16x16xf32> to vector<16xf32>
    %162 = vector.shape_cast %161 : vector<16xf32> to vector<16x1xf32>
    %163 = vector.broadcast %162 : vector<16x1xf32> to vector<16x16xf32>
    %164 = arith.subf %160, %163 : vector<16x16xf32>
    %165 = math.exp %164 : vector<16x16xf32>
    %cst_68 = arith.constant dense<0.000000e+00> : vector<16xf32>
    %166 = vector.multi_reduction <add>, %165, %cst_68 [1] : vector<16x16xf32> to vector<16xf32>
    %167 = vector.shape_cast %166 : vector<16xf32> to vector<16x1xf32>
    %168 = tpu.reciprocal %167 {approx = true} : vector<16x1xf32> -> vector<16x1xf32>
    %169 = vector.broadcast %168 : vector<16x1xf32> to vector<16x16xf32>
    %170 = arith.mulf %165, %169 : vector<16x16xf32>
    %171 = arith.truncf %170 : vector<16x16xf32> to vector<16x16xbf16>
    %172 = arith.truncf %146 : vector<16x16xf32> to vector<16x16xbf16>
    %cst_69 = arith.constant dense<0.000000e+00> : vector<16x16xf32>
    %173 = tpu.matmul %171, %172, %cst_69 {dimension_numbers = #tpu.dot_dimension_numbers<[1], [0], [0], [1], [0, 0, 1, 1], [], []>} : vector<16x16xbf16>, vector<16x16xbf16>, vector<16x16xf32> -> vector<16x16xf32>
    %174 = vector.extract_strided_slice %107 {offsets = [0, 32], sizes = [16, 16], strides = [1, 1]} : vector<16x64xf32> to vector<16x16xf32>
    %175 = vector.extract_strided_slice %110 {offsets = [0, 32], sizes = [16, 16], strides = [1, 1]} : vector<16x64xf32> to vector<16x16xf32>
    %176 = vector.extract_strided_slice %113 {offsets = [0, 32], sizes = [16, 16], strides = [1, 1]} : vector<16x64xf32> to vector<16x16xf32>
    %177 = vector.extract_strided_slice %2 {offsets = [0, 32], sizes = [16, 16], strides = [1, 1]} : vector<16x64xf32> to vector<16x16xf32>
    %178 = vector.extract_strided_slice %21 {offsets = [0, 32], sizes = [1, 16], strides = [1, 1]} : vector<1x64xf32> to vector<1x16xf32>
    %179 = vector.broadcast %178 : vector<1x16xf32> to vector<16x16xf32>
    %180 = arith.addf %174, %179 : vector<16x16xf32>
    %181 = vector.extract_strided_slice %22 {offsets = [0, 32], sizes = [1, 16], strides = [1, 1]} : vector<1x64xf32> to vector<1x16xf32>
    %182 = vector.broadcast %181 : vector<1x16xf32> to vector<16x16xf32>
    %183 = arith.addf %174, %182 : vector<16x16xf32>
    %184 = tpu.concatenate %180, %183 in 1 : vector<16x16xf32>, vector<16x16xf32> -> vector<16x32xf32>
    %185 = tpu.concatenate %175, %177 in 1 : vector<16x16xf32>, vector<16x16xf32> -> vector<16x32xf32>
    %186 = arith.truncf %184 : vector<16x32xf32> to vector<16x32xbf16>
    %187 = arith.truncf %185 : vector<16x32xf32> to vector<16x32xbf16>
    %cst_70 = arith.constant dense<0.000000e+00> : vector<16x16xf32>
    %188 = tpu.matmul %186, %187, %cst_70 {dimension_numbers = #tpu.dot_dimension_numbers<[1], [1], [0], [0], [0, 0, 1, 0], [], []>} : vector<16x32xbf16>, vector<16x32xbf16>, vector<16x16xf32> -> vector<16x16xf32>
    %cst_71 = arith.constant 2.500000e-01 : f32
    %189 = vector.broadcast %cst_71 : f32 to vector<16x16xf32>
    %190 = arith.mulf %188, %189 : vector<16x16xf32>
    %cst_72 = arith.constant dense<0xFF800000> : vector<16xf32>
    %191 = vector.multi_reduction <maximumf>, %190, %cst_72 [1] : vector<16x16xf32> to vector<16xf32>
    %192 = vector.shape_cast %191 : vector<16xf32> to vector<16x1xf32>
    %193 = vector.broadcast %192 : vector<16x1xf32> to vector<16x16xf32>
    %194 = arith.subf %190, %193 : vector<16x16xf32>
    %195 = math.exp %194 : vector<16x16xf32>
    %cst_73 = arith.constant dense<0.000000e+00> : vector<16xf32>
    %196 = vector.multi_reduction <add>, %195, %cst_73 [1] : vector<16x16xf32> to vector<16xf32>
    %197 = vector.shape_cast %196 : vector<16xf32> to vector<16x1xf32>
    %198 = tpu.reciprocal %197 {approx = true} : vector<16x1xf32> -> vector<16x1xf32>
    %199 = vector.broadcast %198 : vector<16x1xf32> to vector<16x16xf32>
    %200 = arith.mulf %195, %199 : vector<16x16xf32>
    %201 = arith.truncf %200 : vector<16x16xf32> to vector<16x16xbf16>
    %202 = arith.truncf %176 : vector<16x16xf32> to vector<16x16xbf16>
    %cst_74 = arith.constant dense<0.000000e+00> : vector<16x16xf32>
    %203 = tpu.matmul %201, %202, %cst_74 {dimension_numbers = #tpu.dot_dimension_numbers<[1], [0], [0], [1], [0, 0, 1, 1], [], []>} : vector<16x16xbf16>, vector<16x16xbf16>, vector<16x16xf32> -> vector<16x16xf32>
    %204 = vector.extract_strided_slice %107 {offsets = [0, 48], sizes = [16, 16], strides = [1, 1]} : vector<16x64xf32> to vector<16x16xf32>
    %205 = vector.extract_strided_slice %110 {offsets = [0, 48], sizes = [16, 16], strides = [1, 1]} : vector<16x64xf32> to vector<16x16xf32>
    %206 = vector.extract_strided_slice %113 {offsets = [0, 48], sizes = [16, 16], strides = [1, 1]} : vector<16x64xf32> to vector<16x16xf32>
    %207 = vector.extract_strided_slice %2 {offsets = [0, 48], sizes = [16, 16], strides = [1, 1]} : vector<16x64xf32> to vector<16x16xf32>
    %208 = vector.extract_strided_slice %21 {offsets = [0, 48], sizes = [1, 16], strides = [1, 1]} : vector<1x64xf32> to vector<1x16xf32>
    %209 = vector.broadcast %208 : vector<1x16xf32> to vector<16x16xf32>
    %210 = arith.addf %204, %209 : vector<16x16xf32>
    %211 = vector.extract_strided_slice %22 {offsets = [0, 48], sizes = [1, 16], strides = [1, 1]} : vector<1x64xf32> to vector<1x16xf32>
    %212 = vector.broadcast %211 : vector<1x16xf32> to vector<16x16xf32>
    %213 = arith.addf %204, %212 : vector<16x16xf32>
    %214 = tpu.concatenate %210, %213 in 1 : vector<16x16xf32>, vector<16x16xf32> -> vector<16x32xf32>
    %215 = tpu.concatenate %205, %207 in 1 : vector<16x16xf32>, vector<16x16xf32> -> vector<16x32xf32>
    %216 = arith.truncf %214 : vector<16x32xf32> to vector<16x32xbf16>
    %217 = arith.truncf %215 : vector<16x32xf32> to vector<16x32xbf16>
    %cst_75 = arith.constant dense<0.000000e+00> : vector<16x16xf32>
    %218 = tpu.matmul %216, %217, %cst_75 {dimension_numbers = #tpu.dot_dimension_numbers<[1], [1], [0], [0], [0, 0, 1, 0], [], []>} : vector<16x32xbf16>, vector<16x32xbf16>, vector<16x16xf32> -> vector<16x16xf32>
    %cst_76 = arith.constant 2.500000e-01 : f32
    %219 = vector.broadcast %cst_76 : f32 to vector<16x16xf32>
    %220 = arith.mulf %218, %219 : vector<16x16xf32>
    %cst_77 = arith.constant dense<0xFF800000> : vector<16xf32>
    %221 = vector.multi_reduction <maximumf>, %220, %cst_77 [1] : vector<16x16xf32> to vector<16xf32>
    %222 = vector.shape_cast %221 : vector<16xf32> to vector<16x1xf32>
    %223 = vector.broadcast %222 : vector<16x1xf32> to vector<16x16xf32>
    %224 = arith.subf %220, %223 : vector<16x16xf32>
    %225 = math.exp %224 : vector<16x16xf32>
    %cst_78 = arith.constant dense<0.000000e+00> : vector<16xf32>
    %226 = vector.multi_reduction <add>, %225, %cst_78 [1] : vector<16x16xf32> to vector<16xf32>
    %227 = vector.shape_cast %226 : vector<16xf32> to vector<16x1xf32>
    %228 = tpu.reciprocal %227 {approx = true} : vector<16x1xf32> -> vector<16x1xf32>
    %229 = vector.broadcast %228 : vector<16x1xf32> to vector<16x16xf32>
    %230 = arith.mulf %225, %229 : vector<16x16xf32>
    %231 = arith.truncf %230 : vector<16x16xf32> to vector<16x16xbf16>
    %232 = arith.truncf %206 : vector<16x16xf32> to vector<16x16xbf16>
    %cst_79 = arith.constant dense<0.000000e+00> : vector<16x16xf32>
    %233 = tpu.matmul %231, %232, %cst_79 {dimension_numbers = #tpu.dot_dimension_numbers<[1], [0], [0], [1], [0, 0, 1, 1], [], []>} : vector<16x16xbf16>, vector<16x16xbf16>, vector<16x16xf32> -> vector<16x16xf32>
    %234 = tpu.concatenate %143, %173, %203, %233 in 1 : vector<16x16xf32>, vector<16x16xf32>, vector<16x16xf32>, vector<16x16xf32> -> vector<16x64xf32>
    %235 = arith.truncf %234 : vector<16x64xf32> to vector<16x64xbf16>
    %cst_80 = arith.constant dense<0.000000e+00> : vector<16x64xf32>
    %236 = tpu.matmul %235, %35, %cst_80 {dimension_numbers = #tpu.dot_dimension_numbers<[1], [0], [0], [1], [0, 0, 1, 1], [], []>} : vector<16x64xbf16>, vector<64x64xbf16>, vector<16x64xf32> -> vector<16x64xf32>
    %237 = arith.addf %78, %236 : vector<16x64xf32>
    %238 = vector.broadcast %20 : vector<1x64xf32> to vector<16x64xf32>
    %239 = arith.addf %237, %238 : vector<16x64xf32>
    %cst_81 = arith.constant dense<0.000000e+00> : vector<16xf32>
    %240 = vector.multi_reduction <add>, %239, %cst_81 [1] : vector<16x64xf32> to vector<16xf32>
    %241 = vector.shape_cast %240 : vector<16xf32> to vector<16x1xf32>
    %cst_82 = arith.constant 6.400000e+01 : f32
    %242 = vector.broadcast %cst_82 : f32 to vector<16x1xf32>
    %243 = arith.divf %241, %242 : vector<16x1xf32>
    %244 = arith.mulf %239, %239 : vector<16x64xf32>
    %cst_83 = arith.constant dense<0.000000e+00> : vector<16xf32>
    %245 = vector.multi_reduction <add>, %244, %cst_83 [1] : vector<16x64xf32> to vector<16xf32>
    %246 = vector.shape_cast %245 : vector<16xf32> to vector<16x1xf32>
    %cst_84 = arith.constant 6.400000e+01 : f32
    %247 = vector.broadcast %cst_84 : f32 to vector<16x1xf32>
    %248 = arith.divf %246, %247 : vector<16x1xf32>
    %249 = arith.mulf %243, %243 : vector<16x1xf32>
    %250 = arith.subf %248, %249 : vector<16x1xf32>
    %cst_85 = arith.constant 0.000000e+00 : f32
    %251 = vector.broadcast %cst_85 : f32 to vector<16x1xf32>
    %252 = arith.maximumf %250, %251 : vector<16x1xf32>
    %253 = vector.broadcast %243 : vector<16x1xf32> to vector<16x64xf32>
    %254 = arith.subf %239, %253 : vector<16x64xf32>
    %cst_86 = arith.constant 9.99999996E-13 : f32
    %255 = vector.broadcast %cst_86 : f32 to vector<16x1xf32>
    %256 = arith.addf %252, %255 : vector<16x1xf32>
    %257 = math.rsqrt %256 : vector<16x1xf32>
    %258 = vector.broadcast %257 : vector<16x1xf32> to vector<16x64xf32>
    %259 = arith.mulf %254, %258 : vector<16x64xf32>
    %260 = vector.broadcast %7 : vector<1x64xf32> to vector<16x64xf32>
    %261 = arith.mulf %259, %260 : vector<16x64xf32>
    %262 = vector.broadcast %8 : vector<1x64xf32> to vector<16x64xf32>
    %263 = arith.addf %261, %262 : vector<16x64xf32>
    %264 = arith.truncf %263 : vector<16x64xf32> to vector<16x64xbf16>
    %cst_87 = arith.constant dense<0.000000e+00> : vector<16x128xf32>
    %265 = tpu.matmul %264, %31, %cst_87 {dimension_numbers = #tpu.dot_dimension_numbers<[1], [0], [0], [1], [0, 0, 1, 1], [], []>} : vector<16x64xbf16>, vector<64x128xbf16>, vector<16x128xf32> -> vector<16x128xf32>
    %266 = vector.broadcast %28 : vector<1x128xf32> to vector<16x128xf32>
    %267 = arith.addf %265, %266 : vector<16x128xf32>
    %268 = vector.extract_strided_slice %267 {offsets = [0, 0], sizes = [16, 64], strides = [1, 1]} : vector<16x128xf32> to vector<16x64xf32>
    %269 = vector.extract_strided_slice %267 {offsets = [0, 64], sizes = [16, 64], strides = [1, 1]} : vector<16x128xf32> to vector<16x64xf32>
    %270 = arith.negf %269 : vector<16x64xf32>
    %271 = math.exp %270 : vector<16x64xf32>
    %cst_88 = arith.constant 1.000000e+00 : f32
    %272 = vector.broadcast %cst_88 : f32 to vector<16x64xf32>
    %273 = arith.addf %272, %271 : vector<16x64xf32>
    %274 = arith.divf %272, %273 : vector<16x64xf32>
    %275 = arith.mulf %268, %274 : vector<16x64xf32>
    %276 = tpu.iota {dimensions = array<i32: 0>} : vector<16x1xi32>
    %c16_i32 = arith.constant 16 : i32
    %c0_i32 = arith.constant 0 : i32
    %277 = arith.cmpi eq, %c16_i32, %c0_i32 : i32
    %c1_i32 = arith.constant 1 : i32
    %278 = arith.select %277, %c1_i32, %c16_i32 : i32
    %279 = vector.broadcast %278 : i32 to vector<16x1xi32>
    %280 = arith.remsi %276, %279 : vector<16x1xi32>
    %c0_i32_89 = arith.constant 0 : i32
    %281 = vector.broadcast %c0_i32_89 : i32 to vector<16x1xi32>
    %282 = arith.cmpi ne, %280, %281 : vector<16x1xi32>
    %c0_i32_90 = arith.constant 0 : i32
    %283 = vector.broadcast %c0_i32_90 : i32 to vector<16x1xi32>
    %284 = arith.cmpi slt, %280, %283 : vector<16x1xi32>
    %c0_i32_91 = arith.constant 0 : i32
    %285 = arith.cmpi slt, %278, %c0_i32_91 : i32
    %286 = vector.broadcast %285 : i1 to vector<16x1xi1>
    %287 = vector.broadcast %286 : vector<16x1xi1> to vector<16x1xi1>
    %288 = arith.xori %284, %287 : vector<16x1xi1>
    %289 = arith.andi %288, %282 : vector<16x1xi1>
    %290 = vector.broadcast %278 : i32 to vector<16x1xi32>
    %291 = arith.addi %280, %290 : vector<16x1xi32>
    %292 = arith.select %289, %291, %280 : vector<16x1xi1>, vector<16x1xi32>
    %cst_92 = arith.constant 0.000000e+00 : f32
    %293 = vector.broadcast %cst_92 : f32 to vector<16x64xf32>
    %c3_i32 = arith.constant 3 : i32
    %294 = tpu.dynamic_rotate %275 by %c3_i32 dim 0 : vector<16x64xf32>, i32 -> vector<16x64xf32>
    %c-3_i32 = arith.constant -3 : i32
    %295 = vector.broadcast %c-3_i32 : i32 to vector<16x1xi32>
    %296 = arith.addi %292, %295 : vector<16x1xi32>
    %c0_i32_93 = arith.constant 0 : i32
    %297 = vector.broadcast %c0_i32_93 : i32 to vector<16x1xi32>
    %298 = arith.cmpi sge, %296, %297 : vector<16x1xi32>
    %c-3_i32_94 = arith.constant -3 : i32
    %299 = vector.broadcast %c-3_i32_94 : i32 to vector<16x1xi32>
    %300 = arith.addi %292, %299 : vector<16x1xi32>
    %c16_i32_95 = arith.constant 16 : i32
    %301 = vector.broadcast %c16_i32_95 : i32 to vector<16x1xi32>
    %302 = arith.cmpi slt, %300, %301 : vector<16x1xi32>
    %303 = arith.andi %298, %302 : vector<16x1xi1>
    %304 = arith.extui %303 : vector<16x1xi1> to vector<16x1xi32>
    %305 = arith.sitofp %304 : vector<16x1xi32> to vector<16x1xf32>
    %306 = vector.broadcast %305 : vector<16x1xf32> to vector<16x64xf32>
    %307 = arith.mulf %294, %306 : vector<16x64xf32>
    %308 = vector.extract_strided_slice %26 {offsets = [0, 0], sizes = [1, 64], strides = [1, 1]} : vector<7x64xf32> to vector<1x64xf32>
    %309 = vector.broadcast %308 : vector<1x64xf32> to vector<16x64xf32>
    %310 = arith.mulf %307, %309 : vector<16x64xf32>
    %311 = arith.addf %293, %310 : vector<16x64xf32>
    %c2_i32 = arith.constant 2 : i32
    %312 = tpu.dynamic_rotate %275 by %c2_i32 dim 0 : vector<16x64xf32>, i32 -> vector<16x64xf32>
    %c-2_i32 = arith.constant -2 : i32
    %313 = vector.broadcast %c-2_i32 : i32 to vector<16x1xi32>
    %314 = arith.addi %292, %313 : vector<16x1xi32>
    %c0_i32_96 = arith.constant 0 : i32
    %315 = vector.broadcast %c0_i32_96 : i32 to vector<16x1xi32>
    %316 = arith.cmpi sge, %314, %315 : vector<16x1xi32>
    %c-2_i32_97 = arith.constant -2 : i32
    %317 = vector.broadcast %c-2_i32_97 : i32 to vector<16x1xi32>
    %318 = arith.addi %292, %317 : vector<16x1xi32>
    %c16_i32_98 = arith.constant 16 : i32
    %319 = vector.broadcast %c16_i32_98 : i32 to vector<16x1xi32>
    %320 = arith.cmpi slt, %318, %319 : vector<16x1xi32>
    %321 = arith.andi %316, %320 : vector<16x1xi1>
    %322 = arith.extui %321 : vector<16x1xi1> to vector<16x1xi32>
    %323 = arith.sitofp %322 : vector<16x1xi32> to vector<16x1xf32>
    %324 = vector.broadcast %323 : vector<16x1xf32> to vector<16x64xf32>
    %325 = arith.mulf %312, %324 : vector<16x64xf32>
    %326 = vector.extract_strided_slice %26 {offsets = [1, 0], sizes = [1, 64], strides = [1, 1]} : vector<7x64xf32> to vector<1x64xf32>
    %327 = vector.broadcast %326 : vector<1x64xf32> to vector<16x64xf32>
    %328 = arith.mulf %325, %327 : vector<16x64xf32>
    %329 = arith.addf %311, %328 : vector<16x64xf32>
    %c1_i32_99 = arith.constant 1 : i32
    %330 = tpu.dynamic_rotate %275 by %c1_i32_99 dim 0 : vector<16x64xf32>, i32 -> vector<16x64xf32>
    %c-1_i32 = arith.constant -1 : i32
    %331 = vector.broadcast %c-1_i32 : i32 to vector<16x1xi32>
    %332 = arith.addi %292, %331 : vector<16x1xi32>
    %c0_i32_100 = arith.constant 0 : i32
    %333 = vector.broadcast %c0_i32_100 : i32 to vector<16x1xi32>
    %334 = arith.cmpi sge, %332, %333 : vector<16x1xi32>
    %c-1_i32_101 = arith.constant -1 : i32
    %335 = vector.broadcast %c-1_i32_101 : i32 to vector<16x1xi32>
    %336 = arith.addi %292, %335 : vector<16x1xi32>
    %c16_i32_102 = arith.constant 16 : i32
    %337 = vector.broadcast %c16_i32_102 : i32 to vector<16x1xi32>
    %338 = arith.cmpi slt, %336, %337 : vector<16x1xi32>
    %339 = arith.andi %334, %338 : vector<16x1xi1>
    %340 = arith.extui %339 : vector<16x1xi1> to vector<16x1xi32>
    %341 = arith.sitofp %340 : vector<16x1xi32> to vector<16x1xf32>
    %342 = vector.broadcast %341 : vector<16x1xf32> to vector<16x64xf32>
    %343 = arith.mulf %330, %342 : vector<16x64xf32>
    %344 = vector.extract_strided_slice %26 {offsets = [2, 0], sizes = [1, 64], strides = [1, 1]} : vector<7x64xf32> to vector<1x64xf32>
    %345 = vector.broadcast %344 : vector<1x64xf32> to vector<16x64xf32>
    %346 = arith.mulf %343, %345 : vector<16x64xf32>
    %347 = arith.addf %329, %346 : vector<16x64xf32>
    %348 = vector.extract_strided_slice %26 {offsets = [3, 0], sizes = [1, 64], strides = [1, 1]} : vector<7x64xf32> to vector<1x64xf32>
    %349 = vector.broadcast %348 : vector<1x64xf32> to vector<16x64xf32>
    %350 = arith.mulf %275, %349 : vector<16x64xf32>
    %351 = arith.addf %347, %350 : vector<16x64xf32>
    %c15_i32 = arith.constant 15 : i32
    %352 = tpu.dynamic_rotate %275 by %c15_i32 dim 0 : vector<16x64xf32>, i32 -> vector<16x64xf32>
    %c1_i32_103 = arith.constant 1 : i32
    %353 = vector.broadcast %c1_i32_103 : i32 to vector<16x1xi32>
    %354 = arith.addi %292, %353 : vector<16x1xi32>
    %c0_i32_104 = arith.constant 0 : i32
    %355 = vector.broadcast %c0_i32_104 : i32 to vector<16x1xi32>
    %356 = arith.cmpi sge, %354, %355 : vector<16x1xi32>
    %c1_i32_105 = arith.constant 1 : i32
    %357 = vector.broadcast %c1_i32_105 : i32 to vector<16x1xi32>
    %358 = arith.addi %292, %357 : vector<16x1xi32>
    %c16_i32_106 = arith.constant 16 : i32
    %359 = vector.broadcast %c16_i32_106 : i32 to vector<16x1xi32>
    %360 = arith.cmpi slt, %358, %359 : vector<16x1xi32>
    %361 = arith.andi %356, %360 : vector<16x1xi1>
    %362 = arith.extui %361 : vector<16x1xi1> to vector<16x1xi32>
    %363 = arith.sitofp %362 : vector<16x1xi32> to vector<16x1xf32>
    %364 = vector.broadcast %363 : vector<16x1xf32> to vector<16x64xf32>
    %365 = arith.mulf %352, %364 : vector<16x64xf32>
    %366 = vector.extract_strided_slice %26 {offsets = [4, 0], sizes = [1, 64], strides = [1, 1]} : vector<7x64xf32> to vector<1x64xf32>
    %367 = vector.broadcast %366 : vector<1x64xf32> to vector<16x64xf32>
    %368 = arith.mulf %365, %367 : vector<16x64xf32>
    %369 = arith.addf %351, %368 : vector<16x64xf32>
    %c14_i32 = arith.constant 14 : i32
    %370 = tpu.dynamic_rotate %275 by %c14_i32 dim 0 : vector<16x64xf32>, i32 -> vector<16x64xf32>
    %c2_i32_107 = arith.constant 2 : i32
    %371 = vector.broadcast %c2_i32_107 : i32 to vector<16x1xi32>
    %372 = arith.addi %292, %371 : vector<16x1xi32>
    %c0_i32_108 = arith.constant 0 : i32
    %373 = vector.broadcast %c0_i32_108 : i32 to vector<16x1xi32>
    %374 = arith.cmpi sge, %372, %373 : vector<16x1xi32>
    %c2_i32_109 = arith.constant 2 : i32
    %375 = vector.broadcast %c2_i32_109 : i32 to vector<16x1xi32>
    %376 = arith.addi %292, %375 : vector<16x1xi32>
    %c16_i32_110 = arith.constant 16 : i32
    %377 = vector.broadcast %c16_i32_110 : i32 to vector<16x1xi32>
    %378 = arith.cmpi slt, %376, %377 : vector<16x1xi32>
    %379 = arith.andi %374, %378 : vector<16x1xi1>
    %380 = arith.extui %379 : vector<16x1xi1> to vector<16x1xi32>
    %381 = arith.sitofp %380 : vector<16x1xi32> to vector<16x1xf32>
    %382 = vector.broadcast %381 : vector<16x1xf32> to vector<16x64xf32>
    %383 = arith.mulf %370, %382 : vector<16x64xf32>
    %384 = vector.extract_strided_slice %26 {offsets = [5, 0], sizes = [1, 64], strides = [1, 1]} : vector<7x64xf32> to vector<1x64xf32>
    %385 = vector.broadcast %384 : vector<1x64xf32> to vector<16x64xf32>
    %386 = arith.mulf %383, %385 : vector<16x64xf32>
    %387 = arith.addf %369, %386 : vector<16x64xf32>
    %c13_i32 = arith.constant 13 : i32
    %388 = tpu.dynamic_rotate %275 by %c13_i32 dim 0 : vector<16x64xf32>, i32 -> vector<16x64xf32>
    %c3_i32_111 = arith.constant 3 : i32
    %389 = vector.broadcast %c3_i32_111 : i32 to vector<16x1xi32>
    %390 = arith.addi %292, %389 : vector<16x1xi32>
    %c0_i32_112 = arith.constant 0 : i32
    %391 = vector.broadcast %c0_i32_112 : i32 to vector<16x1xi32>
    %392 = arith.cmpi sge, %390, %391 : vector<16x1xi32>
    %c3_i32_113 = arith.constant 3 : i32
    %393 = vector.broadcast %c3_i32_113 : i32 to vector<16x1xi32>
    %394 = arith.addi %292, %393 : vector<16x1xi32>
    %c16_i32_114 = arith.constant 16 : i32
    %395 = vector.broadcast %c16_i32_114 : i32 to vector<16x1xi32>
    %396 = arith.cmpi slt, %394, %395 : vector<16x1xi32>
    %397 = arith.andi %392, %396 : vector<16x1xi1>
    %398 = arith.extui %397 : vector<16x1xi1> to vector<16x1xi32>
    %399 = arith.sitofp %398 : vector<16x1xi32> to vector<16x1xf32>
    %400 = vector.broadcast %399 : vector<16x1xf32> to vector<16x64xf32>
    %401 = arith.mulf %388, %400 : vector<16x64xf32>
    %402 = vector.extract_strided_slice %26 {offsets = [6, 0], sizes = [1, 64], strides = [1, 1]} : vector<7x64xf32> to vector<1x64xf32>
    %403 = vector.broadcast %402 : vector<1x64xf32> to vector<16x64xf32>
    %404 = arith.mulf %401, %403 : vector<16x64xf32>
    %405 = arith.addf %387, %404 : vector<16x64xf32>
    %406 = vector.broadcast %23 : vector<1x64xf32> to vector<16x64xf32>
    %407 = arith.addf %405, %406 : vector<16x64xf32>
    %cst_115 = arith.constant dense<0.000000e+00> : vector<16xf32>
    %408 = vector.multi_reduction <add>, %407, %cst_115 [1] : vector<16x64xf32> to vector<16xf32>
    %409 = vector.shape_cast %408 : vector<16xf32> to vector<16x1xf32>
    %cst_116 = arith.constant 6.400000e+01 : f32
    %410 = vector.broadcast %cst_116 : f32 to vector<16x1xf32>
    %411 = arith.divf %409, %410 : vector<16x1xf32>
    %412 = arith.mulf %407, %407 : vector<16x64xf32>
    %cst_117 = arith.constant dense<0.000000e+00> : vector<16xf32>
    %413 = vector.multi_reduction <add>, %412, %cst_117 [1] : vector<16x64xf32> to vector<16xf32>
    %414 = vector.shape_cast %413 : vector<16xf32> to vector<16x1xf32>
    %cst_118 = arith.constant 6.400000e+01 : f32
    %415 = vector.broadcast %cst_118 : f32 to vector<16x1xf32>
    %416 = arith.divf %414, %415 : vector<16x1xf32>
    %417 = arith.mulf %411, %411 : vector<16x1xf32>
    %418 = arith.subf %416, %417 : vector<16x1xf32>
    %cst_119 = arith.constant 0.000000e+00 : f32
    %419 = vector.broadcast %cst_119 : f32 to vector<16x1xf32>
    %420 = arith.maximumf %418, %419 : vector<16x1xf32>
    %421 = vector.broadcast %411 : vector<16x1xf32> to vector<16x64xf32>
    %422 = arith.subf %407, %421 : vector<16x64xf32>
    %cst_120 = arith.constant 9.99999974E-6 : f32
    %423 = vector.broadcast %cst_120 : f32 to vector<16x1xf32>
    %424 = arith.addf %420, %423 : vector<16x1xf32>
    %425 = math.rsqrt %424 : vector<16x1xf32>
    %426 = vector.broadcast %425 : vector<16x1xf32> to vector<16x64xf32>
    %427 = arith.mulf %422, %426 : vector<16x64xf32>
    %428 = vector.broadcast %9 : vector<1x64xf32> to vector<16x64xf32>
    %429 = arith.mulf %427, %428 : vector<16x64xf32>
    %430 = vector.broadcast %10 : vector<1x64xf32> to vector<16x64xf32>
    %431 = arith.addf %429, %430 : vector<16x64xf32>
    %432 = arith.negf %431 : vector<16x64xf32>
    %433 = math.exp %432 : vector<16x64xf32>
    %cst_121 = arith.constant 1.000000e+00 : f32
    %434 = vector.broadcast %cst_121 : f32 to vector<16x64xf32>
    %435 = arith.addf %434, %433 : vector<16x64xf32>
    %436 = arith.divf %434, %435 : vector<16x64xf32>
    %437 = arith.mulf %431, %436 : vector<16x64xf32>
    %438 = arith.truncf %437 : vector<16x64xf32> to vector<16x64xbf16>
    %cst_122 = arith.constant dense<0.000000e+00> : vector<16x64xf32>
    %439 = tpu.matmul %438, %36, %cst_122 {dimension_numbers = #tpu.dot_dimension_numbers<[1], [0], [0], [1], [0, 0, 1, 1], [], []>} : vector<16x64xbf16>, vector<64x64xbf16>, vector<16x64xf32> -> vector<16x64xf32>
    %440 = vector.broadcast %24 : vector<1x64xf32> to vector<16x64xf32>
    %441 = arith.addf %439, %440 : vector<16x64xf32>
    %442 = arith.addf %239, %441 : vector<16x64xf32>
    %cst_123 = arith.constant dense<0.000000e+00> : vector<16xf32>
    %443 = vector.multi_reduction <add>, %442, %cst_123 [1] : vector<16x64xf32> to vector<16xf32>
    %444 = vector.shape_cast %443 : vector<16xf32> to vector<16x1xf32>
    %cst_124 = arith.constant 6.400000e+01 : f32
    %445 = vector.broadcast %cst_124 : f32 to vector<16x1xf32>
    %446 = arith.divf %444, %445 : vector<16x1xf32>
    %447 = arith.mulf %442, %442 : vector<16x64xf32>
    %cst_125 = arith.constant dense<0.000000e+00> : vector<16xf32>
    %448 = vector.multi_reduction <add>, %447, %cst_125 [1] : vector<16x64xf32> to vector<16xf32>
    %449 = vector.shape_cast %448 : vector<16xf32> to vector<16x1xf32>
    %cst_126 = arith.constant 6.400000e+01 : f32
    %450 = vector.broadcast %cst_126 : f32 to vector<16x1xf32>
    %451 = arith.divf %449, %450 : vector<16x1xf32>
    %452 = arith.mulf %446, %446 : vector<16x1xf32>
    %453 = arith.subf %451, %452 : vector<16x1xf32>
    %cst_127 = arith.constant 0.000000e+00 : f32
    %454 = vector.broadcast %cst_127 : f32 to vector<16x1xf32>
    %455 = arith.maximumf %453, %454 : vector<16x1xf32>
    %456 = vector.broadcast %446 : vector<16x1xf32> to vector<16x64xf32>
    %457 = arith.subf %442, %456 : vector<16x64xf32>
    %cst_128 = arith.constant 9.99999996E-13 : f32
    %458 = vector.broadcast %cst_128 : f32 to vector<16x1xf32>
    %459 = arith.addf %455, %458 : vector<16x1xf32>
    %460 = math.rsqrt %459 : vector<16x1xf32>
    %461 = vector.broadcast %460 : vector<16x1xf32> to vector<16x64xf32>
    %462 = arith.mulf %457, %461 : vector<16x64xf32>
    %463 = vector.broadcast %11 : vector<1x64xf32> to vector<16x64xf32>
    %464 = arith.mulf %462, %463 : vector<16x64xf32>
    %465 = vector.broadcast %12 : vector<1x64xf32> to vector<16x64xf32>
    %466 = arith.addf %464, %465 : vector<16x64xf32>
    %467 = arith.truncf %466 : vector<16x64xf32> to vector<16x64xbf16>
    %cst_129 = arith.constant dense<0.000000e+00> : vector<16x128xf32>
    %468 = tpu.matmul %467, %32, %cst_129 {dimension_numbers = #tpu.dot_dimension_numbers<[1], [0], [0], [1], [0, 0, 1, 1], [], []>} : vector<16x64xbf16>, vector<64x128xbf16>, vector<16x128xf32> -> vector<16x128xf32>
    %469 = vector.broadcast %29 : vector<1x128xf32> to vector<16x128xf32>
    %470 = arith.addf %468, %469 : vector<16x128xf32>
    %471 = arith.negf %470 : vector<16x128xf32>
    %472 = math.exp %471 : vector<16x128xf32>
    %cst_130 = arith.constant 1.000000e+00 : f32
    %473 = vector.broadcast %cst_130 : f32 to vector<16x128xf32>
    %474 = arith.addf %473, %472 : vector<16x128xf32>
    %475 = arith.divf %473, %474 : vector<16x128xf32>
    %476 = arith.mulf %470, %475 : vector<16x128xf32>
    %477 = arith.truncf %476 : vector<16x128xf32> to vector<16x128xbf16>
    %cst_131 = arith.constant dense<0.000000e+00> : vector<16x64xf32>
    %478 = tpu.matmul %477, %34, %cst_131 {dimension_numbers = #tpu.dot_dimension_numbers<[1], [0], [0], [1], [0, 0, 1, 1], [], []>} : vector<16x128xbf16>, vector<128x64xbf16>, vector<16x64xf32> -> vector<16x64xf32>
    %479 = vector.broadcast %16 : vector<1x64xf32> to vector<16x64xf32>
    %480 = arith.addf %478, %479 : vector<16x64xf32>
    %cst_132 = arith.constant 5.000000e-01 : f32
    %481 = vector.broadcast %cst_132 : f32 to vector<16x64xf32>
    %482 = arith.mulf %481, %480 : vector<16x64xf32>
    %483 = arith.addf %442, %482 : vector<16x64xf32>
    %cst_133 = arith.constant dense<0.000000e+00> : vector<16xf32>
    %484 = vector.multi_reduction <add>, %483, %cst_133 [1] : vector<16x64xf32> to vector<16xf32>
    %485 = vector.shape_cast %484 : vector<16xf32> to vector<16x1xf32>
    %cst_134 = arith.constant 6.400000e+01 : f32
    %486 = vector.broadcast %cst_134 : f32 to vector<16x1xf32>
    %487 = arith.divf %485, %486 : vector<16x1xf32>
    %488 = arith.mulf %483, %483 : vector<16x64xf32>
    %cst_135 = arith.constant dense<0.000000e+00> : vector<16xf32>
    %489 = vector.multi_reduction <add>, %488, %cst_135 [1] : vector<16x64xf32> to vector<16xf32>
    %490 = vector.shape_cast %489 : vector<16xf32> to vector<16x1xf32>
    %cst_136 = arith.constant 6.400000e+01 : f32
    %491 = vector.broadcast %cst_136 : f32 to vector<16x1xf32>
    %492 = arith.divf %490, %491 : vector<16x1xf32>
    %493 = arith.mulf %487, %487 : vector<16x1xf32>
    %494 = arith.subf %492, %493 : vector<16x1xf32>
    %cst_137 = arith.constant 0.000000e+00 : f32
    %495 = vector.broadcast %cst_137 : f32 to vector<16x1xf32>
    %496 = arith.maximumf %494, %495 : vector<16x1xf32>
    %497 = vector.broadcast %487 : vector<16x1xf32> to vector<16x64xf32>
    %498 = arith.subf %483, %497 : vector<16x64xf32>
    %cst_138 = arith.constant 9.99999996E-13 : f32
    %499 = vector.broadcast %cst_138 : f32 to vector<16x1xf32>
    %500 = arith.addf %496, %499 : vector<16x1xf32>
    %501 = math.rsqrt %500 : vector<16x1xf32>
    %502 = vector.broadcast %501 : vector<16x1xf32> to vector<16x64xf32>
    %503 = arith.mulf %498, %502 : vector<16x64xf32>
    %504 = vector.broadcast %13 : vector<1x64xf32> to vector<16x64xf32>
    %505 = arith.mulf %503, %504 : vector<16x64xf32>
    %506 = vector.broadcast %14 : vector<1x64xf32> to vector<16x64xf32>
    %507 = arith.addf %505, %506 : vector<16x64xf32>
    %508 = vector.broadcast %25 : vector<1x64xf32> to vector<16x64xf32>
    %509 = arith.mulf %507, %508 : vector<16x64xf32>
    %cst_139 = arith.constant dense<0.000000e+00> : vector<16xf32>
    %510 = vector.multi_reduction <add>, %509, %cst_139 [1] : vector<16x64xf32> to vector<16xf32>
    %511 = vector.shape_cast %510 : vector<16xf32> to vector<16x1xf32>
    %cst_140 = arith.constant dense<0xFF800000> : vector<1xf32>
    %512 = vector.multi_reduction <maximumf>, %511, %cst_140 [0] : vector<16x1xf32> to vector<1xf32>
    %513 = vector.shape_cast %512 : vector<1xf32> to vector<1x1xf32>
    %514 = vector.broadcast %513 : vector<1x1xf32> to vector<16x1xf32>
    %515 = arith.subf %511, %514 : vector<16x1xf32>
    %516 = math.exp %515 : vector<16x1xf32>
    %cst_141 = arith.constant dense<0.000000e+00> : vector<1xf32>
    %517 = vector.multi_reduction <add>, %516, %cst_141 [0] : vector<16x1xf32> to vector<1xf32>
    %518 = vector.shape_cast %517 : vector<1xf32> to vector<1x1xf32>
    %519 = tpu.reciprocal %518 {approx = true} : vector<1x1xf32> -> vector<1x1xf32>
    %520 = vector.broadcast %519 : vector<1x1xf32> to vector<16x1xf32>
    %521 = arith.mulf %516, %520 : vector<16x1xf32>
    %522 = vector.broadcast %521 : vector<16x1xf32> to vector<16x64xf32>
    %523 = arith.mulf %507, %522 : vector<16x64xf32>
    %cst_142 = arith.constant dense<0.000000e+00> : vector<64xf32>
    %524 = vector.multi_reduction <add>, %523, %cst_142 [0] : vector<16x64xf32> to vector<64xf32>
    %525 = vector.shape_cast %524 : vector<64xf32> to vector<1x64xf32>
    %c15_i32_143 = arith.constant 15 : i32
    %526 = tpu.dynamic_rotate %507 by %c15_i32_143 dim 0 : vector<16x64xf32>, i32 -> vector<16x64xf32>
    %527 = arith.maximumf %507, %526 : vector<16x64xf32>
    %528 = tpu.iota {dimensions = array<i32: 0>} : vector<8x16xi32>
    %529 = tpu.iota {dimensions = array<i32: 1>} : vector<8x16xi32>
    %c2_i32_144 = arith.constant 2 : i32
    %530 = vector.broadcast %c2_i32_144 : i32 to vector<8x16xi32>
    %531 = arith.muli %530, %528 : vector<8x16xi32>
    %532 = arith.cmpi eq, %529, %531 : vector<8x16xi32>
    %533 = arith.extui %532 : vector<8x16xi1> to vector<8x16xi32>
    %534 = arith.sitofp %533 : vector<8x16xi32> to vector<8x16xf32>
    %cst_145 = arith.constant dense<0.000000e+00> : vector<8x64xf32>
    %535 = tpu.matmul %534, %527, %cst_145 {dimension_numbers = #tpu.dot_dimension_numbers<[1], [0], [0], [1], [0, 0, 1, 1], [], []>} : vector<8x16xf32>, vector<16x64xf32>, vector<8x64xf32> -> vector<8x64xf32>
    %cst_146 = arith.constant 8.000000e+00 : f32
    %536 = vector.broadcast %cst_146 : f32 to vector<8x64xf32>
    %537 = arith.mulf %535, %536 : vector<8x64xf32>
    %538 = tpu.concatenate %525, %537 in 0 : vector<1x64xf32>, vector<8x64xf32> -> vector<9x64xf32>
    %c0_147 = arith.constant 0 : index
    %c0_148 = arith.constant 0 : index
    %c0_149 = arith.constant 0 : index
    %539 = vector.load %arg6[%c0_147, %c0_148, %c0_149] : memref<1x9x64xf32, #tpu.memory_space<vmem>>, vector<1x9x64xf32>
    %540 = vector.shape_cast %539 : vector<1x9x64xf32> to vector<9x64xf32>
    %541 = vector.shape_cast %538 : vector<9x64xf32> to vector<1x9x64xf32>
    tpu.vector_store %arg6[%c0_147, %c0_148, %c0_149], %541 {strides = array<i32>} : memref<1x9x64xf32, #tpu.memory_space<vmem>>, vector<1x9x64xf32>,
    return
  }
  func.func @transform_0(%arg0: i32) -> (i32, i32, i32) {
    %c0_i32 = arith.constant 0 : i32
    %c0_i32_0 = arith.constant 0 : i32
    %c0_i32_1 = arith.constant 0 : i32
    return %arg0, %c0_i32, %c0_i32_0 : i32, i32, i32
  }
  func.func @transform_1(%arg0: i32) -> (i32, i32) {
    %c0_i32 = arith.constant 0 : i32
    %c0_i32_0 = arith.constant 0 : i32
    %c0_i32_1 = arith.constant 0 : i32
    return %c0_i32, %c0_i32_0 : i32, i32
  }
  func.func @transform_2(%arg0: i32) -> (i32, i32) {
    %c0_i32 = arith.constant 0 : i32
    %c0_i32_0 = arith.constant 0 : i32
    %c0_i32_1 = arith.constant 0 : i32
    return %c0_i32, %c0_i32_0 : i32, i32
  }
  func.func @transform_3(%arg0: i32) -> (i32, i32) {
    %c0_i32 = arith.constant 0 : i32
    %c0_i32_0 = arith.constant 0 : i32
    %c0_i32_1 = arith.constant 0 : i32
    return %c0_i32, %c0_i32_0 : i32, i32
  }
  func.func @transform_4(%arg0: i32) -> (i32, i32) {
    %c0_i32 = arith.constant 0 : i32
    %c0_i32_0 = arith.constant 0 : i32
    %c0_i32_1 = arith.constant 0 : i32
    return %c0_i32, %c0_i32_0 : i32, i32
  }
  func.func @transform_5(%arg0: i32) -> (i32, i32, i32) {
    %c0_i32 = arith.constant 0 : i32
    %c0_i32_0 = arith.constant 0 : i32
    %c0_i32_1 = arith.constant 0 : i32
    return %arg0, %c0_i32, %c0_i32_0 : i32, i32, i32
  }
}

</mosaic_0001>

<bundles_post_ra>
// kernel: conformer_layer.1
= control target key start
LH: loop header
LB: loop body
LE: loop exit
PB: predicated region body
PF: predicated region fallthrough
CT: control target
= control target key end

     0   :  { %10 = vsyncpa [#allocation3], 0  ;;  %s2519_s18 = smov 0   ;;  %s3027_s0 = inlined_call_operand.vmem [shape: f32[2,16,64], index: 0, kind: input, shape index: {}]   ;;  %s3028_s1 = inlined_call_operand.vmem [shape: f32[16,64], index: 1, kind: input, shape index: {}]   ;;  %s3029_s2 = inlined_call_operand.vmem [shape: bf16[64,192], index: 2, kind: input, shape index: {}]   ;;  %s3030_s3 = inlined_call_operand.vmem [shape: bf16[384,128], index: 3, kind: input, shape index: {}]   ;;  %s3031_s4 = inlined_call_operand.hbm [shape: f32[33,128], index: 4, kind: input, shape index: {}]   ;;  %s3032_s5 = inlined_call_operand.vmem [shape: f32[2,9,64], index: 5, kind: output, shape index: {}]  }
   0x1 LB: > { %s177_s21 = sshll.u32 %s3031_s4, 4  ;;  %s1989_s22 = sadd.s32 4294967295, %s2475_s18   ;;  %s2475_s18 = sphi %s2519_s18, %s16_s18   ;;  %s178_s21 = int_to_ptr.hbm [resolvable:$true] %s177_s21 }
   0x2   : > { %p1991_p0 = scmp.ge.s32.totalorder %s2475_s18, 1  ;;  %p157_p1 = scmp.lt.s32.totalorder %s2475_s18, 3 }
   0x3   : > { %p2203_p2 = scmp.eq.s32.totalorder %s1989_s22, 0  ;;  %s2477_s23 = smov [#allocation2]  }
   0x4   : > { %p158_p3 = pnand %p1991_p0, %p157_p1  ;;  %s179_s24 = sshll.u32 %s2477_s23, 4  ;;  %s180_s24 = int_to_ptr.vmem [resolvable:$true] %s179_s24 }
   0x5   : > { %s2478_s25 = smov 128   ;;  %s2479_s26 = smov 8  }
   0x6   : > { %p2199_p4 = pneg %p158_p3  ;;  %203 = sbr.rel (%p158_p3) target bundleno = 3326 (0xcfe), region = 40 }
   0x8   : > { %p2200_p5 = pnand %p2203_p2, %p2199_p4 }
   0xa   : > { %2202 = dma.hbm_to_vmem [thread:$0]  (!%p2200_p5), %s178_s21, 640, %s180_s24, [#allocation3], %s2478_s25, %s2478_s25, %s2479_s26  }
   0xb   : > { %2470 = dma.done.wait (%p2203_p2), [#allocation3], 640  }
   0xc   : > { %2472 = vsyncadd (%p2203_p2), [#allocation3], 4294966656  ;;  %p232_p6 = scmp.lt.s32.totalorder %s1989_s22, 1  ;;  %vm330_vm0 = vcmask 523264   ;;  %v2480_v8 = vmov 64.0   ;;  %v2166_v14 = vld [vmem:[%s3030_s3 + $0x18] sm:$0xff] }
   0xd   : > { %2331 = vrcp.f32 %v2480_v8  ;;  %427 = vmatpush.bf16.msra.mxu0 %v2166_v14  ;;  %v2165_v18 = vld [vmem:[%s3030_s3 + $0x10] sm:$0xff]  ;;  %v2164_v22 = vld [vmem:[%s3030_s3 + $0x8] sm:$0xff]  ;;  %v2163_v25 = vld [vmem:[%s3030_s3] sm:$0xff]  ;;  %s2481_s19 = smov 64   ;;  %s2482_s20 = smov 48  }
   0xe   : > { %s3034_s22 = smov (!%p232_p6, %s1989_s22), 1  ;;  %v2305_v49 = vld [vmem:[#allocation2] ss:$0 sm:$0xff]  ;;  %v2306_v55 = vld [vmem:[#allocation2 + $0x1] ss:$0 sm:$0xff]  ;;  %v2182_v60 = vld [vmem:[%s3030_s3 + $0x98] sm:$0xff] }
   0xf   : > { %s2161_s27 = sshll.u32 %s3034_s22, 4  ;;  %527 = vmatpush.bf16.msra.mxu1 %v2182_v60  ;;  %v2181_v61 = vld [vmem:[%s3030_s3 + $0x90] sm:$0xff]  ;;  %v2180_v62 = vld [vmem:[%s3030_s3 + $0x88] sm:$0xff]  ;;  %v2179_v63 = vld [vmem:[%s3030_s3 + $0x80] sm:$0xff]  ;;  %s2483_s21 = smov 112  }
  0x10   : > { %s236_s30 = scalar_lea.vmem %s3027_s0, %s2161_s27  ;;  %s2484_s28 = smov 32  }
  0x11   : > { %v2538_v0 = vld [vmem:[%s236_s30] sm:$0xff]  ;;  %v2540_v1 = vld [vmem:[%s236_s30 + $0x8] sm:$0xff]  ;;  %428 = vmatpush.bf16.msra.mxu0 %v2165_v18  ;;  %s2485_s29 = smov 16   ;;  %s2486_s30 = smov 96  }
  0x12   : > { %v331_v2 = vsel %vm330_vm0, %v2538_v0, 0.0  ;;  %v346_v3 = vmul.f32 %v2538_v0, %v2538_v0  ;;  %v347_v4 = vmul.f32 %v2540_v1, %v2540_v1  ;;  %v334_v6 = vsel %vm330_vm0, %v2540_v1, 0.0  ;;  %s2487_s6 = smov 80  }
  0x13   : > { %332 = vadd.xlane.f32.xlu0 %v331_v2  ;;  %v2332_v9 = vpop.eup %2331  ;;  %528 = vmatpush.bf16.msra.mxu1 %v2181_v61  ;;  %v2178_v2 = vld [vmem:[%s3030_s3 + $0x78] sm:$0xff]  ;;  %v2069_v61 = vld [vmem:[%s3029_s2 + $0x20] sm:$0xf] }
  0x14   : > { %v348_v5 = vsel %vm330_vm0, %v346_v3, 0.0  ;;  %v351_v7 = vsel %vm330_vm0, %v347_v4, 0.0  ;;  %v338_v10 = vmul.f32 64.0, %v2332_v9  ;;  %vm342_vm1 = vweird.f32 %v2332_v9  ;;  %v2307_v3 = vld [vmem:[#allocation2 + $0x17] ss:$0 sm:$0xff] }
  0x15   : > { %349 = vadd.xlane.f32.xlu1 %v348_v5  ;;  %429 = vmatpush.bf16.msra.mxu0 %v2164_v22  ;;  %v2177_v4 = vld [vmem:[%s3030_s3 + $0x70] sm:$0xff] }
  0x16   : > { %v339_v11 = vsub.f32 1.0, %v338_v10 }
  0x17   : > { %529 = vmatpush.bf16.msra.mxu1 %v2180_v62  ;;  %v2192_v62 = vld [vmem:[%s3029_s2 + $0x24] sm:$0xf0] }
  0x18   : > { %v340_v12 = vmul.f32 %v2332_v9, %v339_v11 }
  0x19   : > { %430 = vmatpush.bf16.msra.mxu0 %v2163_v25 }
  0x1a   : > { %v341_v13 = vadd.f32 %v2332_v9, %v340_v12 }
  0x1b   : > { %335 = vadd.xlane.f32.xlu0 %v334_v6  ;;  %530 = vmatpush.bf16.msra.mxu1 %v2179_v63  ;;  %v2191_v63 = vld [vmem:[%s3029_s2 + $0x24] sm:$0xf] }
  0x1c   : > { %v2555_v15 = vsel %vm342_vm1, %v2332_v9, %v341_v13  ;;  %v2175_v9 = vld [vmem:[%s3030_s3 + $0x60] sm:$0xff] }
  0x1d   : > { %352 = vadd.xlane.f32.xlu1 %v351_v7  ;;  %v2176_v7 = vld [vmem:[%s3030_s3 + $0x68] sm:$0xff] }
  0x1f   : > { %531 = vmatpush.bf16.msra.mxu1 %v2178_v2 }
  0x23   : > { %532 = vmatpush.bf16.msra.mxu1 %v2177_v4  ;;  %v2071_v4 = vld [vmem:[%s3029_s2 + $0x28] sm:$0xf0] }
  0x27   : > { %533 = vmatpush.bf16.msra.mxu1 %v2176_v7 }
  0x2b   : > { %534 = vmatpush.bf16.msra.mxu1 %v2175_v9  ;;  %v2061_v9 = vld [vmem:[%s3029_s2 + $0x10] sm:$0xf] }
  0x86   : > { %v333_v16 = vpop.xlane.xlu0 %332 }
  0x87   : > { %v344_v17 = vmul.f32 %v2555_v15, %v333_v16 }
  0x88   : > { %v350_v19 = vpop.xlane.xlu1 %349 }
  0x89   : > { %v356_v20 = vmul.f32 %v344_v17, %v344_v17  ;;  %v354_v21 = vmul.f32 %v350_v19, %v2555_v15  ;;  %v362_v46 = vsub.f32 %v2538_v0, %v344_v17 }
  0x8b   : > { %v358_v23 = vsub.f32 %v354_v21, %v356_v20 }
  0x8d   : > { %v360_v24 = vmax.f32 %v358_v23, 0.0 }
  0x8e   : > { %v336_v26 = vpop.xlane.xlu0 %335 }
  0x8f   : > { %v364_v27 = vadd.f32 1e-12, %v360_v24  ;;  %v345_v28 = vmul.f32 %v2555_v15, %v336_v26 }
  0x90   : > { %v353_v29 = vpop.xlane.xlu1 %352 }
  0x91   : > { %2333 = vrsqrt.f32 %v364_v27  ;;  %v357_v30 = vmul.f32 %v345_v28, %v345_v28  ;;  %v355_v31 = vmul.f32 %v353_v29, %v2555_v15  ;;  %vm372_vm3 = vweird.f32 %v364_v27 }
  0x92   : > { %v363_v51 = vsub.f32 %v2540_v1, %v345_v28 }
  0x93   : > { %v359_v32 = vsub.f32 %v355_v31, %v357_v30 }
  0x95   : > { %v361_v33 = vmax.f32 %v359_v32, 0.0 }
  0x97   : > { %v2334_v34 = vpop.eup %2333  ;;  %v365_v36 = vadd.f32 1e-12, %v361_v33 }
  0x98   : > { %v367_v35 = vmul.f32 %v2334_v34, %v364_v27  ;;  %vm373_vm2 = vweird.f32 %v2334_v34 }
  0x99   : > { %2335 = vrsqrt.f32 %v365_v36  ;;  %vm374_vm4 = vmor %vm372_vm3, %vm373_vm2  ;;  %vm382_vm6 = vweird.f32 %v365_v36 }
  0x9a   : > { %v368_v37 = vmul.f32 %v2334_v34, %v367_v35 }
  0x9c   : > { %v369_v38 = vmul.f32 0.5, %v368_v37 }
  0x9e   : > { %v370_v39 = vsub.f32 1.5, %v369_v38 }
  0x9f   : > { %v2336_v40 = vpop.eup %2335 }
  0xa0   : > { %v371_v41 = vmul.f32 %v2334_v34, %v370_v39  ;;  %v377_v42 = vmul.f32 %v2336_v40, %v365_v36  ;;  %vm383_vm5 = vweird.f32 %v2336_v40 }
  0xa1   : > { %vm384_vm7 = vmor %vm382_vm6, %vm383_vm5 }
  0xa2   : > { %v378_v43 = vmul.f32 %v2336_v40, %v377_v42  ;;  %v375_v45 = vsel %vm374_vm4, %v2334_v34, %v371_v41  ;;  %v2308_v41 = vld [vmem:[#allocation2 + $0x2] ss:$0 sm:$0xff] }
  0xa3   : > { %v386_v48 = vmul.f32 %v375_v45, %v362_v46 }
  0xa4   : > { %v379_v44 = vmul.f32 0.5, %v378_v43 }
  0xa5   : > { %v389_v54 = vmul.f32 %v2305_v49, %v386_v48 }
  0xa6   : > { %v380_v47 = vsub.f32 1.5, %v379_v44 }
  0xa7   : > { %v392_v57 = vadd.f32 %v2306_v55, %v389_v54 }
  0xa8   : > { %v381_v50 = vmul.f32 %v2336_v40, %v380_v47 }
  0xaa   : > { %v385_v52 = vsel %vm384_vm7, %v2336_v40, %v381_v50  ;;  %vm700_vm7 = vcmask 130048  }
  0xab   : > { %v387_v53 = vmul.f32 %v385_v52, %v363_v51 }
  0xad   : > { %v390_v56 = vmul.f32 %v2305_v49, %v387_v53 }
  0xaf   : > { %v393_v58 = vadd.f32 %v2306_v55, %v390_v56  ;;  %v2077_v55 = vld [vmem:[%s3029_s2 + $0x30] sm:$0xf]  ;;  %v2194_v56 = vld [vmem:[%s3029_s2 + $0x34] sm:$0xf0] }
  0xb1   : > { %v394_v59 = vpack.c.bf16 %v393_v58, %v392_v57  ;;  %v2078_v57 = vor.u32 %v2194_v56, %v2077_v55  ;;  %v2079_v58 = vld [vmem:[%s3029_s2 + $0x38] sm:$0xf0]  ;;  %v2310_v55 = vld [vmem:[#allocation2 + $0x4] ss:$0 sm:$0xff] }
  0xb3   : > { %2016 = vmatmul.msk.bf16.vlgmr.msra.gmra.mxu0 %vm330_vm0, %v394_v59  ;;  %649 = vmatpush.bf16.msra.mxu2 %v2078_v57 }
 0x130   : > { %v432_v5 = vpop.f32.mrf.mxu0 }
 0x131   : > { %v433_v6 = vadd.f32 %v2307_v3, %v432_v5 }
 0x133   : > { %v2017_v8 = vmul.f32 -1.442695, %v433_v6 }
 0x135   : > { %2337 = vpow2.f32 %v2017_v8 }
 0x138   : > { %v434_v10 = vpop.f32.mrf.mxu0 }
 0x139   : > { %v435_v11 = vadd.f32 %v2307_v3, %v434_v10  ;;  %v2070_v3 = vor.u32 %v2192_v62, %v2069_v61  ;;  %v2190_v10 = vld [vmem:[%s3029_s2 + $0x14] sm:$0xf0]  ;;  %v2312_v61 = vld [vmem:[#allocation2 + $0x5] ss:$0 sm:$0xff]  ;;  %v2315_v62 = vld [vmem:[#allocation2 + $0x7] ss:$0 sm:$0xff] }
 0x13b   : > { %v2338_v12 = vpop.eup %2337  ;;  %v2018_v13 = vmul.f32 -1.442695, %v435_v11  ;;  %650 = vmatpush.bf16.msra.mxu2 %v2070_v3  ;;  %v2313_v3 = vld [vmem:[#allocation2 + $0x9] ss:$0 sm:$0xff] }
 0x13c   : > { %v443_v14 = vadd.f32 1.0, %v2338_v12  ;;  %v2062_v12 = vor.u32 %v2190_v10, %v2061_v9 }
 0x13d   : > { %2339 = vpow2.f32 %v2018_v13  ;;  %v2063_v13 = vld [vmem:[%s3029_s2 + $0x18] sm:$0xf0] }
 0x13e   : > { %2341 = vrcp.f32 %v443_v14  ;;  %v456_v25 = vand.u32 2147483648, %v443_v14  ;;  %vm450_vm9 = vweird.f32 %v443_v14  ;;  %v454_v26 = vand.u32 2147483647, %v443_v14 }
 0x13f   : > { %651 = vmatpush.bf16.msra.mxu2 %v2062_v12 }
 0x140   : > { %v457_v32 = vor.u32 1.1754944e-38, %v456_v25  ;;  %vm455_vm12 = vcmp.eq.f32.partialorder %v454_v26, 8.507059e+37 }
 0x143   : > { %v2340_v16 = vpop.eup %2339 }
 0x144   : > { %v2342_v17 = vpop.eup %2341  ;;  %v444_v18 = vadd.f32 1.0, %v2340_v16  ;;  %v2188_v16 = vld [vmem:[%s3029_s2 + $0x4] sm:$0xf0] }
 0x145   : > { %v446_v19 = vmul.f32 %v2342_v17, %v443_v14  ;;  %vm451_vm8 = vweird.f32 %v2342_v17  ;;  %v2053_v14 = vld [vmem:[%s3029_s2] sm:$0xf] }
 0x146   : > { %2343 = vrcp.f32 %v444_v18  ;;  %vm452_vm10 = vmor %vm450_vm9, %vm451_vm8  ;;  %v471_v28 = vand.u32 2147483648, %v444_v18  ;;  %v469_v31 = vand.u32 2147483647, %v444_v18  ;;  %vm465_vm13 = vweird.f32 %v444_v18 }
 0x147   : > { %v447_v20 = vsub.f32 1.0, %v446_v19  ;;  %v2187_v19 = vld [vmem:[%s3029_s2 + $0x4] sm:$0xf]  ;;  %vm723_vm8 = vcmask 261120   ;;  %vm1091_vm9 = vcmask 392192  }
 0x148   : > { %v472_v35 = vor.u32 1.1754944e-38, %v471_v28  ;;  %vm470_vm15 = vcmp.eq.f32.partialorder %v469_v31, 8.507059e+37  ;;  %v2311_v31 = vld [vmem:[#allocation2 + $0x6] ss:$0 sm:$0xff] }
 0x149   : > { %v448_v21 = vmul.f32 %v2342_v17, %v447_v20  ;;  %v2055_v20 = vld [vmem:[%s3029_s2 + $0x8] sm:$0xf0] }
 0x14b   : > { %v449_v23 = vadd.f32 %v2342_v17, %v448_v21 }
 0x14c   : > { %v2344_v22 = vpop.eup %2343 }
 0x14d   : > { %v461_v24 = vmul.f32 %v2344_v22, %v444_v18  ;;  %v453_v29 = vsel %vm452_vm10, %v2342_v17, %v449_v23  ;;  %vm466_vm11 = vweird.f32 %v2344_v22 }
 0x14e   : > { %v458_v34 = vsel %vm455_vm12, %v457_v32, %v453_v29  ;;  %vm467_vm14 = vmor %vm465_vm13, %vm466_vm11 }
 0x14f   : > { %v462_v27 = vsub.f32 1.0, %v461_v24  ;;  %v475_v38 = vmul.f32 %v458_v34, %v433_v6  ;;  %v2074_v6 = vor.u32 %v2191_v63, %v2071_v4  ;;  %v2058_v24 = vor.u32 %v2187_v19, %v2055_v20  ;;  %v2314_v20 = vld [vmem:[#allocation2 + $0xa] ss:$0 sm:$0xff] }
 0x151   : > { %v463_v30 = vmul.f32 %v2344_v22, %v462_v27 }
 0x153   : > { %v464_v33 = vadd.f32 %v2344_v22, %v463_v30 }
 0x155   : > { %v468_v36 = vsel %vm467_vm14, %v2344_v22, %v464_v33  ;;  %v2054_v22 = vor.u32 %v2188_v16, %v2053_v14 }
 0x156   : > { %v473_v37 = vsel %vm470_vm15, %v472_v35, %v468_v36 }
 0x157   : > { %v476_v39 = vmul.f32 %v473_v37, %v435_v11  ;;  %v2189_v11 = vld [vmem:[%s3029_s2 + $0x14] sm:$0xf]  ;;  %652 = vmatpush.bf16.msra.mxu2 %v2054_v22 }
 0x158   : > { %v2066_v18 = vor.u32 %v2189_v11, %v2063_v13 }
 0x159   : > { %v477_v40 = vpack.c.bf16 %v476_v39, %v475_v38 }
 0x15b   : > { %535 = vmatmul.bf16.vlgmr.msra.gmra.mxu1 %v477_v40 }
 0x1d8   : > { %v536_v42 = vpop.f32.mrf.mxu1 }
 0x1d9   : > { %v537_v43 = vadd.f32 %v2308_v41, %v536_v42 }
 0x1db   : > { %v541_v44 = vmul.f32 0.5, %v537_v43 }
 0x1dd   : > { %v2598_v45 = vadd.f32 %v541_v44, %v2538_v0 }
 0x1df   : > { %v545_v46 = vsel %vm330_vm0, %v2598_v45, 0.0  ;;  %v553_v47 = vmul.f32 %v2598_v45, %v2598_v45 }
 0x1e0   : > { %v538_v48 = vpop.f32.mrf.mxu1  ;;  %546 = vadd.xlane.f32.xlu2 %v545_v46 }
 0x1e1   : > { %v539_v49 = vadd.f32 %v2308_v41, %v538_v48  ;;  %v555_v50 = vsel %vm330_vm0, %v553_v47, 0.0 }
 0x1e2   : > { %556 = vadd.xlane.f32.xlu0 %v555_v50 }
 0x1e3   : > { %v542_v51 = vmul.f32 0.5, %v539_v49  ;;  %v2309_v49 = vld [vmem:[#allocation2 + $0x3] ss:$0 sm:$0xff] }
 0x1e5   : > { %v2606_v52 = vadd.f32 %v542_v51, %v2540_v1  ;;  %v2193_v1 = vld [vmem:[%s3029_s2 + $0x34] sm:$0xf] }
 0x1e6   : > { %v2082_v59 = vor.u32 %v2193_v1, %v2079_v58 }
 0x1e7   : > { %v548_v0 = vsel %vm330_vm0, %v2606_v52, 0.0  ;;  %v554_v53 = vmul.f32 %v2606_v52, %v2606_v52 }
 0x1e8   : > { %549 = vadd.xlane.f32.xlu2 %v548_v0  ;;  %663 = vmatpush.bf16.msra.mxu3 %v2082_v59 }
 0x1e9   : > { %v558_v54 = vsel %vm330_vm0, %v554_v53, 0.0 }
 0x1ea   : > { %559 = vadd.xlane.f32.xlu1 %v558_v54 }
 0x1ec   : > { %664 = vmatpush.bf16.msra.mxu3 %v2074_v6 }
 0x1f0   : > { %665 = vmatpush.bf16.msra.mxu3 %v2066_v18  ;;  %v246_v18 = vld [vmem:[%s3028_s1 + $0x8] sm:$0xff] }
 0x1f4   : > { %666 = vmatpush.bf16.msra.mxu3 %v2058_v24 }
 0x200   : > { %678 = vrot.lane.b32.xlu2 %v2311_v31, %s2481_s19 }
 0x253   : > { %v547_v60 = vpop.xlane.xlu2 %546 }
 0x254   : > { %v551_v2 = vmul.f32 %v547_v60, %v2555_v15 }
 0x255   : > { %v557_v5 = vpop.xlane.xlu0 %556 }
 0x256   : > { %v563_v7 = vmul.f32 %v551_v2, %v551_v2  ;;  %v561_v8 = vmul.f32 %v557_v5, %v2555_v15  ;;  %v569_v46 = vsub.f32 %v2598_v45, %v551_v2 }
 0x258   : > { %v565_v17 = vsub.f32 %v561_v8, %v563_v7 }
 0x25a   : > { %v567_v21 = vmax.f32 %v565_v17, 0.0  ;;  %v245_v17 = vld [vmem:[%s3028_s1] sm:$0xff] }
 0x25b   : > { %v550_v23 = vpop.xlane.xlu2 %549  ;;  %v2230_v19 = vpack.i.bf16 %v246_v18, %v245_v17 }
 0x25c   : > { %v571_v25 = vadd.f32 1e-12, %v567_v21  ;;  %v552_v26 = vmul.f32 %v550_v23, %v2555_v15 }
 0x25d   : > { %v560_v27 = vpop.xlane.xlu1 %559 }
 0x25e   : > { %2345 = vrsqrt.f32 %v571_v25  ;;  %v564_v28 = vmul.f32 %v552_v26, %v552_v26  ;;  %v562_v29 = vmul.f32 %v560_v27, %v2555_v15  ;;  %vm579_vm2 = vweird.f32 %v571_v25 }
 0x25f   : > { %v570_v51 = vsub.f32 %v2606_v52, %v552_v26 }
 0x260   : > { %v566_v30 = vsub.f32 %v562_v29, %v564_v28 }
 0x262   : > { %v568_v32 = vmax.f32 %v566_v30, 0.0 }
 0x263   : > { %v679_v63 = vpop.permute.xlu2 %678 }
 0x264   : > { %v2346_v33 = vpop.eup %2345  ;;  %v572_v35 = vadd.f32 1e-12, %v568_v32 }
 0x265   : > { %v574_v34 = vmul.f32 %v2346_v33, %v571_v25  ;;  %vm580_vm1 = vweird.f32 %v2346_v33 }
 0x266   : > { %2347 = vrsqrt.f32 %v572_v35  ;;  %vm581_vm3 = vmor %vm579_vm2, %vm580_vm1  ;;  %vm589_vm5 = vweird.f32 %v572_v35 }
 0x267   : > { %v575_v36 = vmul.f32 %v2346_v33, %v574_v34 }
 0x269   : > { %v576_v37 = vmul.f32 0.5, %v575_v36 }
 0x26b   : > { %v577_v38 = vsub.f32 1.5, %v576_v37 }
 0x26c   : > { %v2348_v39 = vpop.eup %2347 }
 0x26d   : > { %v578_v40 = vmul.f32 %v2346_v33, %v577_v38  ;;  %v584_v41 = vmul.f32 %v2348_v39, %v572_v35  ;;  %vm590_vm4 = vweird.f32 %v2348_v39 }
 0x26e   : > { %vm591_vm6 = vmor %vm589_vm5, %vm590_vm4 }
 0x26f   : > { %v585_v42 = vmul.f32 %v2348_v39, %v584_v41  ;;  %v582_v44 = vsel %vm581_vm3, %v2346_v33, %v578_v40 }
 0x270   : > { %v593_v48 = vmul.f32 %v582_v44, %v569_v46 }
 0x271   : > { %v586_v43 = vmul.f32 0.5, %v585_v42 }
 0x272   : > { %v596_v54 = vmul.f32 %v2309_v49, %v593_v48 }
 0x273   : > { %v587_v47 = vsub.f32 1.5, %v586_v43 }
 0x274   : > { %v599_v1 = vadd.f32 %v2310_v55, %v596_v54 }
 0x275   : > { %v588_v50 = vmul.f32 %v2348_v39, %v587_v47 }
 0x277   : > { %v592_v0 = vsel %vm591_vm6, %v2348_v39, %v588_v50 }
 0x278   : > { %v594_v53 = vmul.f32 %v592_v0, %v570_v51 }
 0x27a   : > { %v597_v56 = vmul.f32 %v2309_v49, %v594_v53 }
 0x27c   : > { %v600_v57 = vadd.f32 %v2310_v55, %v597_v56 }
 0x27e   : > { %v601_v58 = vpack.c.bf16 %v600_v57, %v599_v1 }
 0x280   : > { %2083 = vmatmul.msk.bf16.vlgmr.msra.gmra.mxu2 %vm330_vm0, %v601_v58  ;;  %2084 = vmatmul.msk.bf16.vlgmr.msra.gmra.mxu3 %vm330_vm0, %v601_v58 }
 0x303   : > { %v654_v59 = vpop.f32.mrf.mxu2  ;;  %v668_v60 = vpop.f32.mrf.mxu3 }
 0x304   : > { %v674_v2 = vadd.f32 %v2312_v61, %v654_v59  ;;  %v684_v4 = vadd.f32 %v2315_v62, %v668_v60  ;;  %v681_v7 = vadd.f32 %v679_v63, %v654_v59 }
 0x306   : > { %v2670_v11 = vadd.f32 %v2313_v3, %v674_v2  ;;  %v690_v22 = vadd.f32 %v2314_v20, %v674_v2 }
 0x30b   : > { %v656_v5 = vpop.f32.mrf.mxu2  ;;  %v670_v6 = vpop.f32.mrf.mxu3 }
 0x30c   : > { %v675_v8 = vadd.f32 %v2312_v61, %v656_v5  ;;  %v682_v9 = vadd.f32 %v679_v63, %v656_v5  ;;  %v685_v10 = vadd.f32 %v2315_v62, %v670_v6 }
 0x30e   : > { %v2672_v12 = vadd.f32 %v2313_v3, %v675_v8  ;;  %v2674_v13 = vpack.c.bf16 %v685_v10, %v684_v4  ;;  %v2235_v14 = vpack.i.bf16 %v682_v9, %v681_v7  ;;  %v691_v21 = vadd.f32 %v2314_v20, %v675_v8 }
 0x310   : > { %780 = vmatpush.bf16.msrb.mxu2 %v2674_v13  ;;  %2236 = vrot.lane.b32.xlu2 %v2235_v14, %s2481_s19  ;;  %v2245_v16 = vpack.i.bf16 %v2672_v12, %v2670_v11  ;;  %v2255_v23 = vpack.i.bf16 %v691_v21, %v690_v22 }
 0x311   : > { %2226 = vrot.lane.b32.xlu0 %v2235_v14, %s2482_s20 }
 0x312   : > { %2246 = vrot.lane.b32.xlu1 %v2245_v16, %s2483_s21 }
 0x318   : > { %2241 = vrot.lane.b32.xlu2 %v2235_v14, %s2484_s28 }
 0x319   : > { %2231 = vrot.lane.b32.xlu0 %v2230_v19, %s2485_s29 }
 0x31a   : > { %2251 = vrot.lane.b32.xlu1 %v2230_v19, %s2483_s21 }
 0x320   : > { %2261 = vrot.lane.b32.xlu2 %v2245_v16, %s2486_s30 }
 0x321   : > { %2256 = vrot.lane.b32.xlu0 %v2255_v23, %s2485_s29 }
 0x322   : > { %2266 = vrot.lane.b32.xlu1 %v2255_v23, %s2483_s21 }
 0x328   : > { %2276 = vrot.lane.b32.xlu2 %v2230_v19, %s2486_s30 }
 0x329   : > { %2271 = vrot.lane.b32.xlu0 %v2235_v14, %s2485_s29 }
 0x32a   : > { %2281 = vrot.lane.b32.xlu1 %v2245_v16, %s2487_s6 }
 0x331   : > { %2286 = vrot.lane.b32.xlu0 %v2255_v23, %s2486_s30 }
 0x36a   : > { %v2237_v24 = vpop.permute.xlu2 %2236 }
 0x36b   : > { %v2239_v36 = vunpack.i.h.bf16 %v2237_v24  ;;  %v2238_v37 = vunpack.i.l.bf16 %v2237_v24 }
 0x372   : > { %v2242_v29 = vpop.permute.xlu2 %2241 }
 0x373   : > { %v2244_v44 = vunpack.i.h.bf16 %v2242_v29  ;;  %v2243_v46 = vunpack.i.l.bf16 %v2242_v29 }
 0x37a   : > { %v2262_v51 = vpop.permute.xlu2 %2261 }
 0x37b   : > { %v2264_v6 = vunpack.i.h.bf16 %v2262_v51  ;;  %v2263_v7 = vunpack.i.l.bf16 %v2262_v51 }
 0x382   : > { %v2277_v3 = vpop.permute.xlu2 %2276 }
 0x383   : > { %v2227_v25 = vpop.permute.xlu0 %2226  ;;  %v2279_v8 = vunpack.i.h.bf16 %v2277_v3  ;;  %v2278_v9 = vunpack.i.l.bf16 %v2277_v3 }
 0x384   : > { %v2229_v26 = vunpack.i.h.bf16 %v2227_v25  ;;  %v2228_v27 = vunpack.i.l.bf16 %v2227_v25  ;;  %v2247_v28 = vpop.permute.xlu1 %2246 }
 0x385   : > { %v2249_v33 = vunpack.i.h.bf16 %v2247_v28  ;;  %v2248_v34 = vunpack.i.l.bf16 %v2247_v28 }
 0x386   : > { %v803_v30 = vsel %vm700_vm7, %v2228_v27, %v245_v17  ;;  %v804_v31 = vsel %vm700_vm7, %v2229_v26, %v246_v18 }
 0x387   : > { %v806_v32 = vpack.c.bf16 %v804_v31, %v803_v30  ;;  %v796_v39 = vsel %vm700_vm7, %v2249_v33, %v691_v21  ;;  %v795_v40 = vsel %vm700_vm7, %v2248_v34, %v690_v22 }
 0x388   : > { %v805_v0 = vpack.c.bf16 %v796_v39, %v795_v40 }
 0x389   : > { %v811_v35 = vsel %vm723_vm8, %v806_v32, 0 }
 0x38a   : > { %820 = vmatpush.bf16.xpose.msrb.mxu3 %v811_v35 }
 0x38b   : > { %v2232_v38 = vpop.permute.xlu0 %2231 }
 0x38c   : > { %v2234_v41 = vunpack.i.h.bf16 %v2232_v38  ;;  %v2233_v42 = vunpack.i.l.bf16 %v2232_v38  ;;  %v2252_v43 = vpop.permute.xlu1 %2251 }
 0x38d   : > { %v2254_v47 = vunpack.i.h.bf16 %v2252_v43  ;;  %v2253_v48 = vunpack.i.l.bf16 %v2252_v43 }
 0x38e   : > { %v719_v49 = vsel %vm700_vm7, %v2238_v37, %v2233_v42  ;;  %v720_v50 = vsel %vm700_vm7, %v2239_v36, %v2234_v41 }
 0x38f   : > { %v899_v53 = vsel %vm700_vm7, %v2243_v46, %v2253_v48  ;;  %v900_v54 = vsel %vm700_vm7, %v2244_v44, %v2254_v47  ;;  %v722_v55 = vpack.c.bf16 %v720_v50, %v719_v49 }
 0x390   : > { %v902_v56 = vpack.c.bf16 %v900_v54, %v899_v53 }
 0x391   : > { %2087 = vmatmul.msk.bf16.vlgmr.msrb.gmra.mxu3 %vm723_vm8, %v805_v0  ;;  %v728_v1 = vsel %vm723_vm8, %v722_v55, 0 }
 0x392   : > { %737 = vmatpush.bf16.xpose.msrb.mxu0 %v728_v1  ;;  %v907_v57 = vsel %vm723_vm8, %v902_v56, 0 }
 0x393   : > { %v2257_v58 = vpop.permute.xlu0 %2256  ;;  %916 = vmatpush.bf16.xpose.msra.mxu3 %v907_v57 }
 0x394   : > { %v2259_v59 = vunpack.i.h.bf16 %v2257_v58  ;;  %v2258_v60 = vunpack.i.l.bf16 %v2257_v58  ;;  %v2267_v61 = vpop.permute.xlu1 %2266 }
 0x395   : > { %v2269_v4 = vunpack.i.h.bf16 %v2267_v61  ;;  %v2268_v5 = vunpack.i.l.bf16 %v2267_v61 }
 0x396   : > { %v702_v62 = vsel %vm700_vm7, %v2672_v12, %v2259_v59  ;;  %v701_v63 = vsel %vm700_vm7, %v2670_v11, %v2258_v60 }
 0x397   : > { %v721_v2 = vpack.c.bf16 %v702_v62, %v701_v63  ;;  %v885_v14 = vsel %vm700_vm7, %v2263_v7, %v2268_v5  ;;  %v886_v16 = vsel %vm700_vm7, %v2264_v6, %v2269_v4 }
 0x398   : > { %v901_v19 = vpack.c.bf16 %v886_v16, %v885_v14 }
 0x399   : > { %2085 = vmatmul.msk.bf16.vlgmr.msrb.gmra.mxu0 %vm723_vm8, %v721_v2 }
 0x39b   : > { %v2272_v10 = vpop.permute.xlu0 %2271 }
 0x39c   : > { %v2274_v17 = vunpack.i.h.bf16 %v2272_v10  ;;  %v2273_v12 = vunpack.i.l.bf16 %v2272_v10  ;;  %v2282_v23 = vpop.permute.xlu1 %2281 }
 0x39d   : > { %v2284_v26 = vunpack.i.h.bf16 %v2282_v23  ;;  %v2283_v27 = vunpack.i.l.bf16 %v2282_v23 }
 0x39e   : > { %v995_v18 = vsel %vm700_vm7, %v2274_v17, %v2279_v8  ;;  %v994_v11 = vsel %vm700_vm7, %v2273_v12, %v2278_v9 }
 0x39f   : > { %v997_v20 = vpack.c.bf16 %v995_v18, %v994_v11 }
 0x3a1   : > { %2089 = vmatmul.msk.bf16.vlgmr.msra.gmra.mxu3 %vm723_vm8, %v901_v19  ;;  %v1002_v21 = vsel %vm723_vm8, %v997_v20, 0 }
 0x3a2   : > { %1011 = vmatpush.bf16.xpose.msrb.mxu3 %v1002_v21 }
 0x3a3   : > { %v2287_v22 = vpop.permute.xlu0 %2286 }
 0x3a4   : > { %v2289_v24 = vunpack.i.h.bf16 %v2287_v22  ;;  %v2288_v25 = vunpack.i.l.bf16 %v2287_v22 }
 0x3a6   : > { %v981_v28 = vsel %vm700_vm7, %v2284_v26, %v2289_v24  ;;  %v980_v29 = vsel %vm700_vm7, %v2283_v27, %v2288_v25 }
 0x3a7   : > { %v996_v30 = vpack.c.bf16 %v981_v28, %v980_v29 }
 0x3b1   : > { %2091 = vmatmul.msk.bf16.vlgmr.msrb.gmra.mxu3 %vm723_vm8, %v996_v30 }
 0x414   : > { %v822_v31 = vpop.f32.mrf.mxu3 }
 0x415   : > { %v827_v32 = vmul.f32 0.25, %v822_v31 }
 0x416   : > { %v739_v33 = vpop.f32.mrf.mxu0 }
 0x417   : > { %v744_v34 = vmul.f32 0.25, %v739_v33  ;;  %v829_v35 = vsel %vm700_vm7, %v827_v32, -inf }
 0x418   : > { %830 = vmax.xlane.f32.xlu0 %v829_v35 }
 0x419   : > { %v746_v36 = vsel %vm700_vm7, %v744_v34, -inf }
 0x41a   : > { %747 = vmax.xlane.f32.xlu2 %v746_v36 }
 0x41c   : > { %v824_v37 = vpop.f32.mrf.mxu3 }
 0x41d   : > { %v828_v38 = vmul.f32 0.25, %v824_v37 }
 0x41e   : > { %v741_v39 = vpop.f32.mrf.mxu0 }
 0x41f   : > { %v745_v40 = vmul.f32 0.25, %v741_v39  ;;  %v832_v42 = vsel %vm700_vm7, %v828_v38, -inf }
 0x421   : > { %v749_v41 = vsel %vm700_vm7, %v745_v40, -inf }
 0x422   : > { %750 = vmax.xlane.f32.xlu1 %v749_v41  ;;  %833 = vmax.xlane.f32.xlu2 %v832_v42 }
 0x424   : > { %v918_v43 = vpop.f32.mrf.mxu3 }
 0x425   : > { %v923_v44 = vmul.f32 0.25, %v918_v43 }
 0x427   : > { %v925_v46 = vsel %vm700_vm7, %v923_v44, -inf }
 0x42a   : > { %926 = vmax.xlane.f32.xlu1 %v925_v46 }
 0x42c   : > { %v920_v47 = vpop.f32.mrf.mxu3 }
 0x42d   : > { %v924_v48 = vmul.f32 0.25, %v920_v47 }
 0x42f   : > { %v928_v49 = vsel %vm700_vm7, %v924_v48, -inf }
 0x430   : > { %929 = vmax.xlane.f32.xlu0 %v928_v49 }
 0x434   : > { %v1013_v50 = vpop.f32.mrf.mxu3 }
 0x435   : > { %v1018_v51 = vmul.f32 0.25, %v1013_v50 }
 0x437   : > { %v1020_v0 = vsel %vm700_vm7, %v1018_v51, -inf }
 0x438   : > { %1021 = vmax.xlane.f32.xlu2 %v1020_v0 }
 0x43c   : > { %v1015_v53 = vpop.f32.mrf.mxu3 }
 0x43d   : > { %v1019_v54 = vmul.f32 0.25, %v1015_v53 }
 0x43f   : > { %v1023_v55 = vsel %vm700_vm7, %v1019_v54, -inf }
 0x440   : > { %1024 = vmax.xlane.f32.xlu1 %v1023_v55 }
 0x48b   : > { %v831_v56 = vpop.xlane.xlu0 %830 }
 0x48c   : > { %v835_v1 = vsub.f32 %v827_v32, %v831_v56 }
 0x48d   : > { %v748_v57 = vpop.xlane.xlu2 %747 }
 0x48e   : > { %v837_v58 = vmul.f32 1.442695, %v835_v1  ;;  %v752_v59 = vsub.f32 %v744_v34, %v748_v57 }
 0x490   : > { %2349 = vpow2.f32 %v837_v58  ;;  %v754_v60 = vmul.f32 1.442695, %v752_v59 }
 0x492   : > { %2351 = vpow2.f32 %v754_v60 }
 0x495   : > { %v751_v61 = vpop.xlane.xlu1 %750  ;;  %v834_v62 = vpop.xlane.xlu2 %833 }
 0x496   : > { %v2732_v63 = vpop.eup %2349  ;;  %v753_v2 = vsub.f32 %v745_v40, %v751_v61  ;;  %v836_v3 = vsub.f32 %v828_v38, %v834_v62 }
 0x497   : > { %v841_v4 = vsel %vm700_vm7, %v2732_v63, 0.0 }
 0x498   : > { %v2352_v5 = vpop.eup %2351  ;;  %v756_v6 = vmul.f32 1.442695, %v753_v2  ;;  %v839_v7 = vmul.f32 1.442695, %v836_v3  ;;  %842 = vadd.xlane.f32.xlu1 %v841_v4 }
 0x499   : > { %v758_v8 = vsel %vm700_vm7, %v2352_v5, 0.0 }
 0x49a   : > { %2353 = vpow2.f32 %v756_v6  ;;  %759 = vadd.xlane.f32.xlu0 %v758_v8 }
 0x49b   : > { %2355 = vpow2.f32 %v839_v7 }
 0x49d   : > { %v927_v9 = vpop.xlane.xlu1 %926 }
 0x49e   : > { %v931_v10 = vsub.f32 %v923_v44, %v927_v9 }
 0x4a0   : > { %v2354_v14 = vpop.eup %2353  ;;  %v933_v16 = vmul.f32 1.442695, %v931_v10 }
 0x4a1   : > { %v2356_v17 = vpop.eup %2355  ;;  %v761_v12 = vsel %vm700_vm7, %v2354_v14, 0.0 }
 0x4a2   : > { %2357 = vpow2.f32 %v933_v16  ;;  %762 = vadd.xlane.f32.xlu2 %v761_v12  ;;  %v844_v18 = vsel %vm700_vm7, %v2356_v17, 0.0  ;;  %v2760_v12 = vld [vmem:[%s3030_s3 + $0xb8] sm:$0xff] }
 0x4a3   : > { %845 = vadd.xlane.f32.xlu0 %v844_v18  ;;  %v930_v11 = vpop.xlane.xlu0 %929  ;;  %1126 = vmatpush.bf16.msrb.mxu1 %v2760_v12  ;;  %v2766_v18 = vld [vmem:[%s3030_s3 + $0xb0] sm:$0xff] }
 0x4a4   : > { %v932_v19 = vsub.f32 %v924_v48, %v930_v11  ;;  %v2772_v11 = vld [vmem:[%s3030_s3 + $0xa8] sm:$0xff] }
 0x4a6   : > { %v935_v20 = vmul.f32 1.442695, %v932_v19  ;;  %v2778_v19 = vld [vmem:[%s3030_s3 + $0xa0] sm:$0xff] }
 0x4a7   : > { %1127 = vmatpush.bf16.msrb.mxu1 %v2766_v18 }
 0x4a8   : > { %v2358_v21 = vpop.eup %2357  ;;  %2359 = vpow2.f32 %v935_v20 }
 0x4a9   : > { %v937_v22 = vsel %vm700_vm7, %v2358_v21, 0.0 }
 0x4aa   : > { %938 = vadd.xlane.f32.xlu1 %v937_v22 }
 0x4ab   : > { %v1022_v23 = vpop.xlane.xlu2 %1021  ;;  %1128 = vmatpush.bf16.msrb.mxu1 %v2772_v11 }
 0x4ac   : > { %v1026_v24 = vsub.f32 %v1018_v51, %v1022_v23 }
 0x4ae   : > { %v2360_v25 = vpop.eup %2359  ;;  %v1028_v26 = vmul.f32 1.442695, %v1026_v24 }
 0x4af   : > { %v940_v27 = vsel %vm700_vm7, %v2360_v25, 0.0  ;;  %1129 = vmatpush.bf16.msrb.mxu1 %v2778_v19 }
 0x4b0   : > { %2361 = vpow2.f32 %v1028_v26  ;;  %941 = vadd.xlane.f32.xlu0 %v940_v27 }
 0x4b3   : > { %v1025_v28 = vpop.xlane.xlu1 %1024 }
 0x4b4   : > { %v1027_v29 = vsub.f32 %v1019_v54, %v1025_v28 }
 0x4b6   : > { %v2362_v30 = vpop.eup %2361  ;;  %v1030_v31 = vmul.f32 1.442695, %v1027_v29 }
 0x4b7   : > { %v1032_v32 = vsel %vm700_vm7, %v2362_v30, 0.0 }
 0x4b8   : > { %2363 = vpow2.f32 %v1030_v31  ;;  %1033 = vadd.xlane.f32.xlu1 %v1032_v32 }
 0x4ba   : > { %853 = vrot.lane.b32.xlu2 %v2674_v13, %s2483_s21 }
 0x4be   : > { %v2364_v33 = vpop.eup %2363 }
 0x4bf   : > { %v1035_v34 = vsel %vm700_vm7, %v2364_v33, 0.0 }
 0x4c0   : > { %1036 = vadd.xlane.f32.xlu0 %v1035_v34 }
 0x4d1   : > { %948 = vrot.lane.b32.xlu1 %v2674_v13, %s2486_s30 }
 0x4d4   : > { %1043 = vrot.lane.b32.xlu0 %v2674_v13, %s2487_s6  ;;  %s241_s6 = scalar_lea.vmem %s3032_s5, %s2161_s27 }
 0x50b   : > { %v843_v36 = vpop.xlane.xlu1 %842 }
 0x50d   : > { %v760_v35 = vpop.xlane.xlu0 %759 }
 0x50e   : > { %2365 = vrcp.f32 %v760_v35 }
 0x50f   : > { %2367 = vrcp.f32 %v843_v36  ;;  %v2316_v36 = vld [vmem:[#allocation2 + $0x8] ss:$0 sm:$0xff] }
 0x514   : > { %v2366_v39 = vpop.eup %2365 }
 0x515   : > { %v763_v37 = vpop.xlane.xlu2 %762  ;;  %v2368_v40 = vpop.eup %2367  ;;  %v766_v43 = vmul.f32 %v2366_v39, %v2352_v5 }
 0x516   : > { %v846_v38 = vpop.xlane.xlu0 %845  ;;  %2369 = vrcp.f32 %v763_v37  ;;  %v849_v47 = vmul.f32 %v2368_v40, %v2732_v63 }
 0x517   : > { %2371 = vrcp.f32 %v846_v38 }
 0x51c   : > { %v2370_v41 = vpop.eup %2369 }
 0x51d   : > { %v2372_v42 = vpop.eup %2371  ;;  %v767_v44 = vmul.f32 %v2370_v41, %v2354_v14  ;;  %v854_v46 = vpop.permute.xlu2 %853 }
 0x51e   : > { %v850_v48 = vmul.f32 %v2372_v42, %v2356_v17  ;;  %866 = vmatpush.bf16.msra.mxu0 %v854_v46  ;;  %v939_v51 = vpop.xlane.xlu1 %938 }
 0x51f   : > { %v768_v13 = vpack.c.bf16 %v767_v44, %v766_v43 }
 0x520   : > { %v851_v49 = vpack.c.bf16 %v850_v48, %v849_v47 }
 0x521   : > { %2086 = vmatmul.msk.bf16.vlgmr.msrb.gmra.mxu2 %vm700_vm7, %v768_v13  ;;  %v2170_v13 = vld [vmem:[%s3030_s3 + $0x38] sm:$0xff] }
 0x522   : > { %2088 = vmatmul.msk.bf16.vlgmr.msra.gmra.mxu0 %vm700_vm7, %v851_v49 }
 0x523   : > { %v942_v50 = vpop.xlane.xlu0 %941 }
 0x524   : > { %2373 = vrcp.f32 %v942_v50  ;;  %v2169_v50 = vld [vmem:[%s3030_s3 + $0x30] sm:$0xff] }
 0x525   : > { %2375 = vrcp.f32 %v939_v51 }
 0x52a   : > { %v2374_v54 = vpop.eup %2373 }
 0x52b   : > { %v1034_v53 = vpop.xlane.xlu1 %1033  ;;  %v2376_v55 = vpop.eup %2375  ;;  %v946_v1 = vmul.f32 %v2374_v54, %v2360_v25 }
 0x52c   : > { %v945_v58 = vmul.f32 %v2376_v55, %v2358_v21  ;;  %v2168_v55 = vld [vmem:[%s3030_s3 + $0x28] sm:$0xff] }
 0x52e   : > { %v947_v61 = vpack.c.bf16 %v946_v1, %v945_v58 }
 0x533   : > { %v1037_v0 = vpop.xlane.xlu0 %1036 }
 0x534   : > { %2377 = vrcp.f32 %v1037_v0 }
 0x535   : > { %2379 = vrcp.f32 %v1034_v53 }
 0x53a   : > { %v2378_v56 = vpop.eup %2377 }
 0x53b   : > { %v2380_v57 = vpop.eup %2379  ;;  %v1041_v60 = vmul.f32 %v2378_v56, %v2364_v33 }
 0x53c   : > { %v1040_v62 = vmul.f32 %v2380_v57, %v2362_v30  ;;  %v2167_v57 = vld [vmem:[%s3030_s3 + $0x20] sm:$0xff] }
 0x53e   : > { %v1042_v2 = vpack.c.bf16 %v1041_v60, %v1040_v62 }
 0x543   : > { %v949_v59 = vpop.permute.xlu1 %948 }
 0x544   : > { %961 = vmatpush.bf16.msra.mxu2 %v949_v59 }
 0x546   : > { %v1044_v63 = vpop.permute.xlu0 %1043 }
 0x547   : > { %2090 = vmatmul.msk.bf16.vlgmr.msra.gmra.mxu2 %vm700_vm7, %v947_v61  ;;  %1056 = vmatpush.bf16.msrb.mxu0 %v1044_v63 }
 0x548   : > { %1230 = vmatpush.bf16.msrb.mxu2 %v2170_v13 }
 0x54a   : > { %2092 = vmatmul.msk.bf16.vlgmr.msrb.gmra.mxu0 %vm700_vm7, %v1042_v2 }
 0x54c   : > { %1231 = vmatpush.bf16.msrb.mxu2 %v2169_v50 }
 0x550   : > { %1232 = vmatpush.bf16.msrb.mxu2 %v2168_v55 }
 0x554   : > { %1233 = vmatpush.bf16.msrb.mxu2 %v2167_v57 }
 0x59f   : > { %v868_v3 = vpop.f32.mrf.mxu0 }
 0x5a4   : > { %v782_v6 = vpop.f32.mrf.mxu2 }
 0x5a7   : > { %v870_v4 = vpop.f32.mrf.mxu0 }
 0x5a8   : > { %v2290_v5 = vpack.i.bf16 %v870_v4, %v868_v3 }
 0x5aa   : > { %2291 = vrot.lane.b32.xlu2 %v2290_v5, %s2485_s29 }
 0x5ac   : > { %v784_v7 = vpop.f32.mrf.mxu2 }
 0x5c7   : > { %v1058_v9 = vpop.f32.mrf.mxu0 }
 0x5ca   : > { %v963_v8 = vpop.f32.mrf.mxu2 }
 0x5cf   : > { %v1060_v16 = vpop.f32.mrf.mxu0 }
 0x5d0   : > { %v2300_v17 = vpack.i.bf16 %v1060_v16, %v1058_v9 }
 0x5d2   : > { %v965_v10 = vpop.f32.mrf.mxu2 }
 0x5d3   : > { %v2295_v14 = vpack.i.bf16 %v965_v10, %v963_v8 }
 0x5d5   : > { %2296 = vrot.lane.b32.xlu2 %v2295_v14, %s2484_s28 }
 0x5dd   : > { %2301 = vrot.lane.b32.xlu2 %v2300_v17, %s2482_s20 }
 0x604   : > { %v2292_v20 = vpop.permute.xlu2 %2291 }
 0x605   : > { %v2294_v22 = vunpack.i.h.bf16 %v2292_v20  ;;  %v2293_v23 = vunpack.i.l.bf16 %v2292_v20 }
 0x607   : > { %v1088_v27 = vsel %vm700_vm7, %v784_v7, %v2294_v22  ;;  %v1087_v28 = vsel %vm700_vm7, %v782_v6, %v2293_v23  ;;  %v2317_v23 = vld [vmem:[#allocation2 + $0xb] ss:$0 sm:$0xff] }
 0x62f   : > { %v2297_v21 = vpop.permute.xlu2 %2296 }
 0x630   : > { %v2299_v24 = vunpack.i.h.bf16 %v2297_v21  ;;  %v2298_v25 = vunpack.i.l.bf16 %v2297_v21 }
 0x632   : > { %v1089_v31 = vsel %vm723_vm8, %v1087_v28, %v2298_v25  ;;  %v1090_v32 = vsel %vm723_vm8, %v1088_v27, %v2299_v24 }
 0x637   : > { %v2302_v26 = vpop.permute.xlu2 %2301 }
 0x638   : > { %v2304_v29 = vunpack.i.h.bf16 %v2302_v26  ;;  %v2303_v30 = vunpack.i.l.bf16 %v2302_v26 }
 0x63a   : > { %v1093_v33 = vsel %vm1091_vm9, %v1090_v32, %v2304_v29  ;;  %v1092_v34 = vsel %vm1091_vm9, %v1089_v31, %v2303_v30  ;;  %v2318_v30 = vld [vmem:[#allocation2 + $0xc] ss:$0 sm:$0xff] }
 0x63b   : > { %v1094_v35 = vpack.c.bf16 %v1093_v33, %v1092_v34 }
 0x63d   : > { %2109 = vmatmul.msk.bf16.vlgmr.msrb.gmra.mxu1 %vm330_vm0, %v1094_v35  ;;  %v2319_v35 = vld [vmem:[#allocation2 + $0x18] ss:$0 sm:$0xff] }
 0x6ba   : > { %v1131_v37 = vpop.f32.mrf.mxu1 }
 0x6bb   : > { %v1136_v38 = vadd.f32 %v1131_v37, %v2598_v45 }
 0x6bd   : > { %v2787_v39 = vadd.f32 %v2316_v36, %v1136_v38 }
 0x6bf   : > { %v1141_v40 = vsel %vm330_vm0, %v2787_v39, 0.0  ;;  %v1149_v41 = vmul.f32 %v2787_v39, %v2787_v39 }
 0x6c0   : > { %1142 = vadd.xlane.f32.xlu0 %v1141_v40 }
 0x6c1   : > { %v1151_v42 = vsel %vm330_vm0, %v1149_v41, 0.0 }
 0x6c2   : > { %1152 = vadd.xlane.f32.xlu2 %v1151_v42  ;;  %v1133_v43 = vpop.f32.mrf.mxu1 }
 0x6c3   : > { %v1137_v44 = vadd.f32 %v1133_v43, %v2606_v52 }
 0x6c5   : > { %v2795_v46 = vadd.f32 %v2316_v36, %v1137_v44 }
 0x6c7   : > { %v1144_v45 = vsel %vm330_vm0, %v2795_v46, 0.0  ;;  %v1150_v47 = vmul.f32 %v2795_v46, %v2795_v46 }
 0x6c8   : > { %1145 = vadd.xlane.f32.xlu1 %v1144_v45 }
 0x6c9   : > { %v1154_v48 = vsel %vm330_vm0, %v1150_v47, 0.0 }
 0x6ca   : > { %1155 = vadd.xlane.f32.xlu0 %v1154_v48 }
 0x733   : > { %v1143_v49 = vpop.xlane.xlu0 %1142 }
 0x734   : > { %v1147_v52 = vmul.f32 %v1143_v49, %v2555_v15 }
 0x735   : > { %v1153_v51 = vpop.xlane.xlu2 %1152 }
 0x736   : > { %v1159_v0 = vmul.f32 %v1147_v52, %v1147_v52  ;;  %v1157_v53 = vmul.f32 %v1153_v51, %v2555_v15  ;;  %v1165_v21 = vsub.f32 %v2787_v39, %v1147_v52 }
 0x738   : > { %v1161_v54 = vsub.f32 %v1157_v53, %v1159_v0 }
 0x73a   : > { %v1163_v56 = vmax.f32 %v1161_v54, 0.0 }
 0x73b   : > { %v1146_v1 = vpop.xlane.xlu1 %1145 }
 0x73c   : > { %v1167_v58 = vadd.f32 1e-12, %v1163_v56  ;;  %v1148_v59 = vmul.f32 %v1146_v1, %v2555_v15 }
 0x73d   : > { %v1156_v60 = vpop.xlane.xlu0 %1155 }
 0x73e   : > { %2381 = vrsqrt.f32 %v1167_v58  ;;  %v1160_v61 = vmul.f32 %v1148_v59, %v1148_v59  ;;  %v1158_v62 = vmul.f32 %v1156_v60, %v2555_v15  ;;  %vm1175_vm11 = vweird.f32 %v1167_v58 }
 0x73f   : > { %v1166_v26 = vsub.f32 %v2795_v46, %v1148_v59 }
 0x740   : > { %v1162_v63 = vsub.f32 %v1158_v62, %v1160_v61 }
 0x742   : > { %v1164_v2 = vmax.f32 %v1162_v63, 0.0 }
 0x744   : > { %v2382_v3 = vpop.eup %2381  ;;  %v1168_v5 = vadd.f32 1e-12, %v1164_v2 }
 0x745   : > { %v1170_v4 = vmul.f32 %v2382_v3, %v1167_v58  ;;  %vm1176_vm10 = vweird.f32 %v2382_v3 }
 0x746   : > { %2383 = vrsqrt.f32 %v1168_v5  ;;  %vm1177_vm12 = vmor %vm1175_vm11, %vm1176_vm10  ;;  %vm1185_vm14 = vweird.f32 %v1168_v5 }
 0x747   : > { %v1171_v6 = vmul.f32 %v2382_v3, %v1170_v4 }
 0x749   : > { %v1172_v7 = vmul.f32 0.5, %v1171_v6 }
 0x74b   : > { %v1173_v8 = vsub.f32 1.5, %v1172_v7  ;;  %v2836_v7 = vld [vmem:[#allocation2 + $0x1a] sm:$0x7f] }
 0x74c   : > { %v2384_v9 = vpop.eup %2383 }
 0x74d   : > { %v1174_v10 = vmul.f32 %v2382_v3, %v1173_v8  ;;  %v1180_v14 = vmul.f32 %v2384_v9, %v1168_v5  ;;  %vm1186_vm13 = vweird.f32 %v2384_v9 }
 0x74e   : > { %vm1187_vm15 = vmor %vm1185_vm14, %vm1186_vm13 }
 0x74f   : > { %v1181_v16 = vmul.f32 %v2384_v9, %v1180_v14  ;;  %v1178_v17 = vsel %vm1177_vm12, %v2382_v3, %v1174_v10  ;;  %v1288_v3 = vlaneseq }
 0x750   : > { %v1189_v24 = vmul.f32 %v1178_v17, %v1165_v21 }
 0x751   : > { %v1182_v20 = vmul.f32 0.5, %v1181_v16  ;;  %v2833_v4 = vshrl.u32 %v1288_v3, 7 }
 0x752   : > { %v1192_v28 = vmul.f32 %v2317_v23, %v1189_v24  ;;  %v2488_v24 = vmov 0.0  }
 0x753   : > { %v1183_v22 = vsub.f32 1.5, %v1182_v20  ;;  %v1290_v5 = vadd.s32 8, %v2833_v4  ;;  %v1295_v10 = vand.u32 15, %v2833_v4  ;;  %vm1317_vm10 = vcmp.lt.s32.totalorder %v2833_v4, 3 }
 0x754   : > { %v1195_v32 = vadd.f32 %v2318_v30, %v1192_v28  ;;  %vm1341_vm13 = vcmp.lt.s32.totalorder %v2833_v4, 2  ;;  %vm1365_vm14 = vcmp.lt.s32.totalorder %v2833_v4, 1 }
 0x755   : > { %v1184_v25 = vmul.f32 %v2384_v9, %v1183_v22  ;;  %v1302_v6 = vand.u32 15, %v1290_v5  ;;  %v1320_v16 = vadd.s32 4294967293, %v1295_v10  ;;  %v1344_v17 = vadd.s32 4294967294, %v1295_v10 }
 0x756   : > { %v1368_v20 = vadd.s32 4294967295, %v1295_v10  ;;  %v1358_v22 = vperm.slane %v2836_v7, 1  ;;  %v1435_v10 = vperm.slane %v2836_v7, 5 }
 0x757   : > { %v1188_v27 = vsel %vm1187_vm15, %v2384_v9, %v1184_v25  ;;  %v1398_v8 = vadd.s32 1, %v1302_v6  ;;  %v1422_v9 = vadd.s32 2, %v1302_v6  ;;  %v1446_v14 = vadd.s32 3, %v1302_v6 }
 0x758   : > { %v1190_v29 = vmul.f32 %v1188_v27, %v1166_v26  ;;  %vm1394_vm15 = vcmp.lt.s32.totalorder %v2833_v4, 7  ;;  %v1411_v26 = vperm.slane %v2836_v7, 4 }
 0x759   : > { %vm1402_vm11 = vcmp.lt.s32.totalorder %v1398_v8, 16  ;;  %vm1426_vm12 = vcmp.lt.s32.totalorder %v1422_v9, 16 }
 0x75a   : > { %v1193_v31 = vmul.f32 %v2317_v23, %v1190_v29  ;;  %v1382_v23 = vperm.slane %v2836_v7, 2  ;;  %v2132_v25 = vsel %vm1402_vm11, 1.0, %v2488_v24  ;;  %v2133_v28 = vsel %vm1426_vm12, 1.0, %v2488_v24 }
 0x75c   : > { %v1196_v33 = vadd.f32 %v2318_v30, %v1193_v31 }
 0x75e   : > { %v1197_v34 = vpack.c.bf16 %v1196_v33, %v1195_v32 }
 0x760   : > { %2126 = vmatmul.msk.bf16.vlgmr.msrb.gmra.mxu2 %vm330_vm0, %v1197_v34 }
 0x7e3   : > { %v1235_v36 = vpop.f32.mrf.mxu2 }
 0x7e4   : > { %v2821_v37 = vadd.f32 %v2319_v35, %v1235_v36 }
 0x7e6   : > { %v2127_v38 = vmul.f32 -1.442695, %v2821_v37 }
 0x7e8   : > { %2385 = vpow2.f32 %v2127_v38 }
 0x7eb   : > { %v1237_v40 = vpop.f32.mrf.mxu2 }
 0x7ec   : > { %v1238_v41 = vadd.f32 %v2319_v35, %v1237_v40 }
 0x7ee   : > { %v2386_v42 = vpop.eup %2385  ;;  %v2128_v43 = vmul.f32 -1.442695, %v1238_v41 }
 0x7ef   : > { %v1246_v44 = vadd.f32 1.0, %v2386_v42 }
 0x7f0   : > { %2387 = vpow2.f32 %v2128_v43 }
 0x7f1   : > { %2389 = vrcp.f32 %v1246_v44  ;;  %v1259_v52 = vand.u32 2147483648, %v1246_v44  ;;  %v1257_v51 = vand.u32 2147483647, %v1246_v44  ;;  %vm1253_vm2 = vweird.f32 %v1246_v44 }
 0x7f3   : > { %v1260_v54 = vor.u32 1.1754944e-38, %v1259_v52  ;;  %vm1258_vm4 = vcmp.eq.f32.partialorder %v1257_v51, 8.507059e+37 }
 0x7f6   : > { %v2388_v45 = vpop.eup %2387 }
 0x7f7   : > { %v2390_v47 = vpop.eup %2389  ;;  %v1247_v48 = vadd.f32 1.0, %v2388_v45 }
 0x7f8   : > { %v1249_v13 = vmul.f32 %v2390_v47, %v1246_v44  ;;  %vm1254_vm1 = vweird.f32 %v2390_v47 }
 0x7f9   : > { %2391 = vrcp.f32 %v1247_v48  ;;  %vm1255_vm3 = vmor %vm1253_vm2, %vm1254_vm1  ;;  %v1274_v58 = vand.u32 2147483648, %v1247_v48  ;;  %v1272_v60 = vand.u32 2147483647, %v1247_v48  ;;  %vm1268_vm6 = vweird.f32 %v1247_v48 }
 0x7fa   : > { %v1250_v49 = vsub.f32 1.0, %v1249_v13  ;;  %vm1418_vm1 = vcmp.lt.s32.totalorder %v2833_v4, 6  ;;  %vm1442_vm2 = vcmp.lt.s32.totalorder %v2833_v4, 5 }
 0x7fb   : > { %v1275_v62 = vor.u32 1.1754944e-38, %v1274_v58  ;;  %vm1273_vm9 = vcmp.eq.f32.partialorder %v1272_v60, 8.507059e+37 }
 0x7fc   : > { %v1251_v50 = vmul.f32 %v2390_v47, %v1250_v49 }
 0x7fe   : > { %v1252_v0 = vadd.f32 %v2390_v47, %v1251_v50 }
 0x7ff   : > { %v2392_v53 = vpop.eup %2391 }
 0x800   : > { %v1256_v55 = vsel %vm1255_vm3, %v2390_v47, %v1252_v0  ;;  %v1264_v56 = vmul.f32 %v2392_v53, %v1247_v48  ;;  %vm1269_vm5 = vweird.f32 %v2392_v53  ;;  %vm1450_vm3 = vcmp.lt.s32.totalorder %v1446_v14, 16 }
 0x801   : > { %v1261_v1 = vsel %vm1258_vm4, %v1260_v54, %v1256_v55  ;;  %vm1270_vm8 = vmor %vm1268_vm6, %vm1269_vm5  ;;  %vm1322_vm4 = vcmp.ge.s32.totalorder %v1320_v16, 0  ;;  %vm1346_vm5 = vcmp.ge.s32.totalorder %v1344_v17, 0  ;;  %vm1370_vm6 = vcmp.ge.s32.totalorder %v1368_v20, 0 }
 0x802   : > { %1280 = vrot.lane.b32.xlu1 %v1261_v1, %s2481_s19  ;;  %v1265_v57 = vsub.f32 1.0, %v1264_v56  ;;  %v2129_v42 = vsel %vm1322_vm4, 1.0, %v2488_v24  ;;  %v2130_v49 = vsel %vm1346_vm5, 1.0, %v2488_v24  ;;  %v2131_v52 = vsel %vm1370_vm6, 1.0, %v2488_v24 }
 0x803   : > { %v2134_v1 = vsel %vm1450_vm3, 1.0, %v2488_v24 }
 0x804   : > { %v1266_v59 = vmul.f32 %v2392_v53, %v1265_v57 }
 0x806   : > { %v1267_v61 = vadd.f32 %v2392_v53, %v1266_v59 }
 0x808   : > { %v1271_v63 = vsel %vm1270_vm8, %v2392_v53, %v1267_v61 }
 0x809   : > { %v1276_v2 = vsel %vm1273_vm9, %v1275_v62, %v1271_v63 }
 0x80a   : > { %1282 = vrot.lane.b32.xlu2 %v1276_v2, %s2481_s19 }
 0x812   : > { %1571 = vrot.lane.b32.xlu2 %v2760_v12, %s2481_s19 }
 0x81a   : > { %1567 = vrot.lane.b32.xlu2 %v2772_v11, %s2481_s19  ;;  %v1387_v11 = vperm.slane %v2836_v7, 3 }
 0x822   : > { %1565 = vrot.lane.b32.xlu2 %v2778_v19, %s2481_s19  ;;  %v1334_v19 = vperm.slane %v2836_v7, 0 }
 0x864   : > { %v1283_v12 = vpop.permute.xlu2 %1282 }
 0x865   : > { %v2842_v21 = vmul.f32 %v1283_v12, %v1238_v41 }
 0x867   : > { %v1316_v30 = vrot.slane %v2842_v21, 5  ;;  %v1340_v31 = vrot.slane %v2842_v21, 6  ;;  %v1364_v32 = vrot.slane %v2842_v21, 7  ;;  %v1393_v33 = vrot.slane %v2842_v21, 1 }
 0x868   : > { %v1417_v40 = vrot.slane %v2842_v21, 2  ;;  %v1441_v51 = vrot.slane %v2842_v21, 3  ;;  %v1389_v62 = vmul.f32 %v1387_v11, %v2842_v21 }
 0x874   : > { %v1281_v27 = vpop.permute.xlu1 %1280 }
 0x875   : > { %v2855_v29 = vmul.f32 %v1281_v27, %v2821_v37 }
 0x877   : > { %v1315_v34 = vrot.slane %v2855_v29, 5  ;;  %v1339_v35 = vrot.slane %v2855_v29, 6  ;;  %v1363_v36 = vrot.slane %v2855_v29, 7  ;;  %v1392_v37 = vrot.slane %v2855_v29, 1 }
 0x878   : > { %v1416_v38 = vrot.slane %v2855_v29, 2  ;;  %v1440_v41 = vrot.slane %v2855_v29, 3 }
 0x879   : > { %v1318_v43 = vsel %vm1317_vm10, %v1315_v34, %v1316_v30  ;;  %v1342_v44 = vsel %vm1341_vm13, %v1339_v35, %v1340_v31  ;;  %v1366_v45 = vsel %vm1365_vm14, %v1363_v36, %v1364_v32  ;;  %v1396_v47 = vsel %vm1394_vm15, %v1393_v33, %v1392_v37 }
 0x87a   : > { %v1336_v48 = vmul.f32 %v1334_v19, %v1318_v43  ;;  %v1360_v13 = vmul.f32 %v1358_v22, %v1342_v44  ;;  %v1420_v50 = vsel %vm1418_vm1, %v1417_v40, %v1416_v38  ;;  %v1319_v0 = vsel %vm1317_vm10, %v1316_v30, %v1315_v34  ;;  %v2320_v30 = vld [vmem:[#allocation2 + $0xd] ss:$0 sm:$0xff] }
 0x87b   : > { %v1343_v53 = vsel %vm1341_vm13, %v1340_v31, %v1339_v35  ;;  %v1384_v55 = vmul.f32 %v1382_v23, %v1366_v45  ;;  %v1410_v56 = vmul.f32 %v2132_v25, %v1396_v47  ;;  %v1444_v57 = vsel %vm1442_vm2, %v1441_v51, %v1440_v41 }
 0x87c   : > { %v1362_v54 = vadd.f32 %v1360_v13, %v1336_v48  ;;  %v1332_v58 = vmul.f32 %v2129_v42, %v1319_v0  ;;  %v1356_v59 = vmul.f32 %v2130_v49, %v1343_v53  ;;  %v1367_v60 = vsel %vm1365_vm14, %v1364_v32, %v1363_v36 }
 0x87d   : > { %v1434_v63 = vmul.f32 %v2133_v28, %v1420_v50  ;;  %v1380_v2 = vmul.f32 %v2131_v52, %v1367_v60  ;;  %v1413_v9 = vmul.f32 %v1411_v26, %v1410_v56  ;;  %v1458_v12 = vmul.f32 %v2134_v1, %v1444_v57 }
 0x87e   : > { %v1386_v61 = vadd.f32 %v1384_v55, %v1362_v54  ;;  %v1335_v5 = vmul.f32 %v1334_v19, %v1332_v58  ;;  %v1359_v6 = vmul.f32 %v1358_v22, %v1356_v59  ;;  %v1459_v25 = vperm.slane %v2836_v7, 6  ;;  %v1572_v54 = vpop.permute.xlu2 %1571 }
 0x87f   : > { %v1383_v16 = vmul.f32 %v1382_v23, %v1380_v2  ;;  %v1437_v20 = vmul.f32 %v1435_v10, %v1434_v63  ;;  %v1395_v21 = vsel %vm1394_vm15, %v1392_v37, %v1393_v33  ;;  %v1388_v19 = vmul.f32 %v1387_v11, %v2855_v29  ;;  %1584 = vmatpush.bf16.msra.mxu3 %v1572_v54 }
 0x880   : > { %v1391_v8 = vadd.f32 %v1389_v62, %v1386_v61  ;;  %v1361_v14 = vadd.f32 %v1359_v6, %v1335_v5  ;;  %v1461_v28 = vmul.f32 %v1459_v25, %v1458_v12  ;;  %v1419_v31 = vsel %vm1418_vm1, %v1416_v38, %v1417_v40  ;;  %v2321_v6 = vld [vmem:[#allocation2 + $0xe] ss:$0 sm:$0xff] }
 0x881   : > { %v1412_v23 = vmul.f32 %v1411_v26, %v1395_v21  ;;  %v1443_v35 = vsel %vm1442_vm2, %v1440_v41, %v1441_v51  ;;  %v1436_v36 = vmul.f32 %v1435_v10, %v1419_v31  ;;  %v2322_v10 = vld [vmem:[#allocation2 + $0xf] ss:$0 sm:$0xff] }
 0x882   : > { %v1415_v17 = vadd.f32 %v1413_v9, %v1391_v8  ;;  %v1385_v27 = vadd.f32 %v1383_v16, %v1361_v14  ;;  %v1460_v43 = vmul.f32 %v1459_v25, %v1443_v35 }
 0x884   : > { %v1439_v22 = vadd.f32 %v1437_v20, %v1415_v17  ;;  %v1390_v32 = vadd.f32 %v1388_v19, %v1385_v27 }
 0x886   : > { %v1463_v34 = vadd.f32 %v1461_v28, %v1439_v22  ;;  %v1414_v33 = vadd.f32 %v1412_v23, %v1390_v32  ;;  %v1568_v16 = vpop.permute.xlu2 %1567 }
 0x888   : > { %v1466_v37 = vadd.f32 %v2320_v30, %v1463_v34  ;;  %v1438_v42 = vadd.f32 %v1436_v36, %v1414_v33 }
 0x88a   : > { %v1470_v11 = vsel %vm330_vm0, %v1466_v37, 0.0  ;;  %v1476_v29 = vmul.f32 %v1466_v37, %v1466_v37  ;;  %v1462_v44 = vadd.f32 %v1460_v43, %v1438_v42 }
 0x88b   : > { %1471 = vadd.xlane.f32.xlu0 %v1470_v11 }
 0x88c   : > { %v1480_v38 = vsel %vm330_vm0, %v1476_v29, 0.0  ;;  %v2914_v40 = vadd.f32 %v2320_v30, %v1462_v44 }
 0x88d   : > { %1481 = vadd.xlane.f32.xlu1 %v1480_v38 }
 0x88e   : > { %v1467_v7 = vsel %vm330_vm0, %v2914_v40, 0.0  ;;  %v1475_v26 = vmul.f32 %v2914_v40, %v2914_v40  ;;  %v1566_v31 = vpop.permute.xlu2 %1565 }
 0x890   : > { %v1477_v41 = vsel %vm330_vm0, %v1475_v26, 0.0 }
 0x893   : > { %1468 = vadd.xlane.f32.xlu0 %v1467_v7 }
 0x89b   : > { %1478 = vadd.xlane.f32.xlu0 %v1477_v41 }
 0x8af   : > { %1569 = vrot.lane.b32.xlu0 %v2766_v18, %s2481_s19 }
 0x8fe   : > { %v1472_v45 = vpop.xlane.xlu0 %1471 }
 0x8ff   : > { %v1474_v47 = vmul.f32 %v1472_v45, %v2555_v15 }
 0x900   : > { %v1482_v48 = vpop.xlane.xlu1 %1481 }
 0x901   : > { %v1486_v13 = vmul.f32 %v1474_v47, %v1474_v47  ;;  %v1484_v49 = vmul.f32 %v1482_v48, %v2555_v15  ;;  %v1492_v5 = vsub.f32 %v1466_v37, %v1474_v47 }
 0x903   : > { %v1488_v52 = vsub.f32 %v1484_v49, %v1486_v13 }
 0x905   : > { %v1490_v50 = vmax.f32 %v1488_v52, 0.0 }
 0x906   : > { %v1469_v51 = vpop.xlane.xlu0 %1468 }
 0x907   : > { %v1494_v0 = vadd.f32 1e-05, %v1490_v50  ;;  %v1473_v53 = vmul.f32 %v1469_v51, %v2555_v15 }
 0x909   : > { %2393 = vrsqrt.f32 %v1494_v0  ;;  %v1485_v1 = vmul.f32 %v1473_v53, %v1473_v53  ;;  %vm1511_vm9 = vweird.f32 %v1494_v0  ;;  %v1491_v30 = vsub.f32 %v2914_v40, %v1473_v53 }
 0x90e   : > { %v1479_v55 = vpop.xlane.xlu0 %1478 }
 0x90f   : > { %v2394_v56 = vpop.eup %2393  ;;  %v1483_v18 = vmul.f32 %v1479_v55, %v2555_v15 }
 0x910   : > { %v1506_v57 = vmul.f32 %v2394_v56, %v1494_v0  ;;  %vm1512_vm8 = vweird.f32 %v2394_v56 }
 0x911   : > { %v1487_v58 = vsub.f32 %v1483_v18, %v1485_v1  ;;  %vm1513_vm10 = vmor %vm1511_vm9, %vm1512_vm8 }
 0x912   : > { %v1507_v59 = vmul.f32 %v2394_v56, %v1506_v57  ;;  %v2323_v57 = vld [vmem:[#allocation2 + $0x10] ss:$0 sm:$0xff] }
 0x913   : > { %v1489_v60 = vmax.f32 %v1487_v58, 0.0 }
 0x914   : > { %v1508_v61 = vmul.f32 0.5, %v1507_v59 }
 0x915   : > { %v1493_v62 = vadd.f32 1e-05, %v1489_v60 }
 0x916   : > { %v1509_v63 = vsub.f32 1.5, %v1508_v61 }
 0x917   : > { %2395 = vrsqrt.f32 %v1493_v62  ;;  %vm1501_vm12 = vweird.f32 %v1493_v62 }
 0x918   : > { %v1510_v2 = vmul.f32 %v2394_v56, %v1509_v63 }
 0x91a   : > { %v1514_v8 = vsel %vm1513_vm10, %v2394_v56, %v1510_v2 }
 0x91b   : > { %v1516_v9 = vmul.f32 %v1514_v8, %v1492_v5 }
 0x91d   : > { %v2396_v12 = vpop.eup %2395  ;;  %v1519_v14 = vmul.f32 %v2321_v6, %v1516_v9 }
 0x91e   : > { %v1496_v17 = vmul.f32 %v2396_v12, %v1493_v62  ;;  %vm1502_vm11 = vweird.f32 %v2396_v12 }
 0x91f   : > { %v1522_v20 = vadd.f32 %v2322_v10, %v1519_v14  ;;  %vm1503_vm13 = vmor %vm1501_vm12, %vm1502_vm11  ;;  %v2430_v14 = vld [vmem:[%s3030_s3 + $0x98] sm:$0xff] }
 0x920   : > { %v1497_v25 = vmul.f32 %v2396_v12, %v1496_v17  ;;  %v2432_v17 = vld [vmem:[%s3030_s3 + $0x68] sm:$0xff] }
 0x921   : > { %v1570_v21 = vpop.permute.xlu0 %1569  ;;  %v2136_v27 = vmul.f32 -1.442695, %v1522_v20 }
 0x922   : > { %v1498_v19 = vmul.f32 0.5, %v1497_v25  ;;  %1585 = vmatpush.bf16.msra.mxu3 %v1570_v21  ;;  %v2434_v25 = vld [vmem:[%s3030_s3 + $0x70] sm:$0xff] }
 0x923   : > { %2397 = vpow2.f32 %v2136_v27 }
 0x924   : > { %v1499_v22 = vsub.f32 1.5, %v1498_v19 }
 0x926   : > { %v1500_v28 = vmul.f32 %v2396_v12, %v1499_v22  ;;  %1586 = vmatpush.bf16.msra.mxu3 %v1568_v16  ;;  %v2431_v16 = vld [vmem:[%s3030_s3 + $0x60] sm:$0xff] }
 0x928   : > { %v1504_v32 = vsel %vm1503_vm13, %v2396_v12, %v1500_v28  ;;  %v2429_v12 = vld [vmem:[%s3030_s3 + $0x88] sm:$0xff] }
 0x929   : > { %v2398_v23 = vpop.eup %2397  ;;  %v1515_v34 = vmul.f32 %v1504_v32, %v1491_v30  ;;  %v2174_v30 = vld [vmem:[%s3030_s3 + $0x58] sm:$0xff] }
 0x92a   : > { %1587 = vmatpush.bf16.msra.mxu3 %v1566_v31  ;;  %v1530_v35 = vadd.f32 1.0, %v2398_v23  ;;  %1685 = vmatpush.bf16.msra.mxu0 %v2174_v30  ;;  %v2173_v23 = vld [vmem:[%s3030_s3 + $0x50] sm:$0xff] }
 0x92b   : > { %v1518_v33 = vmul.f32 %v2321_v6, %v1515_v34 }
 0x92c   : > { %2399 = vrcp.f32 %v1530_v35  ;;  %v1557_v41 = vand.u32 2147483648, %v1530_v35  ;;  %vm1551_vm1 = vweird.f32 %v1530_v35  ;;  %v1555_v47 = vand.u32 2147483647, %v1530_v35 }
 0x92d   : > { %v1521_v36 = vadd.f32 %v2322_v10, %v1518_v33  ;;  %v2427_v10 = vld [vmem:[%s3030_s3 + $0x90] sm:$0xff] }
 0x92e   : > { %v1558_v50 = vor.u32 1.1754944e-38, %v1557_v41  ;;  %vm1556_vm5 = vcmp.eq.f32.partialorder %v1555_v47, 8.507059e+37  ;;  %1686 = vmatpush.bf16.msra.mxu0 %v2173_v23 }
 0x92f   : > { %v2135_v37 = vmul.f32 -1.442695, %v1521_v36 }
 0x931   : > { %2401 = vpow2.f32 %v2135_v37 }
 0x932   : > { %v2400_v42 = vpop.eup %2399 }
 0x933   : > { %v1547_v43 = vmul.f32 %v2400_v42, %v1530_v35  ;;  %vm1552_vm14 = vweird.f32 %v2400_v42 }
 0x934   : > { %vm1553_vm2 = vmor %vm1551_vm1, %vm1552_vm14 }
 0x935   : > { %v1548_v44 = vsub.f32 1.0, %v1547_v43 }
 0x937   : > { %v2402_v11 = vpop.eup %2401  ;;  %v1549_v38 = vmul.f32 %v2400_v42, %v1548_v44 }
 0x938   : > { %v1529_v29 = vadd.f32 1.0, %v2402_v11  ;;  %v2171_v11 = vld [vmem:[%s3030_s3 + $0x40] sm:$0xff] }
 0x939   : > { %v1550_v26 = vadd.f32 %v2400_v42, %v1549_v38 }
 0x93a   : > { %2403 = vrcp.f32 %v1529_v29  ;;  %v1542_v48 = vand.u32 2147483648, %v1529_v29  ;;  %v1540_v49 = vand.u32 2147483647, %v1529_v29  ;;  %vm1536_vm4 = vweird.f32 %v1529_v29 }
 0x93b   : > { %v1554_v52 = vsel %vm1553_vm2, %v2400_v42, %v1550_v26 }
 0x93c   : > { %v1543_v0 = vor.u32 1.1754944e-38, %v1542_v48  ;;  %v1559_v53 = vsel %vm1556_vm5, %v1558_v50, %v1554_v52  ;;  %vm1541_vm8 = vcmp.eq.f32.partialorder %v1540_v49, 8.507059e+37 }
 0x93d   : > { %v1562_v1 = vmul.f32 %v1559_v53, %v1522_v20  ;;  %v2433_v20 = vld [vmem:[%s3030_s3 + $0x80] sm:$0xff]  ;;  %v2324_v53 = vld [vmem:[#allocation2 + $0x11] ss:$0 sm:$0xff] }
 0x940   : > { %v2404_v40 = vpop.eup %2403 }
 0x941   : > { %v1532_v7 = vmul.f32 %v2404_v40, %v1529_v29  ;;  %vm1537_vm3 = vweird.f32 %v2404_v40 }
 0x942   : > { %vm1538_vm6 = vmor %vm1536_vm4, %vm1537_vm3 }
 0x943   : > { %v1533_v45 = vsub.f32 1.0, %v1532_v7 }
 0x945   : > { %v1534_v13 = vmul.f32 %v2404_v40, %v1533_v45 }
 0x947   : > { %v1535_v51 = vadd.f32 %v2404_v40, %v1534_v13 }
 0x949   : > { %v1539_v54 = vsel %vm1538_vm6, %v2404_v40, %v1535_v51 }
 0x94a   : > { %v1544_v55 = vsel %vm1541_vm8, %v1543_v0, %v1539_v54 }
 0x94b   : > { %v1561_v56 = vmul.f32 %v1544_v55, %v1521_v36  ;;  %v2172_v36 = vld [vmem:[%s3030_s3 + $0x48] sm:$0xff] }
 0x94c   : > { %1687 = vmatpush.bf16.msra.mxu0 %v2172_v36 }
 0x94d   : > { %v1563_v18 = vpack.c.bf16 %v1562_v1, %v1561_v56 }
 0x94f   : > { %2137 = vmatmul.msk.bf16.vlgmr.msra.gmra.mxu3 %vm330_vm0, %v1563_v18 }
 0x950   : > { %1688 = vmatpush.bf16.msra.mxu0 %v2171_v11 }
 0x9d2   : > { %v1589_v58 = vpop.f32.mrf.mxu3 }
 0x9d3   : > { %v1590_v59 = vadd.f32 %v2323_v57, %v1589_v58  ;;  %v2325_v58 = vld [vmem:[#allocation2 + $0x12] ss:$0 sm:$0xff] }
 0x9d5   : > { %v2930_v60 = vadd.f32 %v1590_v59, %v2787_v39 }
 0x9d7   : > { %v1596_v61 = vsel %vm330_vm0, %v2930_v60, 0.0  ;;  %v1604_v62 = vmul.f32 %v2930_v60, %v2930_v60 }
 0x9d8   : > { %1597 = vadd.xlane.f32.xlu0 %v1596_v61 }
 0x9d9   : > { %v1606_v63 = vsel %vm330_vm0, %v1604_v62, 0.0 }
 0x9da   : > { %v1591_v2 = vpop.f32.mrf.mxu3  ;;  %1607 = vadd.xlane.f32.xlu1 %v1606_v63 }
 0x9db   : > { %v1592_v5 = vadd.f32 %v2323_v57, %v1591_v2 }
 0x9dd   : > { %v2938_v6 = vadd.f32 %v1592_v5, %v2795_v46  ;;  %v2428_v46 = vld [vmem:[%s3030_s3 + $0x78] sm:$0xff] }
 0x9df   : > { %v1599_v8 = vsel %vm330_vm0, %v2938_v6, 0.0  ;;  %v1605_v39 = vmul.f32 %v2938_v6, %v2938_v6 }
 0x9e0   : > { %1600 = vadd.xlane.f32.xlu2 %v1599_v8 }
 0x9e1   : > { %v1609_v9 = vsel %vm330_vm0, %v1605_v39, 0.0  ;;  %v2326_v39 = vld [vmem:[#allocation2 + $0x19] ss:$0 sm:$0xff] }
 0x9e2   : > { %1610 = vadd.xlane.f32.xlu1 %v1609_v9 }
 0x9ec   : > { %1749 = vrot.lane.b32.xlu0 %v2427_v10, %s2481_s19 }
 0x9f4   : > { %1743 = vrot.lane.b32.xlu0 %v2428_v46, %s2481_s19 }
 0x9f8   : > { %1747 = vrot.lane.b32.xlu2 %v2429_v12, %s2481_s19 }
 0x9fb   : > { %1751 = vrot.lane.b32.xlu1 %v2430_v14, %s2481_s19 }
 0x9fc   : > { %1737 = vrot.lane.b32.xlu0 %v2431_v16, %s2481_s19 }
 0xa00   : > { %1739 = vrot.lane.b32.xlu2 %v2432_v17, %s2481_s19 }
 0xa03   : > { %1745 = vrot.lane.b32.xlu1 %v2433_v20, %s2481_s19 }
 0xa0b   : > { %1741 = vrot.lane.b32.xlu1 %v2434_v25, %s2481_s19 }
 0xa4b   : > { %v1598_v21 = vpop.xlane.xlu0 %1597 }
 0xa4c   : > { %v1602_v27 = vmul.f32 %v1598_v21, %v2555_v15 }
 0xa4d   : > { %v1608_v19 = vpop.xlane.xlu1 %1607 }
 0xa4e   : > { %v1614_v22 = vmul.f32 %v1602_v27, %v1602_v27  ;;  %v1612_v28 = vmul.f32 %v1608_v19, %v2555_v15  ;;  %v1620_v51 = vsub.f32 %v2930_v60, %v1602_v27 }
 0xa50   : > { %v1616_v31 = vsub.f32 %v1612_v28, %v1614_v22 }
 0xa52   : > { %v1618_v32 = vmax.f32 %v1616_v31, 0.0 }
 0xa53   : > { %v1601_v34 = vpop.xlane.xlu2 %1600 }
 0xa54   : > { %v1622_v35 = vadd.f32 1e-12, %v1618_v32  ;;  %v1603_v33 = vmul.f32 %v1601_v34, %v2555_v15 }
 0xa55   : > { %v1611_v37 = vpop.xlane.xlu1 %1610 }
 0xa56   : > { %2405 = vrsqrt.f32 %v1622_v35  ;;  %v1615_v42 = vmul.f32 %v1603_v33, %v1603_v33  ;;  %v1613_v43 = vmul.f32 %v1611_v37, %v2555_v15  ;;  %vm1630_vm10 = vweird.f32 %v1622_v35 }
 0xa57   : > { %v1621_v56 = vsub.f32 %v2938_v6, %v1603_v33 }
 0xa58   : > { %v1617_v29 = vsub.f32 %v1613_v43, %v1615_v42 }
 0xa5a   : > { %v1619_v44 = vmax.f32 %v1617_v29, 0.0 }
 0xa5b   : > { %v1748_v8 = vpop.permute.xlu2 %1747 }
 0xa5c   : > { %v2406_v38 = vpop.eup %2405  ;;  %v1623_v7 = vadd.f32 1e-12, %v1619_v44 }
 0xa5d   : > { %v1625_v40 = vmul.f32 %v2406_v38, %v1622_v35  ;;  %vm1631_vm9 = vweird.f32 %v2406_v38 }
 0xa5e   : > { %2407 = vrsqrt.f32 %v1623_v7  ;;  %vm1632_vm11 = vmor %vm1630_vm10, %vm1631_vm9  ;;  %vm1640_vm13 = vweird.f32 %v1623_v7  ;;  %v1750_v5 = vpop.permute.xlu0 %1749 }
 0xa5f   : > { %v1626_v26 = vmul.f32 %v2406_v38, %v1625_v40 }
 0xa61   : > { %v1627_v41 = vmul.f32 0.5, %v1626_v26 }
 0xa63   : > { %v1628_v45 = vsub.f32 1.5, %v1627_v41  ;;  %v1740_v25 = vpop.permute.xlu2 %1739 }
 0xa64   : > { %v2408_v47 = vpop.eup %2407 }
 0xa65   : > { %v1629_v48 = vmul.f32 %v2406_v38, %v1628_v45  ;;  %v1635_v13 = vmul.f32 %v2408_v47, %v1623_v7  ;;  %vm1641_vm12 = vweird.f32 %v2408_v47 }
 0xa66   : > { %vm1642_vm14 = vmor %vm1640_vm13, %vm1641_vm12  ;;  %v1744_v12 = vpop.permute.xlu0 %1743 }
 0xa67   : > { %v1636_v49 = vmul.f32 %v2408_v47, %v1635_v13  ;;  %v1633_v52 = vsel %vm1632_vm11, %v2406_v38, %v1629_v48 }
 0xa68   : > { %v1644_v54 = vmul.f32 %v1633_v52, %v1620_v51  ;;  %v2327_v52 = vld [vmem:[#allocation2 + $0x13] ss:$0 sm:$0xff] }
 0xa69   : > { %v1637_v50 = vmul.f32 0.5, %v1636_v49 }
 0xa6a   : > { %v1647_v18 = vmul.f32 %v2324_v53, %v1644_v54 }
 0xa6b   : > { %v1638_v0 = vsub.f32 1.5, %v1637_v50 }
 0xa6c   : > { %v1650_v61 = vadd.f32 %v2325_v58, %v1647_v18 }
 0xa6d   : > { %v1639_v55 = vmul.f32 %v2408_v47, %v1638_v0  ;;  %v1752_v2 = vpop.permute.xlu1 %1751 }
 0xa6e   : > { %1761 = vmatpush.bf16.msra.mxu1 %v1752_v2  ;;  %v1738_v19 = vpop.permute.xlu0 %1737 }
 0xa6f   : > { %v1643_v1 = vsel %vm1642_vm14, %v2408_v47, %v1639_v55 }
 0xa70   : > { %v1645_v57 = vmul.f32 %v1643_v1, %v1621_v56 }
 0xa72   : > { %v1648_v59 = vmul.f32 %v2324_v53, %v1645_v57  ;;  %1762 = vmatpush.bf16.msra.mxu1 %v1750_v5 }
 0xa74   : > { %v1651_v62 = vadd.f32 %v2325_v58, %v1648_v59 }
 0xa75   : > { %v1746_v9 = vpop.permute.xlu1 %1745 }
 0xa76   : > { %v1652_v63 = vpack.c.bf16 %v1651_v62, %v1650_v61  ;;  %1763 = vmatpush.bf16.msra.mxu1 %v1748_v8 }
 0xa78   : > { %2154 = vmatmul.msk.bf16.vlgmr.msra.gmra.mxu0 %vm330_vm0, %v1652_v63 }
 0xa7a   : > { %1764 = vmatpush.bf16.msra.mxu1 %v1746_v9 }
 0xa7d   : > { %v1742_v16 = vpop.permute.xlu1 %1741 }
 0xa7e   : > { %1765 = vmatpush.bf16.msra.mxu1 %v1744_v12 }
 0xa82   : > { %1766 = vmatpush.bf16.msra.mxu1 %v1742_v16 }
 0xa86   : > { %1767 = vmatpush.bf16.msra.mxu1 %v1740_v25 }
 0xa8a   : > { %1768 = vmatpush.bf16.msra.mxu1 %v1738_v19 }
 0xaf5   : > { %v1690_v10 = vpop.f32.mrf.mxu0 }
 0xaf6   : > { %v1691_v46 = vadd.f32 %v2326_v39, %v1690_v10 }
 0xaf8   : > { %v2155_v14 = vmul.f32 -1.442695, %v1691_v46 }
 0xafa   : > { %2409 = vpow2.f32 %v2155_v14 }
 0xafd   : > { %v1692_v17 = vpop.f32.mrf.mxu0 }
 0xafe   : > { %v1693_v20 = vadd.f32 %v2326_v39, %v1692_v17 }
 0xb00   : > { %v2410_v21 = vpop.eup %2409  ;;  %v2156_v27 = vmul.f32 -1.442695, %v1693_v20 }
 0xb01   : > { %v1701_v22 = vadd.f32 1.0, %v2410_v21 }
 0xb02   : > { %2411 = vpow2.f32 %v2156_v27 }
 0xb03   : > { %2413 = vrcp.f32 %v1701_v22  ;;  %v1714_v37 = vand.u32 2147483648, %v1701_v22  ;;  %vm1708_vm2 = vweird.f32 %v1701_v22  ;;  %v1712_v42 = vand.u32 2147483647, %v1701_v22 }
 0xb05   : > { %v1715_v40 = vor.u32 1.1754944e-38, %v1714_v37  ;;  %vm1713_vm5 = vcmp.eq.f32.partialorder %v1712_v42, 8.507059e+37 }
 0xb08   : > { %v2412_v28 = vpop.eup %2411 }
 0xb09   : > { %v2414_v30 = vpop.eup %2413  ;;  %v1702_v31 = vadd.f32 1.0, %v2412_v28 }
 0xb0a   : > { %v1704_v32 = vmul.f32 %v2414_v30, %v1701_v22  ;;  %vm1709_vm1 = vweird.f32 %v2414_v30 }
 0xb0b   : > { %2415 = vrcp.f32 %v1702_v31  ;;  %vm1710_vm3 = vmor %vm1708_vm2, %vm1709_vm1  ;;  %v1729_v11 = vand.u32 2147483648, %v1702_v31  ;;  %v1727_v38 = vand.u32 2147483647, %v1702_v31  ;;  %vm1723_vm6 = vweird.f32 %v1702_v31 }
 0xb0c   : > { %v1705_v23 = vsub.f32 1.0, %v1704_v32 }
 0xb0d   : > { %v1730_v41 = vor.u32 1.1754944e-38, %v1729_v11  ;;  %vm1728_vm9 = vcmp.eq.f32.partialorder %v1727_v38, 8.507059e+37 }
 0xb0e   : > { %v1706_v34 = vmul.f32 %v2414_v30, %v1705_v23 }
 0xb10   : > { %v1707_v33 = vadd.f32 %v2414_v30, %v1706_v34  ;;  %v2328_v34 = vld [vmem:[#allocation2 + $0x14] ss:$0 sm:$0xff] }
 0xb11   : > { %v2416_v35 = vpop.eup %2415 }
 0xb12   : > { %v1719_v36 = vmul.f32 %v2416_v35, %v1702_v31  ;;  %v1711_v29 = vsel %vm1710_vm3, %v2414_v30, %v1707_v33  ;;  %vm1724_vm4 = vweird.f32 %v2416_v35 }
 0xb13   : > { %v1716_v26 = vsel %vm1713_vm5, %v1715_v40, %v1711_v29  ;;  %vm1725_vm8 = vmor %vm1723_vm6, %vm1724_vm4 }
 0xb14   : > { %v1720_v43 = vsub.f32 1.0, %v1719_v36  ;;  %v1733_v48 = vmul.f32 %v1716_v26, %v1691_v46  ;;  %v2329_v36 = vld [vmem:[#allocation2 + $0x15] ss:$0 sm:$0xff] }
 0xb16   : > { %v1721_v44 = vmul.f32 %v2416_v35, %v1720_v43  ;;  %v2330_v43 = vld [vmem:[#allocation2 + $0x16] ss:$0 sm:$0xff] }
 0xb18   : > { %v1722_v7 = vadd.f32 %v2416_v35, %v1721_v44 }
 0xb1a   : > { %v1726_v45 = vsel %vm1725_vm8, %v2416_v35, %v1722_v7 }
 0xb1b   : > { %v1731_v47 = vsel %vm1728_vm9, %v1730_v41, %v1726_v45 }
 0xb1c   : > { %v1734_v13 = vmul.f32 %v1731_v47, %v1693_v20 }
 0xb1e   : > { %v1735_v49 = vpack.c.bf16 %v1734_v13, %v1733_v48  ;;  %v1885_v48 = vand.u32 127, %v1288_v3  ;;  %v1886_v13 = vmul.u32 2, %v2833_v4 }
 0xb20   : > { %1769 = vmatmul.bf16.vlgmr.msra.gmra.mxu1 %v1735_v49  ;;  %vm1887_vm2 = vcmp.eq.s32.totalorder %v1885_v48, %v1886_v13 }
 0xb21   : > { %v2157_v3 = vsel %vm1887_vm2, 1.0, %v2488_v24 }
 0xb9d   : > { %v1770_v50 = vpop.f32.mrf.mxu1 }
 0xb9e   : > { %v1771_v51 = vadd.f32 %v2327_v52, %v1770_v50 }
 0xba0   : > { %v1775_v0 = vmul.f32 0.5, %v1771_v51 }
 0xba2   : > { %v1777_v53 = vadd.f32 %v1775_v0, %v2930_v60 }
 0xba4   : > { %v1779_v54 = vsel %vm330_vm0, %v1777_v53, 0.0  ;;  %v1787_v55 = vmul.f32 %v1777_v53, %v1777_v53 }
 0xba5   : > { %v1772_v56 = vpop.f32.mrf.mxu1  ;;  %1780 = vadd.xlane.f32.xlu1 %v1779_v54 }
 0xba6   : > { %v1773_v1 = vadd.f32 %v2327_v52, %v1772_v56  ;;  %v1789_v18 = vsel %vm330_vm0, %v1787_v55, 0.0 }
 0xba7   : > { %1790 = vadd.xlane.f32.xlu0 %v1789_v18 }
 0xba8   : > { %v1776_v57 = vmul.f32 0.5, %v1773_v1 }
 0xbaa   : > { %v1778_v58 = vadd.f32 %v1776_v57, %v2938_v6 }
 0xbac   : > { %v1782_v59 = vsel %vm330_vm0, %v1778_v58, 0.0  ;;  %v1788_v61 = vmul.f32 %v1778_v58, %v1778_v58 }
 0xbad   : > { %1783 = vadd.xlane.f32.xlu2 %v1782_v59 }
 0xbae   : > { %v1792_v62 = vsel %vm330_vm0, %v1788_v61, 0.0 }
 0xbaf   : > { %1793 = vadd.xlane.f32.xlu1 %v1792_v62 }
 0xc18   : > { %v1781_v60 = vpop.xlane.xlu1 %1780 }
 0xc19   : > { %v1785_v63 = vmul.f32 %v1781_v60, %v2555_v15 }
 0xc1a   : > { %v1791_v2 = vpop.xlane.xlu0 %1790 }
 0xc1b   : > { %v1797_v5 = vmul.f32 %v1785_v63, %v1785_v63  ;;  %v1795_v8 = vmul.f32 %v1791_v2, %v2555_v15  ;;  %v1803_v32 = vsub.f32 %v1777_v53, %v1785_v63 }
 0xc1d   : > { %v1799_v39 = vsub.f32 %v1795_v8, %v1797_v5 }
 0xc1f   : > { %v1801_v9 = vmax.f32 %v1799_v39, 0.0 }
 0xc20   : > { %v1784_v10 = vpop.xlane.xlu2 %1783 }
 0xc21   : > { %v1805_v46 = vadd.f32 1e-12, %v1801_v9  ;;  %v1786_v6 = vmul.f32 %v1784_v10, %v2555_v15 }
 0xc22   : > { %v1794_v12 = vpop.xlane.xlu1 %1793 }
 0xc23   : > { %2417 = vrsqrt.f32 %v1805_v46  ;;  %v1798_v14 = vmul.f32 %v1786_v6, %v1786_v6  ;;  %v1796_v16 = vmul.f32 %v1794_v12, %v2555_v15  ;;  %vm1813_vm11 = vweird.f32 %v1805_v46 }
 0xc24   : > { %v1804_v40 = vsub.f32 %v1778_v58, %v1786_v6 }
 0xc25   : > { %v1800_v17 = vsub.f32 %v1796_v16, %v1798_v14 }
 0xc27   : > { %v1802_v20 = vmax.f32 %v1800_v17, 0.0 }
 0xc29   : > { %v2418_v25 = vpop.eup %2417  ;;  %v1806_v27 = vadd.f32 1e-12, %v1802_v20 }
 0xc2a   : > { %v1808_v21 = vmul.f32 %v2418_v25, %v1805_v46  ;;  %vm1814_vm10 = vweird.f32 %v2418_v25 }
 0xc2b   : > { %2419 = vrsqrt.f32 %v1806_v27  ;;  %vm1815_vm12 = vmor %vm1813_vm11, %vm1814_vm10  ;;  %vm1823_vm14 = vweird.f32 %v1806_v27 }
 0xc2c   : > { %v1809_v19 = vmul.f32 %v2418_v25, %v1808_v21 }
 0xc2e   : > { %v1810_v22 = vmul.f32 0.5, %v1809_v19 }
 0xc30   : > { %v1811_v28 = vsub.f32 1.5, %v1810_v22 }
 0xc31   : > { %v2420_v30 = vpop.eup %2419 }
 0xc32   : > { %v1812_v31 = vmul.f32 %v2418_v25, %v1811_v28  ;;  %v1818_v23 = vmul.f32 %v2420_v30, %v1806_v27  ;;  %vm1824_vm13 = vweird.f32 %v2420_v30 }
 0xc33   : > { %vm1825_vm1 = vmor %vm1823_vm14, %vm1824_vm13 }
 0xc34   : > { %v1816_v35 = vsel %vm1815_vm12, %v2418_v25, %v1812_v31  ;;  %v1819_v15 = vmul.f32 %v2420_v30, %v1818_v23 }
 0xc35   : > { %v1827_v33 = vmul.f32 %v1816_v35, %v1803_v32 }
 0xc36   : > { %v1820_v37 = vmul.f32 0.5, %v1819_v15 }
 0xc37   : > { %v1830_v42 = vmul.f32 %v2328_v34, %v1827_v33 }
 0xc38   : > { %v1821_v11 = vsub.f32 1.5, %v1820_v37 }
 0xc39   : > { %v1833_v29 = vadd.f32 %v2329_v36, %v1830_v42 }
 0xc3a   : > { %v1822_v44 = vmul.f32 %v2420_v30, %v1821_v11 }
 0xc3b   : > { %v1836_v38 = vmul.f32 %v2330_v43, %v1833_v29  ;;  %v1878_v52 = vrot.slane %v1833_v29, 1 }
 0xc3c   : > { %v1826_v7 = vsel %vm1825_vm1, %v2420_v30, %v1822_v44 }
 0xc3d   : > { %v1838_v26 = vsel %vm330_vm0, %v1836_v38, 0.0  ;;  %v1828_v41 = vmul.f32 %v1826_v7, %v1804_v40 }
 0xc3e   : > { %1839 = vadd.xlane.f32.xlu2 %v1838_v26 }
 0xc3f   : > { %v1831_v45 = vmul.f32 %v2328_v34, %v1828_v41 }
 0xc41   : > { %v1834_v47 = vadd.f32 %v2329_v36, %v1831_v45 }
 0xc43   : > { %v1837_v49 = vmul.f32 %v2330_v43, %v1834_v47  ;;  %v1879_v50 = vrot.slane %v1834_v47, 1 }
 0xc45   : > { %v1841_v51 = vsel %vm330_vm0, %v1837_v49, 0.0  ;;  %v1881_v0 = vsel %vm1394_vm15, %v1879_v50, %v1878_v52  ;;  %v1880_v53 = vsel %vm1394_vm15, %v1878_v52, %v1879_v50  ;;  %vm1917_vm15 = vcmask 1040384  }
 0xc46   : > { %1842 = vadd.xlane.f32.xlu0 %v1841_v51  ;;  %v1883_v54 = vmax.f32 %v1834_v47, %v1881_v0  ;;  %v1882_v55 = vmax.f32 %v1833_v29, %v1880_v53 }
 0xc48   : > { %1907 = vmatpush.msra.mxu2 %v1883_v54 }
 0xc4a   : > { %1908 = vmatpush.msra.mxu2 %v1882_v55 }
 0xc4b   : > { %2158 = vmatmul.msk.f32.vlgmr.msra.gmra.mxu2 %vm700_vm7, %v2157_v3  ;;  %vm1920_vm7 = vcmask 516096  }
 0xcb1   : > { %v1840_v56 = vpop.xlane.xlu2 %1839 }
 0xcb9   : > { %v1843_v1 = vpop.xlane.xlu0 %1842 }
 0xcba   : > { %v1844_v18 = vmax.f32 %v1840_v56, %v1843_v1 }
 0xcbc   : > { %v1845_v57 = vrot.slane %v1844_v18, 4 }
 0xcbe   : > { %v1846_v58 = vmax.f32 %v1844_v18, %v1845_v57 }
 0xcc0   : > { %v1847_v59 = vrot.slane %v1846_v58, 2 }
 0xcc2   : > { %v1848_v61 = vmax.f32 %v1846_v58, %v1847_v59 }
 0xcc4   : > { %v1849_v62 = vrot.slane %v1848_v61, 1 }
 0xcc6   : > { %v1850_v4 = vmax.f32 %v1848_v61, %v1849_v62 }
 0xcc8   : > { %v1851_v60 = vsub.f32 %v1840_v56, %v1850_v4  ;;  %v1852_v63 = vsub.f32 %v1843_v1, %v1850_v4 }
 0xcca   : > { %v1853_v2 = vmul.f32 1.442695, %v1851_v60  ;;  %v1855_v5 = vmul.f32 1.442695, %v1852_v63 }
 0xccc   : > { %2421 = vpow2.f32 %v1853_v2 }
 0xccd   : > { %2423 = vpow2.f32 %v1855_v5 }
 0xcce   : > { %v1910_v6 = vpop.f32.mrf.mxu2 }
 0xccf   : > { %v1913_v12 = vmul.f32 8.0, %v1910_v6 }
 0xcd1   : > { %v1915_v16 = vrot.slane %v1913_v12, 7 }
 0xcd2   : > { %v2422_v24 = vpop.eup %2421 }
 0xcd3   : > { %v2424_v8 = vpop.eup %2423  ;;  %1921 = vst.msk [vmem:[%s241_s6 + $0x8] sm:$0x1] %vm1920_vm7, %v1915_v16 }
 0xcd4   : > { %v1857_v39 = vadd.f32 %v2424_v8, %v2422_v24 }
 0xcd6   : > { %v1858_v9 = vrot.slane %v1857_v39, 4 }
 0xcd8   : > { %v1859_v10 = vadd.f32 %v1858_v9, %v1857_v39 }
 0xcda   : > { %v1860_v46 = vrot.slane %v1859_v10, 2 }
 0xcdc   : > { %v1861_v14 = vadd.f32 %v1860_v46, %v1859_v10 }
 0xcde   : > { %v1862_v17 = vrot.slane %v1861_v14, 1 }
 0xce0   : > { %v1863_v20 = vadd.f32 %v1862_v17, %v1861_v14 }
 0xce2   : > { %2425 = vrcp.f32 %v1863_v20 }
 0xce8   : > { %v2426_v25 = vpop.eup %2425 }
 0xce9   : > { %v1865_v21 = vmul.f32 %v2426_v25, %v2422_v24  ;;  %v1866_v27 = vmul.f32 %v2426_v25, %v2424_v8 }
 0xceb   : > { %v1867_v19 = vmul.f32 %v1865_v21, %v1833_v29  ;;  %v1868_v22 = vmul.f32 %v1866_v27, %v1834_v47 }
 0xced   : > { %v1869_v28 = vsel %vm330_vm0, %v1867_v19, 0.0  ;;  %v1870_v30 = vsel %vm330_vm0, %v1868_v22, 0.0 }
 0xcee   : > { %v1871_v31 = vadd.f32 %v1870_v30, %v1869_v28 }
 0xcf0   : > { %v1872_v32 = vrot.slane %v1871_v31, 4 }
 0xcf2   : > { %v1873_v23 = vadd.f32 %v1872_v32, %v1871_v31 }
 0xcf4   : > { %v1874_v34 = vrot.slane %v1873_v23, 2 }
 0xcf6   : > { %v1875_v35 = vadd.f32 %v1874_v34, %v1873_v23 }
 0xcf8   : > { %v1876_v33 = vrot.slane %v1875_v35, 1 }
 0xcfa   : > { %v1877_v15 = vadd.f32 %v1876_v33, %v1875_v35 }
 0xcfc   : > { %v1918_v36 = vsel %vm1917_vm15, %v1877_v15, %v1915_v16 }
 0xcfd   : > { %1919 = vst.msk [vmem:[%s241_s6] sm:$0xff] %vm330_vm0, %v1918_v36 }
 0xcfe PF: > { %s16_s18 = sadd.s32 1, %s2475_s18  }
 0xcff   : > { %p13_p7 = scmp.ge.s32.totalorder %s16_s18, 4  }
 0xd01   :  { %15 = sbr.rel (!%p13_p7) target bundleno = 1 (0x1), region = 75 }
 0xd06   :  { %1943 = vsyncpa [#allocation3], 1 }
 0xd07   :  { %1945 = vsyncpa [#allocation3 + $0x1], 1 }

</bundles_post_ra>
